<compile_context>
chip_gen: v5e
topology: v5e:2x2
jax: 0.10.0
libtpu: 0.0.40
codegen_flags: <defaults>
</compile_context>

<pallas_src>
import functools

import jax
import jax.numpy as jnp
from jax.experimental import pallas as pl
from jax.experimental.pallas import tpu as pltpu


# ---------------------------------------------------------------------------
# Pallas kernel: full encoder + decoder unroll (single program, all in VMEM)
# ---------------------------------------------------------------------------
def _seq2seq_kernel(gi_enc_ref, dec_act_gi_ref, prev0_ref,
                    w_pose_ref, whh1_ref, bhh1n_ref,
                    w1out_ref, whh2_ref, b2_ref, bhh2n_ref,
                    fc_bot_ref, fcb_ref,
                    out_ref,
                    *, num_layers, hidden, human_size, enc_steps, dec_steps):
    H = hidden

    # hoist all weights once (small; live in vregs / VMEM)
    w_pose = w_pose_ref[...]          # (human, 3H)
    whh1 = whh1_ref[...]              # (H, 3H)
    bhh1_n = bhh1n_ref[...]           # (1, H)   n-gate hidden bias (layer 1)
    w1out = w1out_ref[...]            # L>1: (H, 3H+human) = [W_ih2^T | fc_top]
    fcb = fcb_ref[...]                # (1, human)
    if num_layers > 1:
        whh2 = whh2_ref[...]          # (H, 3H)
        b2 = b2_ref[...]              # (1, 3H)  folded input-side bias (layer 2)
        bhh2_n = bhh2n_ref[...]       # (1, H)
        fc_bot = fc_bot_ref[...]      # (H, human)

    B = prev0_ref.shape[0]
    h1 = jnp.zeros((B, H), jnp.float32)
    h2 = jnp.zeros((B, H), jnp.float32)

    def gru(gi, h, whh_t, bhh_n):
        # gi already contains x@W_ih^T + (b_ih with r/z hidden biases folded in)
        gh = jnp.dot(h, whh_t, preferred_element_type=jnp.float32)
        r = jax.nn.sigmoid(gi[:, :H] + gh[:, :H])
        z = jax.nn.sigmoid(gi[:, H:2 * H] + gh[:, H:2 * H])
        n = jnp.tanh(gi[:, 2 * H:] + r * (gh[:, 2 * H:] + bhh_n))
        return (1.0 - z) * n + z * h

    # ----- encoder: source_seq_len - 1 steps (fully unrolled) -----
    for i in range(enc_steps):
        h1 = gru(gi_enc_ref[i], h1, whh1, bhh1_n)
        if num_layers > 1:
            g = jnp.dot(h1, w1out, preferred_element_type=jnp.float32)
            h2 = gru(g[:, :3 * H] + b2, h2, whh2, bhh2_n)

    # ----- decoder: target_seq_len steps with output feedback (fully unrolled) -----
    prev = prev0_ref[...]             # (B, human) = decoder_inputs[0, :, :human]
    outs = []
    for t in range(dec_steps):
        gi1 = (jnp.dot(prev, w_pose, preferred_element_type=jnp.float32)
               + dec_act_gi_ref[t])
        h1 = gru(gi1, h1, whh1, bhh1_n)
        if num_layers > 1:
            g = jnp.dot(h1, w1out, preferred_element_type=jnp.float32)
            fc = g[:, 3 * H:]
            h2 = gru(g[:, :3 * H] + b2, h2, whh2, bhh2_n)
            fc = fc + jnp.dot(h2, fc_bot, preferred_element_type=jnp.float32)
        else:
            fc = jnp.dot(h1, w1out, preferred_element_type=jnp.float32)
        out = prev + fc + fcb         # residual connection
        outs.append(out)
        prev = out

    # single lane-dense store: (B, dec_steps * human_size)
    out_ref[...] = jnp.concatenate(outs, axis=1)


# ---------------------------------------------------------------------------
# Wrapper: weight prep / hoisted projections in XLA, then one pallas_call
# ---------------------------------------------------------------------------
def seq2seq_forward(encoder_inputs, decoder_inputs, params, *,
                    num_layers, rnn_size, human_size):
    """encoder_inputs: (B, source_seq_len-1, input_size)
       decoder_inputs: (B, target_seq_len,  input_size)
       returns:        (B, target_seq_len,  human_size)"""
    f32 = jnp.float32
    B, enc_steps, _ = encoder_inputs.shape
    _, dec_steps, _ = decoder_inputs.shape
    H = rnn_size

    enc_tm = jnp.transpose(encoder_inputs, (1, 0, 2)).astype(f32)   # (Te, B, F)
    dec_tm = jnp.transpose(decoder_inputs, (1, 0, 2)).astype(f32)   # (Td, B, F)

    w_ih1 = params["w_ih1"].astype(f32)                 # (3H, F)
    w_hh1 = params["w_hh1"].astype(f32)                 # (3H, H)
    b_ih1 = params["b_ih1"].astype(f32)
    b_hh1 = params["b_hh1"].astype(f32)

    # fold r/z gate biases (always summed inside sigmoid); keep n hidden bias apart
    b1 = jnp.concatenate([b_ih1[:H] + b_hh1[:H],
                          b_ih1[H:2 * H] + b_hh1[H:2 * H],
                          b_ih1[2 * H:]])
    bhh1_n = b_hh1[2 * H:][None, :]

    # encoder input projection for ALL steps in one matmul (off the serial path)
    gi_enc = jnp.einsum("tbf,gf->tbg", enc_tm, w_ih1) + b1           # (Te, B, 3H)

    # decoder: precompute action-slot projection; pose slots are fed back (prev)
    w_pose_t = w_ih1[:, :human_size].T                               # (human, 3H)
    w_act = w_ih1[:, human_size:]                                    # (3H, F-human)
    dec_act_gi = (jnp.einsum("tbf,gf->tbg", dec_tm[:, :, human_size:], w_act)
                  + b1)                                              # (Td, B, 3H)
    prev0 = dec_tm[0, :, :human_size]                                # (B, human)

    whh1_t = w_hh1.T                                                 # (H, 3H)

    fc_w = params["fc_w"].astype(f32)                                # (human, H*L)
    fc_b = params["fc_b"].astype(f32)[None, :]                       # (1, human)
    fc_top = fc_w[:, :H].T                                           # (H, human)

    if num_layers > 1:
        w_ih2 = params["w_ih2"].astype(f32)
        w_hh2 = params["w_hh2"].astype(f32)
        b_ih2 = params["b_ih2"].astype(f32)
        b_hh2 = params["b_hh2"].astype(f32)
        b2 = jnp.concatenate([b_ih2[:H] + b_hh2[:H],
                              b_ih2[H:2 * H] + b_hh2[H:2 * H],
                              b_ih2[2 * H:]])[None, :]               # (1, 3H)
        bhh2_n = b_hh2[2 * H:][None, :]                              # (1, H)
        whh2_t = w_hh2.T                                             # (H, 3H)
        fc_bot = fc_w[:, H:].T                                       # (H, human)
        # fuse layer-2 input projection with fc1 top half: one matmul per step
        w1out = jnp.concatenate([w_ih2.T, fc_top], axis=1)           # (H, 3H+human)
    else:
        # placeholders (unused; static `if num_layers > 1` skips them in-kernel)
        whh2_t = jnp.zeros((H, 3 * H), f32)
        b2 = jnp.zeros((1, 3 * H), f32)
        bhh2_n = jnp.zeros((1, H), f32)
        fc_bot = jnp.zeros((H, human_size), f32)
        w1out = fc_top                                               # (H, human)

    args = (gi_enc, dec_act_gi, prev0,
            w_pose_t, whh1_t, bhh1_n,
            w1out, whh2_t, b2, bhh2_n,
            fc_bot, fc_b)

    vmem = pl.BlockSpec(memory_space=pltpu.MemorySpace.VMEM)
    kernel = functools.partial(
        _seq2seq_kernel,
        num_layers=num_layers, hidden=H, human_size=human_size,
        enc_steps=enc_steps, dec_steps=dec_steps)

    out_flat = pl.pallas_call(
        kernel,
        out_shape=jax.ShapeDtypeStruct((B, dec_steps * human_size), jnp.float32),
        in_specs=[vmem] * len(args),
        out_specs=vmem,
    )(*args)

    # lane-dense slab -> (B, T, human)  (already batch-major; no transpose needed)
    return out_flat.reshape(B, dec_steps, human_size)

    # TODO(synk): for large real workloads, pad batch B to a multiple of 8
    # (ideally >=128) and add a "parallel" grid axis over batch tiles so
    # megacore (v7x) can split the recurrence across TensorCores.


# ---------------------------------------------------------------------------
# Pure-JAX reference (for correctness check)
# ---------------------------------------------------------------------------
def _gru_ref(x, h, w_ih, w_hh, b_ih, b_hh, hidden):
    gi = x @ w_ih.T + b_ih
    gh = h @ w_hh.T + b_hh
    r = jax.nn.sigmoid(gi[:, :hidden] + gh[:, :hidden])
    z = jax.nn.sigmoid(gi[:, hidden:2 * hidden] + gh[:, hidden:2 * hidden])
    n = jnp.tanh(gi[:, 2 * hidden:] + r * gh[:, 2 * hidden:])
    return (1.0 - z) * n + z * h


def seq2seq_ref(encoder_inputs, decoder_inputs, params, *,
                num_layers, rnn_size, human_size):
    B = encoder_inputs.shape[0]
    h1 = jnp.zeros((B, rnn_size), jnp.float32)
    h2 = jnp.zeros((B, rnn_size), jnp.float32)
    for i in range(encoder_inputs.shape[1]):
        h1 = _gru_ref(encoder_inputs[:, i], h1, params["w_ih1"], params["w_hh1"],
                      params["b_ih1"], params["b_hh1"], rnn_size)
        if num_layers > 1:
            h2 = _gru_ref(h1, h2, params["w_ih2"], params["w_hh2"],
                          params["b_ih2"], params["b_hh2"], rnn_size)
    outputs, prev = [], None
    for t in range(decoder_inputs.shape[1]):
        inp = decoder_inputs[:, t]
        if prev is not None:
            inp = jnp.concatenate([prev, inp[:, human_size:]], axis=1)
        h1 = _gru_ref(inp, h1, params["w_ih1"], params["w_hh1"],
                      params["b_ih1"], params["b_hh1"], rnn_size)
        if num_layers > 1:
            h2 = _gru_ref(h1, h2, params["w_ih2"], params["w_hh2"],
                          params["b_ih2"], params["b_hh2"], rnn_size)
            state_out = jnp.concatenate([h1, h2], axis=1)
        else:
            state_out = h1
        out = inp[:, :human_size] + state_out @ params["fc_w"].T + params["fc_b"]
        outputs.append(out)
        prev = out
    return jnp.stack(outputs, axis=1)


# ---------------------------------------------------------------------------
# Main
# ---------------------------------------------------------------------------
if __name__ == "__main__":
    # small config consistent with the module's __init__
    HUMAN_SIZE = 16
    NUM_ACTIONS = 4            # one_hot=True, num_traj=0
    INPUT_SIZE = HUMAN_SIZE + NUM_ACTIONS
    RNN_SIZE = 32
    NUM_LAYERS = 2
    SOURCE_SEQ_LEN = 8         # encoder runs source_seq_len - 1 = 7 steps
    TARGET_SEQ_LEN = 8
    BATCH = 4

    key = jax.random.PRNGKey(0)
    ks = jax.random.split(key, 14)
    s1 = 1.0 / jnp.sqrt(RNN_SIZE)
    s_fc = 1.0 / jnp.sqrt(RNN_SIZE * NUM_LAYERS)

    def u(k, shape, s):
        return jax.random.uniform(k, shape, jnp.float32, -s, s)

    params = {
        # GRUCell(input_size, rnn_size)
        "w_ih1": u(ks[0], (3 * RNN_SIZE, INPUT_SIZE), s1),
        "w_hh1": u(ks[1], (3 * RNN_SIZE, RNN_SIZE), s1),
        "b_ih1": u(ks[2], (3 * RNN_SIZE,), s1),
        "b_hh1": u(ks[3], (3 * RNN_SIZE,), s1),
        # GRUCell(rnn_size, rnn_size)
        "w_ih2": u(ks[4], (3 * RNN_SIZE, RNN_SIZE), s1),
        "w_hh2": u(ks[5], (3 * RNN_SIZE, RNN_SIZE), s1),
        "b_ih2": u(ks[6], (3 * RNN_SIZE,), s1),
        "b_hh2": u(ks[7], (3 * RNN_SIZE,), s1),
        # fc1: Linear(rnn_size * num_layers, HUMAN_SIZE)
        "fc_w": u(ks[8], (HUMAN_SIZE, RNN_SIZE * NUM_LAYERS), s_fc),
        "fc_b": u(ks[9], (HUMAN_SIZE,), s_fc),
    }

    encoder_inputs = jax.random.normal(
        ks[10], (BATCH, SOURCE_SEQ_LEN - 1, INPUT_SIZE), jnp.float32)
    decoder_inputs = jax.random.normal(
        ks[11], (BATCH, TARGET_SEQ_LEN, INPUT_SIZE), jnp.float32)

    out = seq2seq_forward(encoder_inputs, decoder_inputs, params,
                          num_layers=NUM_LAYERS, rnn_size=RNN_SIZE,
                          human_size=HUMAN_SIZE)
    out = jax.block_until_ready(out)

    ref = seq2seq_ref(encoder_inputs, decoder_inputs, params,
                      num_layers=NUM_LAYERS, rnn_size=RNN_SIZE,
                      human_size=HUMAN_SIZE)

    assert out.shape == (BATCH, TARGET_SEQ_LEN, HUMAN_SIZE)
    assert jnp.allclose(out, ref, rtol=1e-4, atol=1e-4), "mismatch vs reference"

    print("KERNEL_OK")
</pallas_src>

<mosaic_0001>
module attributes {stable_mosaic.version = 11 : i64} {
  func.func @_seq2seq_kernel(%arg0: memref<7x4x96xf32, #tpu.memory_space<vmem>>, %arg1: memref<8x4x96xf32, #tpu.memory_space<vmem>>, %arg2: memref<4x16xf32, #tpu.memory_space<vmem>>, %arg3: memref<16x96xf32, #tpu.memory_space<vmem>>, %arg4: memref<32x96xf32, #tpu.memory_space<vmem>>, %arg5: memref<1x32xf32, #tpu.memory_space<vmem>>, %arg6: memref<32x112xf32, #tpu.memory_space<vmem>>, %arg7: memref<32x96xf32, #tpu.memory_space<vmem>>, %arg8: memref<1x96xf32, #tpu.memory_space<vmem>>, %arg9: memref<1x32xf32, #tpu.memory_space<vmem>>, %arg10: memref<32x16xf32, #tpu.memory_space<vmem>>, %arg11: memref<1x16xf32, #tpu.memory_space<vmem>>, %arg12: memref<4x128xf32, #tpu.memory_space<vmem>>) attributes {dimension_semantics = [], scalar_prefetch = 0 : i64, scratch_operands = 0 : i64, tpu.core_type = #tpu.core_type<tc>} {
    %c0 = arith.constant 0 : index
    %c0_0 = arith.constant 0 : index
    %0 = vector.load %arg3[%c0, %c0_0] : memref<16x96xf32, #tpu.memory_space<vmem>>, vector<16x96xf32>
    %c0_1 = arith.constant 0 : index
    %c0_2 = arith.constant 0 : index
    %1 = vector.load %arg4[%c0_1, %c0_2] : memref<32x96xf32, #tpu.memory_space<vmem>>, vector<32x96xf32>
    %c0_3 = arith.constant 0 : index
    %c0_4 = arith.constant 0 : index
    %2 = vector.load %arg5[%c0_3, %c0_4] : memref<1x32xf32, #tpu.memory_space<vmem>>, vector<1x32xf32>
    %c0_5 = arith.constant 0 : index
    %c0_6 = arith.constant 0 : index
    %3 = vector.load %arg6[%c0_5, %c0_6] : memref<32x112xf32, #tpu.memory_space<vmem>>, vector<32x112xf32>
    %c0_7 = arith.constant 0 : index
    %c0_8 = arith.constant 0 : index
    %4 = vector.load %arg11[%c0_7, %c0_8] : memref<1x16xf32, #tpu.memory_space<vmem>>, vector<1x16xf32>
    %c0_9 = arith.constant 0 : index
    %c0_10 = arith.constant 0 : index
    %5 = vector.load %arg7[%c0_9, %c0_10] : memref<32x96xf32, #tpu.memory_space<vmem>>, vector<32x96xf32>
    %c0_11 = arith.constant 0 : index
    %c0_12 = arith.constant 0 : index
    %6 = vector.load %arg8[%c0_11, %c0_12] : memref<1x96xf32, #tpu.memory_space<vmem>>, vector<1x96xf32>
    %c0_13 = arith.constant 0 : index
    %c0_14 = arith.constant 0 : index
    %7 = vector.load %arg9[%c0_13, %c0_14] : memref<1x32xf32, #tpu.memory_space<vmem>>, vector<1x32xf32>
    %c0_15 = arith.constant 0 : index
    %c0_16 = arith.constant 0 : index
    %8 = vector.load %arg10[%c0_15, %c0_16] : memref<32x16xf32, #tpu.memory_space<vmem>>, vector<32x16xf32>
    %cst = arith.constant 0.000000e+00 : f32
    %9 = vector.broadcast %cst : f32 to vector<4x32xf32>
    %cst_17 = arith.constant 0.000000e+00 : f32
    %10 = vector.broadcast %cst_17 : f32 to vector<4x32xf32>
    %c0_18 = arith.constant 0 : index
    %c0_19 = arith.constant 0 : index
    %c0_20 = arith.constant 0 : index
    %11 = vector.load %arg0[%c0_18, %c0_19, %c0_20] : memref<7x4x96xf32, #tpu.memory_space<vmem>>, vector<1x4x96xf32>
    %12 = vector.shape_cast %11 : vector<1x4x96xf32> to vector<4x96xf32>
    %cst_21 = arith.constant dense<0.000000e+00> : vector<4x96xf32>
    %13 = tpu.matmul %9, %1, %cst_21 {dimension_numbers = #tpu.dot_dimension_numbers<[1], [0], [0], [1], [0, 0, 1, 1], [], []>} : vector<4x32xf32>, vector<32x96xf32>, vector<4x96xf32> -> vector<4x96xf32>
    %14 = vector.extract_strided_slice %12 {offsets = [0, 0], sizes = [4, 32], strides = [1, 1]} : vector<4x96xf32> to vector<4x32xf32>
    %15 = vector.extract_strided_slice %13 {offsets = [0, 0], sizes = [4, 32], strides = [1, 1]} : vector<4x96xf32> to vector<4x32xf32>
    %16 = arith.addf %14, %15 : vector<4x32xf32>
    %17 = arith.negf %16 : vector<4x32xf32>
    %18 = math.exp %17 : vector<4x32xf32>
    %cst_22 = arith.constant 1.000000e+00 : f32
    %19 = vector.broadcast %cst_22 : f32 to vector<4x32xf32>
    %20 = arith.addf %19, %18 : vector<4x32xf32>
    %21 = arith.divf %19, %20 : vector<4x32xf32>
    %22 = vector.extract_strided_slice %12 {offsets = [0, 32], sizes = [4, 32], strides = [1, 1]} : vector<4x96xf32> to vector<4x32xf32>
    %23 = vector.extract_strided_slice %13 {offsets = [0, 32], sizes = [4, 32], strides = [1, 1]} : vector<4x96xf32> to vector<4x32xf32>
    %24 = arith.addf %22, %23 : vector<4x32xf32>
    %25 = arith.negf %24 : vector<4x32xf32>
    %26 = math.exp %25 : vector<4x32xf32>
    %cst_23 = arith.constant 1.000000e+00 : f32
    %27 = vector.broadcast %cst_23 : f32 to vector<4x32xf32>
    %28 = arith.addf %27, %26 : vector<4x32xf32>
    %29 = arith.divf %27, %28 : vector<4x32xf32>
    %30 = vector.extract_strided_slice %12 {offsets = [0, 64], sizes = [4, 32], strides = [1, 1]} : vector<4x96xf32> to vector<4x32xf32>
    %31 = vector.extract_strided_slice %13 {offsets = [0, 64], sizes = [4, 32], strides = [1, 1]} : vector<4x96xf32> to vector<4x32xf32>
    %32 = vector.broadcast %2 : vector<1x32xf32> to vector<4x32xf32>
    %33 = arith.addf %31, %32 : vector<4x32xf32>
    %34 = arith.mulf %21, %33 : vector<4x32xf32>
    %35 = arith.addf %30, %34 : vector<4x32xf32>
    %36 = math.tanh %35 : vector<4x32xf32>
    %cst_24 = arith.constant 1.000000e+00 : f32
    %37 = vector.broadcast %cst_24 : f32 to vector<4x32xf32>
    %38 = arith.subf %37, %29 : vector<4x32xf32>
    %39 = arith.mulf %38, %36 : vector<4x32xf32>
    %40 = arith.mulf %29, %9 : vector<4x32xf32>
    %41 = arith.addf %39, %40 : vector<4x32xf32>
    %cst_25 = arith.constant dense<0.000000e+00> : vector<4x112xf32>
    %42 = tpu.matmul %41, %3, %cst_25 {dimension_numbers = #tpu.dot_dimension_numbers<[1], [0], [0], [1], [0, 0, 1, 1], [], []>} : vector<4x32xf32>, vector<32x112xf32>, vector<4x112xf32> -> vector<4x112xf32>
    %43 = vector.extract_strided_slice %42 {offsets = [0, 0], sizes = [4, 96], strides = [1, 1]} : vector<4x112xf32> to vector<4x96xf32>
    %44 = vector.broadcast %6 : vector<1x96xf32> to vector<4x96xf32>
    %45 = arith.addf %43, %44 : vector<4x96xf32>
    %cst_26 = arith.constant dense<0.000000e+00> : vector<4x96xf32>
    %46 = tpu.matmul %10, %5, %cst_26 {dimension_numbers = #tpu.dot_dimension_numbers<[1], [0], [0], [1], [0, 0, 1, 1], [], []>} : vector<4x32xf32>, vector<32x96xf32>, vector<4x96xf32> -> vector<4x96xf32>
    %47 = vector.extract_strided_slice %45 {offsets = [0, 0], sizes = [4, 32], strides = [1, 1]} : vector<4x96xf32> to vector<4x32xf32>
    %48 = vector.extract_strided_slice %46 {offsets = [0, 0], sizes = [4, 32], strides = [1, 1]} : vector<4x96xf32> to vector<4x32xf32>
    %49 = arith.addf %47, %48 : vector<4x32xf32>
    %50 = arith.negf %49 : vector<4x32xf32>
    %51 = math.exp %50 : vector<4x32xf32>
    %cst_27 = arith.constant 1.000000e+00 : f32
    %52 = vector.broadcast %cst_27 : f32 to vector<4x32xf32>
    %53 = arith.addf %52, %51 : vector<4x32xf32>
    %54 = arith.divf %52, %53 : vector<4x32xf32>
    %55 = vector.extract_strided_slice %45 {offsets = [0, 32], sizes = [4, 32], strides = [1, 1]} : vector<4x96xf32> to vector<4x32xf32>
    %56 = vector.extract_strided_slice %46 {offsets = [0, 32], sizes = [4, 32], strides = [1, 1]} : vector<4x96xf32> to vector<4x32xf32>
    %57 = arith.addf %55, %56 : vector<4x32xf32>
    %58 = arith.negf %57 : vector<4x32xf32>
    %59 = math.exp %58 : vector<4x32xf32>
    %cst_28 = arith.constant 1.000000e+00 : f32
    %60 = vector.broadcast %cst_28 : f32 to vector<4x32xf32>
    %61 = arith.addf %60, %59 : vector<4x32xf32>
    %62 = arith.divf %60, %61 : vector<4x32xf32>
    %63 = vector.extract_strided_slice %45 {offsets = [0, 64], sizes = [4, 32], strides = [1, 1]} : vector<4x96xf32> to vector<4x32xf32>
    %64 = vector.extract_strided_slice %46 {offsets = [0, 64], sizes = [4, 32], strides = [1, 1]} : vector<4x96xf32> to vector<4x32xf32>
    %65 = vector.broadcast %7 : vector<1x32xf32> to vector<4x32xf32>
    %66 = arith.addf %64, %65 : vector<4x32xf32>
    %67 = arith.mulf %54, %66 : vector<4x32xf32>
    %68 = arith.addf %63, %67 : vector<4x32xf32>
    %69 = math.tanh %68 : vector<4x32xf32>
    %cst_29 = arith.constant 1.000000e+00 : f32
    %70 = vector.broadcast %cst_29 : f32 to vector<4x32xf32>
    %71 = arith.subf %70, %62 : vector<4x32xf32>
    %72 = arith.mulf %71, %69 : vector<4x32xf32>
    %73 = arith.mulf %62, %10 : vector<4x32xf32>
    %74 = arith.addf %72, %73 : vector<4x32xf32>
    %c1 = arith.constant 1 : index
    %c0_30 = arith.constant 0 : index
    %c0_31 = arith.constant 0 : index
    %75 = vector.load %arg0[%c1, %c0_30, %c0_31] : memref<7x4x96xf32, #tpu.memory_space<vmem>>, vector<1x4x96xf32>
    %76 = vector.shape_cast %75 : vector<1x4x96xf32> to vector<4x96xf32>
    %cst_32 = arith.constant dense<0.000000e+00> : vector<4x96xf32>
    %77 = tpu.matmul %41, %1, %cst_32 {dimension_numbers = #tpu.dot_dimension_numbers<[1], [0], [0], [1], [0, 0, 1, 1], [], []>} : vector<4x32xf32>, vector<32x96xf32>, vector<4x96xf32> -> vector<4x96xf32>
    %78 = vector.extract_strided_slice %76 {offsets = [0, 0], sizes = [4, 32], strides = [1, 1]} : vector<4x96xf32> to vector<4x32xf32>
    %79 = vector.extract_strided_slice %77 {offsets = [0, 0], sizes = [4, 32], strides = [1, 1]} : vector<4x96xf32> to vector<4x32xf32>
    %80 = arith.addf %78, %79 : vector<4x32xf32>
    %81 = arith.negf %80 : vector<4x32xf32>
    %82 = math.exp %81 : vector<4x32xf32>
    %cst_33 = arith.constant 1.000000e+00 : f32
    %83 = vector.broadcast %cst_33 : f32 to vector<4x32xf32>
    %84 = arith.addf %83, %82 : vector<4x32xf32>
    %85 = arith.divf %83, %84 : vector<4x32xf32>
    %86 = vector.extract_strided_slice %76 {offsets = [0, 32], sizes = [4, 32], strides = [1, 1]} : vector<4x96xf32> to vector<4x32xf32>
    %87 = vector.extract_strided_slice %77 {offsets = [0, 32], sizes = [4, 32], strides = [1, 1]} : vector<4x96xf32> to vector<4x32xf32>
    %88 = arith.addf %86, %87 : vector<4x32xf32>
    %89 = arith.negf %88 : vector<4x32xf32>
    %90 = math.exp %89 : vector<4x32xf32>
    %cst_34 = arith.constant 1.000000e+00 : f32
    %91 = vector.broadcast %cst_34 : f32 to vector<4x32xf32>
    %92 = arith.addf %91, %90 : vector<4x32xf32>
    %93 = arith.divf %91, %92 : vector<4x32xf32>
    %94 = vector.extract_strided_slice %76 {offsets = [0, 64], sizes = [4, 32], strides = [1, 1]} : vector<4x96xf32> to vector<4x32xf32>
    %95 = vector.extract_strided_slice %77 {offsets = [0, 64], sizes = [4, 32], strides = [1, 1]} : vector<4x96xf32> to vector<4x32xf32>
    %96 = vector.broadcast %2 : vector<1x32xf32> to vector<4x32xf32>
    %97 = arith.addf %95, %96 : vector<4x32xf32>
    %98 = arith.mulf %85, %97 : vector<4x32xf32>
    %99 = arith.addf %94, %98 : vector<4x32xf32>
    %100 = math.tanh %99 : vector<4x32xf32>
    %cst_35 = arith.constant 1.000000e+00 : f32
    %101 = vector.broadcast %cst_35 : f32 to vector<4x32xf32>
    %102 = arith.subf %101, %93 : vector<4x32xf32>
    %103 = arith.mulf %102, %100 : vector<4x32xf32>
    %104 = arith.mulf %93, %41 : vector<4x32xf32>
    %105 = arith.addf %103, %104 : vector<4x32xf32>
    %cst_36 = arith.constant dense<0.000000e+00> : vector<4x112xf32>
    %106 = tpu.matmul %105, %3, %cst_36 {dimension_numbers = #tpu.dot_dimension_numbers<[1], [0], [0], [1], [0, 0, 1, 1], [], []>} : vector<4x32xf32>, vector<32x112xf32>, vector<4x112xf32> -> vector<4x112xf32>
    %107 = vector.extract_strided_slice %106 {offsets = [0, 0], sizes = [4, 96], strides = [1, 1]} : vector<4x112xf32> to vector<4x96xf32>
    %108 = vector.broadcast %6 : vector<1x96xf32> to vector<4x96xf32>
    %109 = arith.addf %107, %108 : vector<4x96xf32>
    %cst_37 = arith.constant dense<0.000000e+00> : vector<4x96xf32>
    %110 = tpu.matmul %74, %5, %cst_37 {dimension_numbers = #tpu.dot_dimension_numbers<[1], [0], [0], [1], [0, 0, 1, 1], [], []>} : vector<4x32xf32>, vector<32x96xf32>, vector<4x96xf32> -> vector<4x96xf32>
    %111 = vector.extract_strided_slice %109 {offsets = [0, 0], sizes = [4, 32], strides = [1, 1]} : vector<4x96xf32> to vector<4x32xf32>
    %112 = vector.extract_strided_slice %110 {offsets = [0, 0], sizes = [4, 32], strides = [1, 1]} : vector<4x96xf32> to vector<4x32xf32>
    %113 = arith.addf %111, %112 : vector<4x32xf32>
    %114 = arith.negf %113 : vector<4x32xf32>
    %115 = math.exp %114 : vector<4x32xf32>
    %cst_38 = arith.constant 1.000000e+00 : f32
    %116 = vector.broadcast %cst_38 : f32 to vector<4x32xf32>
    %117 = arith.addf %116, %115 : vector<4x32xf32>
    %118 = arith.divf %116, %117 : vector<4x32xf32>
    %119 = vector.extract_strided_slice %109 {offsets = [0, 32], sizes = [4, 32], strides = [1, 1]} : vector<4x96xf32> to vector<4x32xf32>
    %120 = vector.extract_strided_slice %110 {offsets = [0, 32], sizes = [4, 32], strides = [1, 1]} : vector<4x96xf32> to vector<4x32xf32>
    %121 = arith.addf %119, %120 : vector<4x32xf32>
    %122 = arith.negf %121 : vector<4x32xf32>
    %123 = math.exp %122 : vector<4x32xf32>
    %cst_39 = arith.constant 1.000000e+00 : f32
    %124 = vector.broadcast %cst_39 : f32 to vector<4x32xf32>
    %125 = arith.addf %124, %123 : vector<4x32xf32>
    %126 = arith.divf %124, %125 : vector<4x32xf32>
    %127 = vector.extract_strided_slice %109 {offsets = [0, 64], sizes = [4, 32], strides = [1, 1]} : vector<4x96xf32> to vector<4x32xf32>
    %128 = vector.extract_strided_slice %110 {offsets = [0, 64], sizes = [4, 32], strides = [1, 1]} : vector<4x96xf32> to vector<4x32xf32>
    %129 = vector.broadcast %7 : vector<1x32xf32> to vector<4x32xf32>
    %130 = arith.addf %128, %129 : vector<4x32xf32>
    %131 = arith.mulf %118, %130 : vector<4x32xf32>
    %132 = arith.addf %127, %131 : vector<4x32xf32>
    %133 = math.tanh %132 : vector<4x32xf32>
    %cst_40 = arith.constant 1.000000e+00 : f32
    %134 = vector.broadcast %cst_40 : f32 to vector<4x32xf32>
    %135 = arith.subf %134, %126 : vector<4x32xf32>
    %136 = arith.mulf %135, %133 : vector<4x32xf32>
    %137 = arith.mulf %126, %74 : vector<4x32xf32>
    %138 = arith.addf %136, %137 : vector<4x32xf32>
    %c2 = arith.constant 2 : index
    %c0_41 = arith.constant 0 : index
    %c0_42 = arith.constant 0 : index
    %139 = vector.load %arg0[%c2, %c0_41, %c0_42] : memref<7x4x96xf32, #tpu.memory_space<vmem>>, vector<1x4x96xf32>
    %140 = vector.shape_cast %139 : vector<1x4x96xf32> to vector<4x96xf32>
    %cst_43 = arith.constant dense<0.000000e+00> : vector<4x96xf32>
    %141 = tpu.matmul %105, %1, %cst_43 {dimension_numbers = #tpu.dot_dimension_numbers<[1], [0], [0], [1], [0, 0, 1, 1], [], []>} : vector<4x32xf32>, vector<32x96xf32>, vector<4x96xf32> -> vector<4x96xf32>
    %142 = vector.extract_strided_slice %140 {offsets = [0, 0], sizes = [4, 32], strides = [1, 1]} : vector<4x96xf32> to vector<4x32xf32>
    %143 = vector.extract_strided_slice %141 {offsets = [0, 0], sizes = [4, 32], strides = [1, 1]} : vector<4x96xf32> to vector<4x32xf32>
    %144 = arith.addf %142, %143 : vector<4x32xf32>
    %145 = arith.negf %144 : vector<4x32xf32>
    %146 = math.exp %145 : vector<4x32xf32>
    %cst_44 = arith.constant 1.000000e+00 : f32
    %147 = vector.broadcast %cst_44 : f32 to vector<4x32xf32>
    %148 = arith.addf %147, %146 : vector<4x32xf32>
    %149 = arith.divf %147, %148 : vector<4x32xf32>
    %150 = vector.extract_strided_slice %140 {offsets = [0, 32], sizes = [4, 32], strides = [1, 1]} : vector<4x96xf32> to vector<4x32xf32>
    %151 = vector.extract_strided_slice %141 {offsets = [0, 32], sizes = [4, 32], strides = [1, 1]} : vector<4x96xf32> to vector<4x32xf32>
    %152 = arith.addf %150, %151 : vector<4x32xf32>
    %153 = arith.negf %152 : vector<4x32xf32>
    %154 = math.exp %153 : vector<4x32xf32>
    %cst_45 = arith.constant 1.000000e+00 : f32
    %155 = vector.broadcast %cst_45 : f32 to vector<4x32xf32>
    %156 = arith.addf %155, %154 : vector<4x32xf32>
    %157 = arith.divf %155, %156 : vector<4x32xf32>
    %158 = vector.extract_strided_slice %140 {offsets = [0, 64], sizes = [4, 32], strides = [1, 1]} : vector<4x96xf32> to vector<4x32xf32>
    %159 = vector.extract_strided_slice %141 {offsets = [0, 64], sizes = [4, 32], strides = [1, 1]} : vector<4x96xf32> to vector<4x32xf32>
    %160 = vector.broadcast %2 : vector<1x32xf32> to vector<4x32xf32>
    %161 = arith.addf %159, %160 : vector<4x32xf32>
    %162 = arith.mulf %149, %161 : vector<4x32xf32>
    %163 = arith.addf %158, %162 : vector<4x32xf32>
    %164 = math.tanh %163 : vector<4x32xf32>
    %cst_46 = arith.constant 1.000000e+00 : f32
    %165 = vector.broadcast %cst_46 : f32 to vector<4x32xf32>
    %166 = arith.subf %165, %157 : vector<4x32xf32>
    %167 = arith.mulf %166, %164 : vector<4x32xf32>
    %168 = arith.mulf %157, %105 : vector<4x32xf32>
    %169 = arith.addf %167, %168 : vector<4x32xf32>
    %cst_47 = arith.constant dense<0.000000e+00> : vector<4x112xf32>
    %170 = tpu.matmul %169, %3, %cst_47 {dimension_numbers = #tpu.dot_dimension_numbers<[1], [0], [0], [1], [0, 0, 1, 1], [], []>} : vector<4x32xf32>, vector<32x112xf32>, vector<4x112xf32> -> vector<4x112xf32>
    %171 = vector.extract_strided_slice %170 {offsets = [0, 0], sizes = [4, 96], strides = [1, 1]} : vector<4x112xf32> to vector<4x96xf32>
    %172 = vector.broadcast %6 : vector<1x96xf32> to vector<4x96xf32>
    %173 = arith.addf %171, %172 : vector<4x96xf32>
    %cst_48 = arith.constant dense<0.000000e+00> : vector<4x96xf32>
    %174 = tpu.matmul %138, %5, %cst_48 {dimension_numbers = #tpu.dot_dimension_numbers<[1], [0], [0], [1], [0, 0, 1, 1], [], []>} : vector<4x32xf32>, vector<32x96xf32>, vector<4x96xf32> -> vector<4x96xf32>
    %175 = vector.extract_strided_slice %173 {offsets = [0, 0], sizes = [4, 32], strides = [1, 1]} : vector<4x96xf32> to vector<4x32xf32>
    %176 = vector.extract_strided_slice %174 {offsets = [0, 0], sizes = [4, 32], strides = [1, 1]} : vector<4x96xf32> to vector<4x32xf32>
    %177 = arith.addf %175, %176 : vector<4x32xf32>
    %178 = arith.negf %177 : vector<4x32xf32>
    %179 = math.exp %178 : vector<4x32xf32>
    %cst_49 = arith.constant 1.000000e+00 : f32
    %180 = vector.broadcast %cst_49 : f32 to vector<4x32xf32>
    %181 = arith.addf %180, %179 : vector<4x32xf32>
    %182 = arith.divf %180, %181 : vector<4x32xf32>
    %183 = vector.extract_strided_slice %173 {offsets = [0, 32], sizes = [4, 32], strides = [1, 1]} : vector<4x96xf32> to vector<4x32xf32>
    %184 = vector.extract_strided_slice %174 {offsets = [0, 32], sizes = [4, 32], strides = [1, 1]} : vector<4x96xf32> to vector<4x32xf32>
    %185 = arith.addf %183, %184 : vector<4x32xf32>
    %186 = arith.negf %185 : vector<4x32xf32>
    %187 = math.exp %186 : vector<4x32xf32>
    %cst_50 = arith.constant 1.000000e+00 : f32
    %188 = vector.broadcast %cst_50 : f32 to vector<4x32xf32>
    %189 = arith.addf %188, %187 : vector<4x32xf32>
    %190 = arith.divf %188, %189 : vector<4x32xf32>
    %191 = vector.extract_strided_slice %173 {offsets = [0, 64], sizes = [4, 32], strides = [1, 1]} : vector<4x96xf32> to vector<4x32xf32>
    %192 = vector.extract_strided_slice %174 {offsets = [0, 64], sizes = [4, 32], strides = [1, 1]} : vector<4x96xf32> to vector<4x32xf32>
    %193 = vector.broadcast %7 : vector<1x32xf32> to vector<4x32xf32>
    %194 = arith.addf %192, %193 : vector<4x32xf32>
    %195 = arith.mulf %182, %194 : vector<4x32xf32>
    %196 = arith.addf %191, %195 : vector<4x32xf32>
    %197 = math.tanh %196 : vector<4x32xf32>
    %cst_51 = arith.constant 1.000000e+00 : f32
    %198 = vector.broadcast %cst_51 : f32 to vector<4x32xf32>
    %199 = arith.subf %198, %190 : vector<4x32xf32>
    %200 = arith.mulf %199, %197 : vector<4x32xf32>
    %201 = arith.mulf %190, %138 : vector<4x32xf32>
    %202 = arith.addf %200, %201 : vector<4x32xf32>
    %c3 = arith.constant 3 : index
    %c0_52 = arith.constant 0 : index
    %c0_53 = arith.constant 0 : index
    %203 = vector.load %arg0[%c3, %c0_52, %c0_53] : memref<7x4x96xf32, #tpu.memory_space<vmem>>, vector<1x4x96xf32>
    %204 = vector.shape_cast %203 : vector<1x4x96xf32> to vector<4x96xf32>
    %cst_54 = arith.constant dense<0.000000e+00> : vector<4x96xf32>
    %205 = tpu.matmul %169, %1, %cst_54 {dimension_numbers = #tpu.dot_dimension_numbers<[1], [0], [0], [1], [0, 0, 1, 1], [], []>} : vector<4x32xf32>, vector<32x96xf32>, vector<4x96xf32> -> vector<4x96xf32>
    %206 = vector.extract_strided_slice %204 {offsets = [0, 0], sizes = [4, 32], strides = [1, 1]} : vector<4x96xf32> to vector<4x32xf32>
    %207 = vector.extract_strided_slice %205 {offsets = [0, 0], sizes = [4, 32], strides = [1, 1]} : vector<4x96xf32> to vector<4x32xf32>
    %208 = arith.addf %206, %207 : vector<4x32xf32>
    %209 = arith.negf %208 : vector<4x32xf32>
    %210 = math.exp %209 : vector<4x32xf32>
    %cst_55 = arith.constant 1.000000e+00 : f32
    %211 = vector.broadcast %cst_55 : f32 to vector<4x32xf32>
    %212 = arith.addf %211, %210 : vector<4x32xf32>
    %213 = arith.divf %211, %212 : vector<4x32xf32>
    %214 = vector.extract_strided_slice %204 {offsets = [0, 32], sizes = [4, 32], strides = [1, 1]} : vector<4x96xf32> to vector<4x32xf32>
    %215 = vector.extract_strided_slice %205 {offsets = [0, 32], sizes = [4, 32], strides = [1, 1]} : vector<4x96xf32> to vector<4x32xf32>
    %216 = arith.addf %214, %215 : vector<4x32xf32>
    %217 = arith.negf %216 : vector<4x32xf32>
    %218 = math.exp %217 : vector<4x32xf32>
    %cst_56 = arith.constant 1.000000e+00 : f32
    %219 = vector.broadcast %cst_56 : f32 to vector<4x32xf32>
    %220 = arith.addf %219, %218 : vector<4x32xf32>
    %221 = arith.divf %219, %220 : vector<4x32xf32>
    %222 = vector.extract_strided_slice %204 {offsets = [0, 64], sizes = [4, 32], strides = [1, 1]} : vector<4x96xf32> to vector<4x32xf32>
    %223 = vector.extract_strided_slice %205 {offsets = [0, 64], sizes = [4, 32], strides = [1, 1]} : vector<4x96xf32> to vector<4x32xf32>
    %224 = vector.broadcast %2 : vector<1x32xf32> to vector<4x32xf32>
    %225 = arith.addf %223, %224 : vector<4x32xf32>
    %226 = arith.mulf %213, %225 : vector<4x32xf32>
    %227 = arith.addf %222, %226 : vector<4x32xf32>
    %228 = math.tanh %227 : vector<4x32xf32>
    %cst_57 = arith.constant 1.000000e+00 : f32
    %229 = vector.broadcast %cst_57 : f32 to vector<4x32xf32>
    %230 = arith.subf %229, %221 : vector<4x32xf32>
    %231 = arith.mulf %230, %228 : vector<4x32xf32>
    %232 = arith.mulf %221, %169 : vector<4x32xf32>
    %233 = arith.addf %231, %232 : vector<4x32xf32>
    %cst_58 = arith.constant dense<0.000000e+00> : vector<4x112xf32>
    %234 = tpu.matmul %233, %3, %cst_58 {dimension_numbers = #tpu.dot_dimension_numbers<[1], [0], [0], [1], [0, 0, 1, 1], [], []>} : vector<4x32xf32>, vector<32x112xf32>, vector<4x112xf32> -> vector<4x112xf32>
    %235 = vector.extract_strided_slice %234 {offsets = [0, 0], sizes = [4, 96], strides = [1, 1]} : vector<4x112xf32> to vector<4x96xf32>
    %236 = vector.broadcast %6 : vector<1x96xf32> to vector<4x96xf32>
    %237 = arith.addf %235, %236 : vector<4x96xf32>
    %cst_59 = arith.constant dense<0.000000e+00> : vector<4x96xf32>
    %238 = tpu.matmul %202, %5, %cst_59 {dimension_numbers = #tpu.dot_dimension_numbers<[1], [0], [0], [1], [0, 0, 1, 1], [], []>} : vector<4x32xf32>, vector<32x96xf32>, vector<4x96xf32> -> vector<4x96xf32>
    %239 = vector.extract_strided_slice %237 {offsets = [0, 0], sizes = [4, 32], strides = [1, 1]} : vector<4x96xf32> to vector<4x32xf32>
    %240 = vector.extract_strided_slice %238 {offsets = [0, 0], sizes = [4, 32], strides = [1, 1]} : vector<4x96xf32> to vector<4x32xf32>
    %241 = arith.addf %239, %240 : vector<4x32xf32>
    %242 = arith.negf %241 : vector<4x32xf32>
    %243 = math.exp %242 : vector<4x32xf32>
    %cst_60 = arith.constant 1.000000e+00 : f32
    %244 = vector.broadcast %cst_60 : f32 to vector<4x32xf32>
    %245 = arith.addf %244, %243 : vector<4x32xf32>
    %246 = arith.divf %244, %245 : vector<4x32xf32>
    %247 = vector.extract_strided_slice %237 {offsets = [0, 32], sizes = [4, 32], strides = [1, 1]} : vector<4x96xf32> to vector<4x32xf32>
    %248 = vector.extract_strided_slice %238 {offsets = [0, 32], sizes = [4, 32], strides = [1, 1]} : vector<4x96xf32> to vector<4x32xf32>
    %249 = arith.addf %247, %248 : vector<4x32xf32>
    %250 = arith.negf %249 : vector<4x32xf32>
    %251 = math.exp %250 : vector<4x32xf32>
    %cst_61 = arith.constant 1.000000e+00 : f32
    %252 = vector.broadcast %cst_61 : f32 to vector<4x32xf32>
    %253 = arith.addf %252, %251 : vector<4x32xf32>
    %254 = arith.divf %252, %253 : vector<4x32xf32>
    %255 = vector.extract_strided_slice %237 {offsets = [0, 64], sizes = [4, 32], strides = [1, 1]} : vector<4x96xf32> to vector<4x32xf32>
    %256 = vector.extract_strided_slice %238 {offsets = [0, 64], sizes = [4, 32], strides = [1, 1]} : vector<4x96xf32> to vector<4x32xf32>
    %257 = vector.broadcast %7 : vector<1x32xf32> to vector<4x32xf32>
    %258 = arith.addf %256, %257 : vector<4x32xf32>
    %259 = arith.mulf %246, %258 : vector<4x32xf32>
    %260 = arith.addf %255, %259 : vector<4x32xf32>
    %261 = math.tanh %260 : vector<4x32xf32>
    %cst_62 = arith.constant 1.000000e+00 : f32
    %262 = vector.broadcast %cst_62 : f32 to vector<4x32xf32>
    %263 = arith.subf %262, %254 : vector<4x32xf32>
    %264 = arith.mulf %263, %261 : vector<4x32xf32>
    %265 = arith.mulf %254, %202 : vector<4x32xf32>
    %266 = arith.addf %264, %265 : vector<4x32xf32>
    %c4 = arith.constant 4 : index
    %c0_63 = arith.constant 0 : index
    %c0_64 = arith.constant 0 : index
    %267 = vector.load %arg0[%c4, %c0_63, %c0_64] : memref<7x4x96xf32, #tpu.memory_space<vmem>>, vector<1x4x96xf32>
    %268 = vector.shape_cast %267 : vector<1x4x96xf32> to vector<4x96xf32>
    %cst_65 = arith.constant dense<0.000000e+00> : vector<4x96xf32>
    %269 = tpu.matmul %233, %1, %cst_65 {dimension_numbers = #tpu.dot_dimension_numbers<[1], [0], [0], [1], [0, 0, 1, 1], [], []>} : vector<4x32xf32>, vector<32x96xf32>, vector<4x96xf32> -> vector<4x96xf32>
    %270 = vector.extract_strided_slice %268 {offsets = [0, 0], sizes = [4, 32], strides = [1, 1]} : vector<4x96xf32> to vector<4x32xf32>
    %271 = vector.extract_strided_slice %269 {offsets = [0, 0], sizes = [4, 32], strides = [1, 1]} : vector<4x96xf32> to vector<4x32xf32>
    %272 = arith.addf %270, %271 : vector<4x32xf32>
    %273 = arith.negf %272 : vector<4x32xf32>
    %274 = math.exp %273 : vector<4x32xf32>
    %cst_66 = arith.constant 1.000000e+00 : f32
    %275 = vector.broadcast %cst_66 : f32 to vector<4x32xf32>
    %276 = arith.addf %275, %274 : vector<4x32xf32>
    %277 = arith.divf %275, %276 : vector<4x32xf32>
    %278 = vector.extract_strided_slice %268 {offsets = [0, 32], sizes = [4, 32], strides = [1, 1]} : vector<4x96xf32> to vector<4x32xf32>
    %279 = vector.extract_strided_slice %269 {offsets = [0, 32], sizes = [4, 32], strides = [1, 1]} : vector<4x96xf32> to vector<4x32xf32>
    %280 = arith.addf %278, %279 : vector<4x32xf32>
    %281 = arith.negf %280 : vector<4x32xf32>
    %282 = math.exp %281 : vector<4x32xf32>
    %cst_67 = arith.constant 1.000000e+00 : f32
    %283 = vector.broadcast %cst_67 : f32 to vector<4x32xf32>
    %284 = arith.addf %283, %282 : vector<4x32xf32>
    %285 = arith.divf %283, %284 : vector<4x32xf32>
    %286 = vector.extract_strided_slice %268 {offsets = [0, 64], sizes = [4, 32], strides = [1, 1]} : vector<4x96xf32> to vector<4x32xf32>
    %287 = vector.extract_strided_slice %269 {offsets = [0, 64], sizes = [4, 32], strides = [1, 1]} : vector<4x96xf32> to vector<4x32xf32>
    %288 = vector.broadcast %2 : vector<1x32xf32> to vector<4x32xf32>
    %289 = arith.addf %287, %288 : vector<4x32xf32>
    %290 = arith.mulf %277, %289 : vector<4x32xf32>
    %291 = arith.addf %286, %290 : vector<4x32xf32>
    %292 = math.tanh %291 : vector<4x32xf32>
    %cst_68 = arith.constant 1.000000e+00 : f32
    %293 = vector.broadcast %cst_68 : f32 to vector<4x32xf32>
    %294 = arith.subf %293, %285 : vector<4x32xf32>
    %295 = arith.mulf %294, %292 : vector<4x32xf32>
    %296 = arith.mulf %285, %233 : vector<4x32xf32>
    %297 = arith.addf %295, %296 : vector<4x32xf32>
    %cst_69 = arith.constant dense<0.000000e+00> : vector<4x112xf32>
    %298 = tpu.matmul %297, %3, %cst_69 {dimension_numbers = #tpu.dot_dimension_numbers<[1], [0], [0], [1], [0, 0, 1, 1], [], []>} : vector<4x32xf32>, vector<32x112xf32>, vector<4x112xf32> -> vector<4x112xf32>
    %299 = vector.extract_strided_slice %298 {offsets = [0, 0], sizes = [4, 96], strides = [1, 1]} : vector<4x112xf32> to vector<4x96xf32>
    %300 = vector.broadcast %6 : vector<1x96xf32> to vector<4x96xf32>
    %301 = arith.addf %299, %300 : vector<4x96xf32>
    %cst_70 = arith.constant dense<0.000000e+00> : vector<4x96xf32>
    %302 = tpu.matmul %266, %5, %cst_70 {dimension_numbers = #tpu.dot_dimension_numbers<[1], [0], [0], [1], [0, 0, 1, 1], [], []>} : vector<4x32xf32>, vector<32x96xf32>, vector<4x96xf32> -> vector<4x96xf32>
    %303 = vector.extract_strided_slice %301 {offsets = [0, 0], sizes = [4, 32], strides = [1, 1]} : vector<4x96xf32> to vector<4x32xf32>
    %304 = vector.extract_strided_slice %302 {offsets = [0, 0], sizes = [4, 32], strides = [1, 1]} : vector<4x96xf32> to vector<4x32xf32>
    %305 = arith.addf %303, %304 : vector<4x32xf32>
    %306 = arith.negf %305 : vector<4x32xf32>
    %307 = math.exp %306 : vector<4x32xf32>
    %cst_71 = arith.constant 1.000000e+00 : f32
    %308 = vector.broadcast %cst_71 : f32 to vector<4x32xf32>
    %309 = arith.addf %308, %307 : vector<4x32xf32>
    %310 = arith.divf %308, %309 : vector<4x32xf32>
    %311 = vector.extract_strided_slice %301 {offsets = [0, 32], sizes = [4, 32], strides = [1, 1]} : vector<4x96xf32> to vector<4x32xf32>
    %312 = vector.extract_strided_slice %302 {offsets = [0, 32], sizes = [4, 32], strides = [1, 1]} : vector<4x96xf32> to vector<4x32xf32>
    %313 = arith.addf %311, %312 : vector<4x32xf32>
    %314 = arith.negf %313 : vector<4x32xf32>
    %315 = math.exp %314 : vector<4x32xf32>
    %cst_72 = arith.constant 1.000000e+00 : f32
    %316 = vector.broadcast %cst_72 : f32 to vector<4x32xf32>
    %317 = arith.addf %316, %315 : vector<4x32xf32>
    %318 = arith.divf %316, %317 : vector<4x32xf32>
    %319 = vector.extract_strided_slice %301 {offsets = [0, 64], sizes = [4, 32], strides = [1, 1]} : vector<4x96xf32> to vector<4x32xf32>
    %320 = vector.extract_strided_slice %302 {offsets = [0, 64], sizes = [4, 32], strides = [1, 1]} : vector<4x96xf32> to vector<4x32xf32>
    %321 = vector.broadcast %7 : vector<1x32xf32> to vector<4x32xf32>
    %322 = arith.addf %320, %321 : vector<4x32xf32>
    %323 = arith.mulf %310, %322 : vector<4x32xf32>
    %324 = arith.addf %319, %323 : vector<4x32xf32>
    %325 = math.tanh %324 : vector<4x32xf32>
    %cst_73 = arith.constant 1.000000e+00 : f32
    %326 = vector.broadcast %cst_73 : f32 to vector<4x32xf32>
    %327 = arith.subf %326, %318 : vector<4x32xf32>
    %328 = arith.mulf %327, %325 : vector<4x32xf32>
    %329 = arith.mulf %318, %266 : vector<4x32xf32>
    %330 = arith.addf %328, %329 : vector<4x32xf32>
    %c5 = arith.constant 5 : index
    %c0_74 = arith.constant 0 : index
    %c0_75 = arith.constant 0 : index
    %331 = vector.load %arg0[%c5, %c0_74, %c0_75] : memref<7x4x96xf32, #tpu.memory_space<vmem>>, vector<1x4x96xf32>
    %332 = vector.shape_cast %331 : vector<1x4x96xf32> to vector<4x96xf32>
    %cst_76 = arith.constant dense<0.000000e+00> : vector<4x96xf32>
    %333 = tpu.matmul %297, %1, %cst_76 {dimension_numbers = #tpu.dot_dimension_numbers<[1], [0], [0], [1], [0, 0, 1, 1], [], []>} : vector<4x32xf32>, vector<32x96xf32>, vector<4x96xf32> -> vector<4x96xf32>
    %334 = vector.extract_strided_slice %332 {offsets = [0, 0], sizes = [4, 32], strides = [1, 1]} : vector<4x96xf32> to vector<4x32xf32>
    %335 = vector.extract_strided_slice %333 {offsets = [0, 0], sizes = [4, 32], strides = [1, 1]} : vector<4x96xf32> to vector<4x32xf32>
    %336 = arith.addf %334, %335 : vector<4x32xf32>
    %337 = arith.negf %336 : vector<4x32xf32>
    %338 = math.exp %337 : vector<4x32xf32>
    %cst_77 = arith.constant 1.000000e+00 : f32
    %339 = vector.broadcast %cst_77 : f32 to vector<4x32xf32>
    %340 = arith.addf %339, %338 : vector<4x32xf32>
    %341 = arith.divf %339, %340 : vector<4x32xf32>
    %342 = vector.extract_strided_slice %332 {offsets = [0, 32], sizes = [4, 32], strides = [1, 1]} : vector<4x96xf32> to vector<4x32xf32>
    %343 = vector.extract_strided_slice %333 {offsets = [0, 32], sizes = [4, 32], strides = [1, 1]} : vector<4x96xf32> to vector<4x32xf32>
    %344 = arith.addf %342, %343 : vector<4x32xf32>
    %345 = arith.negf %344 : vector<4x32xf32>
    %346 = math.exp %345 : vector<4x32xf32>
    %cst_78 = arith.constant 1.000000e+00 : f32
    %347 = vector.broadcast %cst_78 : f32 to vector<4x32xf32>
    %348 = arith.addf %347, %346 : vector<4x32xf32>
    %349 = arith.divf %347, %348 : vector<4x32xf32>
    %350 = vector.extract_strided_slice %332 {offsets = [0, 64], sizes = [4, 32], strides = [1, 1]} : vector<4x96xf32> to vector<4x32xf32>
    %351 = vector.extract_strided_slice %333 {offsets = [0, 64], sizes = [4, 32], strides = [1, 1]} : vector<4x96xf32> to vector<4x32xf32>
    %352 = vector.broadcast %2 : vector<1x32xf32> to vector<4x32xf32>
    %353 = arith.addf %351, %352 : vector<4x32xf32>
    %354 = arith.mulf %341, %353 : vector<4x32xf32>
    %355 = arith.addf %350, %354 : vector<4x32xf32>
    %356 = math.tanh %355 : vector<4x32xf32>
    %cst_79 = arith.constant 1.000000e+00 : f32
    %357 = vector.broadcast %cst_79 : f32 to vector<4x32xf32>
    %358 = arith.subf %357, %349 : vector<4x32xf32>
    %359 = arith.mulf %358, %356 : vector<4x32xf32>
    %360 = arith.mulf %349, %297 : vector<4x32xf32>
    %361 = arith.addf %359, %360 : vector<4x32xf32>
    %cst_80 = arith.constant dense<0.000000e+00> : vector<4x112xf32>
    %362 = tpu.matmul %361, %3, %cst_80 {dimension_numbers = #tpu.dot_dimension_numbers<[1], [0], [0], [1], [0, 0, 1, 1], [], []>} : vector<4x32xf32>, vector<32x112xf32>, vector<4x112xf32> -> vector<4x112xf32>
    %363 = vector.extract_strided_slice %362 {offsets = [0, 0], sizes = [4, 96], strides = [1, 1]} : vector<4x112xf32> to vector<4x96xf32>
    %364 = vector.broadcast %6 : vector<1x96xf32> to vector<4x96xf32>
    %365 = arith.addf %363, %364 : vector<4x96xf32>
    %cst_81 = arith.constant dense<0.000000e+00> : vector<4x96xf32>
    %366 = tpu.matmul %330, %5, %cst_81 {dimension_numbers = #tpu.dot_dimension_numbers<[1], [0], [0], [1], [0, 0, 1, 1], [], []>} : vector<4x32xf32>, vector<32x96xf32>, vector<4x96xf32> -> vector<4x96xf32>
    %367 = vector.extract_strided_slice %365 {offsets = [0, 0], sizes = [4, 32], strides = [1, 1]} : vector<4x96xf32> to vector<4x32xf32>
    %368 = vector.extract_strided_slice %366 {offsets = [0, 0], sizes = [4, 32], strides = [1, 1]} : vector<4x96xf32> to vector<4x32xf32>
    %369 = arith.addf %367, %368 : vector<4x32xf32>
    %370 = arith.negf %369 : vector<4x32xf32>
    %371 = math.exp %370 : vector<4x32xf32>
    %cst_82 = arith.constant 1.000000e+00 : f32
    %372 = vector.broadcast %cst_82 : f32 to vector<4x32xf32>
    %373 = arith.addf %372, %371 : vector<4x32xf32>
    %374 = arith.divf %372, %373 : vector<4x32xf32>
    %375 = vector.extract_strided_slice %365 {offsets = [0, 32], sizes = [4, 32], strides = [1, 1]} : vector<4x96xf32> to vector<4x32xf32>
    %376 = vector.extract_strided_slice %366 {offsets = [0, 32], sizes = [4, 32], strides = [1, 1]} : vector<4x96xf32> to vector<4x32xf32>
    %377 = arith.addf %375, %376 : vector<4x32xf32>
    %378 = arith.negf %377 : vector<4x32xf32>
    %379 = math.exp %378 : vector<4x32xf32>
    %cst_83 = arith.constant 1.000000e+00 : f32
    %380 = vector.broadcast %cst_83 : f32 to vector<4x32xf32>
    %381 = arith.addf %380, %379 : vector<4x32xf32>
    %382 = arith.divf %380, %381 : vector<4x32xf32>
    %383 = vector.extract_strided_slice %365 {offsets = [0, 64], sizes = [4, 32], strides = [1, 1]} : vector<4x96xf32> to vector<4x32xf32>
    %384 = vector.extract_strided_slice %366 {offsets = [0, 64], sizes = [4, 32], strides = [1, 1]} : vector<4x96xf32> to vector<4x32xf32>
    %385 = vector.broadcast %7 : vector<1x32xf32> to vector<4x32xf32>
    %386 = arith.addf %384, %385 : vector<4x32xf32>
    %387 = arith.mulf %374, %386 : vector<4x32xf32>
    %388 = arith.addf %383, %387 : vector<4x32xf32>
    %389 = math.tanh %388 : vector<4x32xf32>
    %cst_84 = arith.constant 1.000000e+00 : f32
    %390 = vector.broadcast %cst_84 : f32 to vector<4x32xf32>
    %391 = arith.subf %390, %382 : vector<4x32xf32>
    %392 = arith.mulf %391, %389 : vector<4x32xf32>
    %393 = arith.mulf %382, %330 : vector<4x32xf32>
    %394 = arith.addf %392, %393 : vector<4x32xf32>
    %c6 = arith.constant 6 : index
    %c0_85 = arith.constant 0 : index
    %c0_86 = arith.constant 0 : index
    %395 = vector.load %arg0[%c6, %c0_85, %c0_86] : memref<7x4x96xf32, #tpu.memory_space<vmem>>, vector<1x4x96xf32>
    %396 = vector.shape_cast %395 : vector<1x4x96xf32> to vector<4x96xf32>
    %cst_87 = arith.constant dense<0.000000e+00> : vector<4x96xf32>
    %397 = tpu.matmul %361, %1, %cst_87 {dimension_numbers = #tpu.dot_dimension_numbers<[1], [0], [0], [1], [0, 0, 1, 1], [], []>} : vector<4x32xf32>, vector<32x96xf32>, vector<4x96xf32> -> vector<4x96xf32>
    %398 = vector.extract_strided_slice %396 {offsets = [0, 0], sizes = [4, 32], strides = [1, 1]} : vector<4x96xf32> to vector<4x32xf32>
    %399 = vector.extract_strided_slice %397 {offsets = [0, 0], sizes = [4, 32], strides = [1, 1]} : vector<4x96xf32> to vector<4x32xf32>
    %400 = arith.addf %398, %399 : vector<4x32xf32>
    %401 = arith.negf %400 : vector<4x32xf32>
    %402 = math.exp %401 : vector<4x32xf32>
    %cst_88 = arith.constant 1.000000e+00 : f32
    %403 = vector.broadcast %cst_88 : f32 to vector<4x32xf32>
    %404 = arith.addf %403, %402 : vector<4x32xf32>
    %405 = arith.divf %403, %404 : vector<4x32xf32>
    %406 = vector.extract_strided_slice %396 {offsets = [0, 32], sizes = [4, 32], strides = [1, 1]} : vector<4x96xf32> to vector<4x32xf32>
    %407 = vector.extract_strided_slice %397 {offsets = [0, 32], sizes = [4, 32], strides = [1, 1]} : vector<4x96xf32> to vector<4x32xf32>
    %408 = arith.addf %406, %407 : vector<4x32xf32>
    %409 = arith.negf %408 : vector<4x32xf32>
    %410 = math.exp %409 : vector<4x32xf32>
    %cst_89 = arith.constant 1.000000e+00 : f32
    %411 = vector.broadcast %cst_89 : f32 to vector<4x32xf32>
    %412 = arith.addf %411, %410 : vector<4x32xf32>
    %413 = arith.divf %411, %412 : vector<4x32xf32>
    %414 = vector.extract_strided_slice %396 {offsets = [0, 64], sizes = [4, 32], strides = [1, 1]} : vector<4x96xf32> to vector<4x32xf32>
    %415 = vector.extract_strided_slice %397 {offsets = [0, 64], sizes = [4, 32], strides = [1, 1]} : vector<4x96xf32> to vector<4x32xf32>
    %416 = vector.broadcast %2 : vector<1x32xf32> to vector<4x32xf32>
    %417 = arith.addf %415, %416 : vector<4x32xf32>
    %418 = arith.mulf %405, %417 : vector<4x32xf32>
    %419 = arith.addf %414, %418 : vector<4x32xf32>
    %420 = math.tanh %419 : vector<4x32xf32>
    %cst_90 = arith.constant 1.000000e+00 : f32
    %421 = vector.broadcast %cst_90 : f32 to vector<4x32xf32>
    %422 = arith.subf %421, %413 : vector<4x32xf32>
    %423 = arith.mulf %422, %420 : vector<4x32xf32>
    %424 = arith.mulf %413, %361 : vector<4x32xf32>
    %425 = arith.addf %423, %424 : vector<4x32xf32>
    %cst_91 = arith.constant dense<0.000000e+00> : vector<4x112xf32>
    %426 = tpu.matmul %425, %3, %cst_91 {dimension_numbers = #tpu.dot_dimension_numbers<[1], [0], [0], [1], [0, 0, 1, 1], [], []>} : vector<4x32xf32>, vector<32x112xf32>, vector<4x112xf32> -> vector<4x112xf32>
    %427 = vector.extract_strided_slice %426 {offsets = [0, 0], sizes = [4, 96], strides = [1, 1]} : vector<4x112xf32> to vector<4x96xf32>
    %428 = vector.broadcast %6 : vector<1x96xf32> to vector<4x96xf32>
    %429 = arith.addf %427, %428 : vector<4x96xf32>
    %cst_92 = arith.constant dense<0.000000e+00> : vector<4x96xf32>
    %430 = tpu.matmul %394, %5, %cst_92 {dimension_numbers = #tpu.dot_dimension_numbers<[1], [0], [0], [1], [0, 0, 1, 1], [], []>} : vector<4x32xf32>, vector<32x96xf32>, vector<4x96xf32> -> vector<4x96xf32>
    %431 = vector.extract_strided_slice %429 {offsets = [0, 0], sizes = [4, 32], strides = [1, 1]} : vector<4x96xf32> to vector<4x32xf32>
    %432 = vector.extract_strided_slice %430 {offsets = [0, 0], sizes = [4, 32], strides = [1, 1]} : vector<4x96xf32> to vector<4x32xf32>
    %433 = arith.addf %431, %432 : vector<4x32xf32>
    %434 = arith.negf %433 : vector<4x32xf32>
    %435 = math.exp %434 : vector<4x32xf32>
    %cst_93 = arith.constant 1.000000e+00 : f32
    %436 = vector.broadcast %cst_93 : f32 to vector<4x32xf32>
    %437 = arith.addf %436, %435 : vector<4x32xf32>
    %438 = arith.divf %436, %437 : vector<4x32xf32>
    %439 = vector.extract_strided_slice %429 {offsets = [0, 32], sizes = [4, 32], strides = [1, 1]} : vector<4x96xf32> to vector<4x32xf32>
    %440 = vector.extract_strided_slice %430 {offsets = [0, 32], sizes = [4, 32], strides = [1, 1]} : vector<4x96xf32> to vector<4x32xf32>
    %441 = arith.addf %439, %440 : vector<4x32xf32>
    %442 = arith.negf %441 : vector<4x32xf32>
    %443 = math.exp %442 : vector<4x32xf32>
    %cst_94 = arith.constant 1.000000e+00 : f32
    %444 = vector.broadcast %cst_94 : f32 to vector<4x32xf32>
    %445 = arith.addf %444, %443 : vector<4x32xf32>
    %446 = arith.divf %444, %445 : vector<4x32xf32>
    %447 = vector.extract_strided_slice %429 {offsets = [0, 64], sizes = [4, 32], strides = [1, 1]} : vector<4x96xf32> to vector<4x32xf32>
    %448 = vector.extract_strided_slice %430 {offsets = [0, 64], sizes = [4, 32], strides = [1, 1]} : vector<4x96xf32> to vector<4x32xf32>
    %449 = vector.broadcast %7 : vector<1x32xf32> to vector<4x32xf32>
    %450 = arith.addf %448, %449 : vector<4x32xf32>
    %451 = arith.mulf %438, %450 : vector<4x32xf32>
    %452 = arith.addf %447, %451 : vector<4x32xf32>
    %453 = math.tanh %452 : vector<4x32xf32>
    %cst_95 = arith.constant 1.000000e+00 : f32
    %454 = vector.broadcast %cst_95 : f32 to vector<4x32xf32>
    %455 = arith.subf %454, %446 : vector<4x32xf32>
    %456 = arith.mulf %455, %453 : vector<4x32xf32>
    %457 = arith.mulf %446, %394 : vector<4x32xf32>
    %458 = arith.addf %456, %457 : vector<4x32xf32>
    %c0_96 = arith.constant 0 : index
    %c0_97 = arith.constant 0 : index
    %459 = vector.load %arg2[%c0_96, %c0_97] : memref<4x16xf32, #tpu.memory_space<vmem>>, vector<4x16xf32>
    %cst_98 = arith.constant dense<0.000000e+00> : vector<4x96xf32>
    %460 = tpu.matmul %459, %0, %cst_98 {dimension_numbers = #tpu.dot_dimension_numbers<[1], [0], [0], [1], [0, 0, 1, 1], [], []>} : vector<4x16xf32>, vector<16x96xf32>, vector<4x96xf32> -> vector<4x96xf32>
    %c0_99 = arith.constant 0 : index
    %c0_100 = arith.constant 0 : index
    %c0_101 = arith.constant 0 : index
    %461 = vector.load %arg1[%c0_99, %c0_100, %c0_101] : memref<8x4x96xf32, #tpu.memory_space<vmem>>, vector<1x4x96xf32>
    %462 = vector.shape_cast %461 : vector<1x4x96xf32> to vector<4x96xf32>
    %463 = arith.addf %460, %462 : vector<4x96xf32>
    %cst_102 = arith.constant dense<0.000000e+00> : vector<4x96xf32>
    %464 = tpu.matmul %425, %1, %cst_102 {dimension_numbers = #tpu.dot_dimension_numbers<[1], [0], [0], [1], [0, 0, 1, 1], [], []>} : vector<4x32xf32>, vector<32x96xf32>, vector<4x96xf32> -> vector<4x96xf32>
    %465 = vector.extract_strided_slice %463 {offsets = [0, 0], sizes = [4, 32], strides = [1, 1]} : vector<4x96xf32> to vector<4x32xf32>
    %466 = vector.extract_strided_slice %464 {offsets = [0, 0], sizes = [4, 32], strides = [1, 1]} : vector<4x96xf32> to vector<4x32xf32>
    %467 = arith.addf %465, %466 : vector<4x32xf32>
    %468 = arith.negf %467 : vector<4x32xf32>
    %469 = math.exp %468 : vector<4x32xf32>
    %cst_103 = arith.constant 1.000000e+00 : f32
    %470 = vector.broadcast %cst_103 : f32 to vector<4x32xf32>
    %471 = arith.addf %470, %469 : vector<4x32xf32>
    %472 = arith.divf %470, %471 : vector<4x32xf32>
    %473 = vector.extract_strided_slice %463 {offsets = [0, 32], sizes = [4, 32], strides = [1, 1]} : vector<4x96xf32> to vector<4x32xf32>
    %474 = vector.extract_strided_slice %464 {offsets = [0, 32], sizes = [4, 32], strides = [1, 1]} : vector<4x96xf32> to vector<4x32xf32>
    %475 = arith.addf %473, %474 : vector<4x32xf32>
    %476 = arith.negf %475 : vector<4x32xf32>
    %477 = math.exp %476 : vector<4x32xf32>
    %cst_104 = arith.constant 1.000000e+00 : f32
    %478 = vector.broadcast %cst_104 : f32 to vector<4x32xf32>
    %479 = arith.addf %478, %477 : vector<4x32xf32>
    %480 = arith.divf %478, %479 : vector<4x32xf32>
    %481 = vector.extract_strided_slice %463 {offsets = [0, 64], sizes = [4, 32], strides = [1, 1]} : vector<4x96xf32> to vector<4x32xf32>
    %482 = vector.extract_strided_slice %464 {offsets = [0, 64], sizes = [4, 32], strides = [1, 1]} : vector<4x96xf32> to vector<4x32xf32>
    %483 = vector.broadcast %2 : vector<1x32xf32> to vector<4x32xf32>
    %484 = arith.addf %482, %483 : vector<4x32xf32>
    %485 = arith.mulf %472, %484 : vector<4x32xf32>
    %486 = arith.addf %481, %485 : vector<4x32xf32>
    %487 = math.tanh %486 : vector<4x32xf32>
    %cst_105 = arith.constant 1.000000e+00 : f32
    %488 = vector.broadcast %cst_105 : f32 to vector<4x32xf32>
    %489 = arith.subf %488, %480 : vector<4x32xf32>
    %490 = arith.mulf %489, %487 : vector<4x32xf32>
    %491 = arith.mulf %480, %425 : vector<4x32xf32>
    %492 = arith.addf %490, %491 : vector<4x32xf32>
    %cst_106 = arith.constant dense<0.000000e+00> : vector<4x112xf32>
    %493 = tpu.matmul %492, %3, %cst_106 {dimension_numbers = #tpu.dot_dimension_numbers<[1], [0], [0], [1], [0, 0, 1, 1], [], []>} : vector<4x32xf32>, vector<32x112xf32>, vector<4x112xf32> -> vector<4x112xf32>
    %494 = vector.extract_strided_slice %493 {offsets = [0, 96], sizes = [4, 16], strides = [1, 1]} : vector<4x112xf32> to vector<4x16xf32>
    %495 = vector.extract_strided_slice %493 {offsets = [0, 0], sizes = [4, 96], strides = [1, 1]} : vector<4x112xf32> to vector<4x96xf32>
    %496 = vector.broadcast %6 : vector<1x96xf32> to vector<4x96xf32>
    %497 = arith.addf %495, %496 : vector<4x96xf32>
    %cst_107 = arith.constant dense<0.000000e+00> : vector<4x96xf32>
    %498 = tpu.matmul %458, %5, %cst_107 {dimension_numbers = #tpu.dot_dimension_numbers<[1], [0], [0], [1], [0, 0, 1, 1], [], []>} : vector<4x32xf32>, vector<32x96xf32>, vector<4x96xf32> -> vector<4x96xf32>
    %499 = vector.extract_strided_slice %497 {offsets = [0, 0], sizes = [4, 32], strides = [1, 1]} : vector<4x96xf32> to vector<4x32xf32>
    %500 = vector.extract_strided_slice %498 {offsets = [0, 0], sizes = [4, 32], strides = [1, 1]} : vector<4x96xf32> to vector<4x32xf32>
    %501 = arith.addf %499, %500 : vector<4x32xf32>
    %502 = arith.negf %501 : vector<4x32xf32>
    %503 = math.exp %502 : vector<4x32xf32>
    %cst_108 = arith.constant 1.000000e+00 : f32
    %504 = vector.broadcast %cst_108 : f32 to vector<4x32xf32>
    %505 = arith.addf %504, %503 : vector<4x32xf32>
    %506 = arith.divf %504, %505 : vector<4x32xf32>
    %507 = vector.extract_strided_slice %497 {offsets = [0, 32], sizes = [4, 32], strides = [1, 1]} : vector<4x96xf32> to vector<4x32xf32>
    %508 = vector.extract_strided_slice %498 {offsets = [0, 32], sizes = [4, 32], strides = [1, 1]} : vector<4x96xf32> to vector<4x32xf32>
    %509 = arith.addf %507, %508 : vector<4x32xf32>
    %510 = arith.negf %509 : vector<4x32xf32>
    %511 = math.exp %510 : vector<4x32xf32>
    %cst_109 = arith.constant 1.000000e+00 : f32
    %512 = vector.broadcast %cst_109 : f32 to vector<4x32xf32>
    %513 = arith.addf %512, %511 : vector<4x32xf32>
    %514 = arith.divf %512, %513 : vector<4x32xf32>
    %515 = vector.extract_strided_slice %497 {offsets = [0, 64], sizes = [4, 32], strides = [1, 1]} : vector<4x96xf32> to vector<4x32xf32>
    %516 = vector.extract_strided_slice %498 {offsets = [0, 64], sizes = [4, 32], strides = [1, 1]} : vector<4x96xf32> to vector<4x32xf32>
    %517 = vector.broadcast %7 : vector<1x32xf32> to vector<4x32xf32>
    %518 = arith.addf %516, %517 : vector<4x32xf32>
    %519 = arith.mulf %506, %518 : vector<4x32xf32>
    %520 = arith.addf %515, %519 : vector<4x32xf32>
    %521 = math.tanh %520 : vector<4x32xf32>
    %cst_110 = arith.constant 1.000000e+00 : f32
    %522 = vector.broadcast %cst_110 : f32 to vector<4x32xf32>
    %523 = arith.subf %522, %514 : vector<4x32xf32>
    %524 = arith.mulf %523, %521 : vector<4x32xf32>
    %525 = arith.mulf %514, %458 : vector<4x32xf32>
    %526 = arith.addf %524, %525 : vector<4x32xf32>
    %cst_111 = arith.constant dense<0.000000e+00> : vector<4x16xf32>
    %527 = tpu.matmul %526, %8, %cst_111 {dimension_numbers = #tpu.dot_dimension_numbers<[1], [0], [0], [1], [0, 0, 1, 1], [], []>} : vector<4x32xf32>, vector<32x16xf32>, vector<4x16xf32> -> vector<4x16xf32>
    %528 = arith.addf %494, %527 : vector<4x16xf32>
    %529 = arith.addf %459, %528 : vector<4x16xf32>
    %530 = vector.broadcast %4 : vector<1x16xf32> to vector<4x16xf32>
    %531 = arith.addf %529, %530 : vector<4x16xf32>
    %cst_112 = arith.constant dense<0.000000e+00> : vector<4x96xf32>
    %532 = tpu.matmul %531, %0, %cst_112 {dimension_numbers = #tpu.dot_dimension_numbers<[1], [0], [0], [1], [0, 0, 1, 1], [], []>} : vector<4x16xf32>, vector<16x96xf32>, vector<4x96xf32> -> vector<4x96xf32>
    %c1_113 = arith.constant 1 : index
    %c0_114 = arith.constant 0 : index
    %c0_115 = arith.constant 0 : index
    %533 = vector.load %arg1[%c1_113, %c0_114, %c0_115] : memref<8x4x96xf32, #tpu.memory_space<vmem>>, vector<1x4x96xf32>
    %534 = vector.shape_cast %533 : vector<1x4x96xf32> to vector<4x96xf32>
    %535 = arith.addf %532, %534 : vector<4x96xf32>
    %cst_116 = arith.constant dense<0.000000e+00> : vector<4x96xf32>
    %536 = tpu.matmul %492, %1, %cst_116 {dimension_numbers = #tpu.dot_dimension_numbers<[1], [0], [0], [1], [0, 0, 1, 1], [], []>} : vector<4x32xf32>, vector<32x96xf32>, vector<4x96xf32> -> vector<4x96xf32>
    %537 = vector.extract_strided_slice %535 {offsets = [0, 0], sizes = [4, 32], strides = [1, 1]} : vector<4x96xf32> to vector<4x32xf32>
    %538 = vector.extract_strided_slice %536 {offsets = [0, 0], sizes = [4, 32], strides = [1, 1]} : vector<4x96xf32> to vector<4x32xf32>
    %539 = arith.addf %537, %538 : vector<4x32xf32>
    %540 = arith.negf %539 : vector<4x32xf32>
    %541 = math.exp %540 : vector<4x32xf32>
    %cst_117 = arith.constant 1.000000e+00 : f32
    %542 = vector.broadcast %cst_117 : f32 to vector<4x32xf32>
    %543 = arith.addf %542, %541 : vector<4x32xf32>
    %544 = arith.divf %542, %543 : vector<4x32xf32>
    %545 = vector.extract_strided_slice %535 {offsets = [0, 32], sizes = [4, 32], strides = [1, 1]} : vector<4x96xf32> to vector<4x32xf32>
    %546 = vector.extract_strided_slice %536 {offsets = [0, 32], sizes = [4, 32], strides = [1, 1]} : vector<4x96xf32> to vector<4x32xf32>
    %547 = arith.addf %545, %546 : vector<4x32xf32>
    %548 = arith.negf %547 : vector<4x32xf32>
    %549 = math.exp %548 : vector<4x32xf32>
    %cst_118 = arith.constant 1.000000e+00 : f32
    %550 = vector.broadcast %cst_118 : f32 to vector<4x32xf32>
    %551 = arith.addf %550, %549 : vector<4x32xf32>
    %552 = arith.divf %550, %551 : vector<4x32xf32>
    %553 = vector.extract_strided_slice %535 {offsets = [0, 64], sizes = [4, 32], strides = [1, 1]} : vector<4x96xf32> to vector<4x32xf32>
    %554 = vector.extract_strided_slice %536 {offsets = [0, 64], sizes = [4, 32], strides = [1, 1]} : vector<4x96xf32> to vector<4x32xf32>
    %555 = vector.broadcast %2 : vector<1x32xf32> to vector<4x32xf32>
    %556 = arith.addf %554, %555 : vector<4x32xf32>
    %557 = arith.mulf %544, %556 : vector<4x32xf32>
    %558 = arith.addf %553, %557 : vector<4x32xf32>
    %559 = math.tanh %558 : vector<4x32xf32>
    %cst_119 = arith.constant 1.000000e+00 : f32
    %560 = vector.broadcast %cst_119 : f32 to vector<4x32xf32>
    %561 = arith.subf %560, %552 : vector<4x32xf32>
    %562 = arith.mulf %561, %559 : vector<4x32xf32>
    %563 = arith.mulf %552, %492 : vector<4x32xf32>
    %564 = arith.addf %562, %563 : vector<4x32xf32>
    %cst_120 = arith.constant dense<0.000000e+00> : vector<4x112xf32>
    %565 = tpu.matmul %564, %3, %cst_120 {dimension_numbers = #tpu.dot_dimension_numbers<[1], [0], [0], [1], [0, 0, 1, 1], [], []>} : vector<4x32xf32>, vector<32x112xf32>, vector<4x112xf32> -> vector<4x112xf32>
    %566 = vector.extract_strided_slice %565 {offsets = [0, 96], sizes = [4, 16], strides = [1, 1]} : vector<4x112xf32> to vector<4x16xf32>
    %567 = vector.extract_strided_slice %565 {offsets = [0, 0], sizes = [4, 96], strides = [1, 1]} : vector<4x112xf32> to vector<4x96xf32>
    %568 = vector.broadcast %6 : vector<1x96xf32> to vector<4x96xf32>
    %569 = arith.addf %567, %568 : vector<4x96xf32>
    %cst_121 = arith.constant dense<0.000000e+00> : vector<4x96xf32>
    %570 = tpu.matmul %526, %5, %cst_121 {dimension_numbers = #tpu.dot_dimension_numbers<[1], [0], [0], [1], [0, 0, 1, 1], [], []>} : vector<4x32xf32>, vector<32x96xf32>, vector<4x96xf32> -> vector<4x96xf32>
    %571 = vector.extract_strided_slice %569 {offsets = [0, 0], sizes = [4, 32], strides = [1, 1]} : vector<4x96xf32> to vector<4x32xf32>
    %572 = vector.extract_strided_slice %570 {offsets = [0, 0], sizes = [4, 32], strides = [1, 1]} : vector<4x96xf32> to vector<4x32xf32>
    %573 = arith.addf %571, %572 : vector<4x32xf32>
    %574 = arith.negf %573 : vector<4x32xf32>
    %575 = math.exp %574 : vector<4x32xf32>
    %cst_122 = arith.constant 1.000000e+00 : f32
    %576 = vector.broadcast %cst_122 : f32 to vector<4x32xf32>
    %577 = arith.addf %576, %575 : vector<4x32xf32>
    %578 = arith.divf %576, %577 : vector<4x32xf32>
    %579 = vector.extract_strided_slice %569 {offsets = [0, 32], sizes = [4, 32], strides = [1, 1]} : vector<4x96xf32> to vector<4x32xf32>
    %580 = vector.extract_strided_slice %570 {offsets = [0, 32], sizes = [4, 32], strides = [1, 1]} : vector<4x96xf32> to vector<4x32xf32>
    %581 = arith.addf %579, %580 : vector<4x32xf32>
    %582 = arith.negf %581 : vector<4x32xf32>
    %583 = math.exp %582 : vector<4x32xf32>
    %cst_123 = arith.constant 1.000000e+00 : f32
    %584 = vector.broadcast %cst_123 : f32 to vector<4x32xf32>
    %585 = arith.addf %584, %583 : vector<4x32xf32>
    %586 = arith.divf %584, %585 : vector<4x32xf32>
    %587 = vector.extract_strided_slice %569 {offsets = [0, 64], sizes = [4, 32], strides = [1, 1]} : vector<4x96xf32> to vector<4x32xf32>
    %588 = vector.extract_strided_slice %570 {offsets = [0, 64], sizes = [4, 32], strides = [1, 1]} : vector<4x96xf32> to vector<4x32xf32>
    %589 = vector.broadcast %7 : vector<1x32xf32> to vector<4x32xf32>
    %590 = arith.addf %588, %589 : vector<4x32xf32>
    %591 = arith.mulf %578, %590 : vector<4x32xf32>
    %592 = arith.addf %587, %591 : vector<4x32xf32>
    %593 = math.tanh %592 : vector<4x32xf32>
    %cst_124 = arith.constant 1.000000e+00 : f32
    %594 = vector.broadcast %cst_124 : f32 to vector<4x32xf32>
    %595 = arith.subf %594, %586 : vector<4x32xf32>
    %596 = arith.mulf %595, %593 : vector<4x32xf32>
    %597 = arith.mulf %586, %526 : vector<4x32xf32>
    %598 = arith.addf %596, %597 : vector<4x32xf32>
    %cst_125 = arith.constant dense<0.000000e+00> : vector<4x16xf32>
    %599 = tpu.matmul %598, %8, %cst_125 {dimension_numbers = #tpu.dot_dimension_numbers<[1], [0], [0], [1], [0, 0, 1, 1], [], []>} : vector<4x32xf32>, vector<32x16xf32>, vector<4x16xf32> -> vector<4x16xf32>
    %600 = arith.addf %566, %599 : vector<4x16xf32>
    %601 = arith.addf %531, %600 : vector<4x16xf32>
    %602 = vector.broadcast %4 : vector<1x16xf32> to vector<4x16xf32>
    %603 = arith.addf %601, %602 : vector<4x16xf32>
    %cst_126 = arith.constant dense<0.000000e+00> : vector<4x96xf32>
    %604 = tpu.matmul %603, %0, %cst_126 {dimension_numbers = #tpu.dot_dimension_numbers<[1], [0], [0], [1], [0, 0, 1, 1], [], []>} : vector<4x16xf32>, vector<16x96xf32>, vector<4x96xf32> -> vector<4x96xf32>
    %c2_127 = arith.constant 2 : index
    %c0_128 = arith.constant 0 : index
    %c0_129 = arith.constant 0 : index
    %605 = vector.load %arg1[%c2_127, %c0_128, %c0_129] : memref<8x4x96xf32, #tpu.memory_space<vmem>>, vector<1x4x96xf32>
    %606 = vector.shape_cast %605 : vector<1x4x96xf32> to vector<4x96xf32>
    %607 = arith.addf %604, %606 : vector<4x96xf32>
    %cst_130 = arith.constant dense<0.000000e+00> : vector<4x96xf32>
    %608 = tpu.matmul %564, %1, %cst_130 {dimension_numbers = #tpu.dot_dimension_numbers<[1], [0], [0], [1], [0, 0, 1, 1], [], []>} : vector<4x32xf32>, vector<32x96xf32>, vector<4x96xf32> -> vector<4x96xf32>
    %609 = vector.extract_strided_slice %607 {offsets = [0, 0], sizes = [4, 32], strides = [1, 1]} : vector<4x96xf32> to vector<4x32xf32>
    %610 = vector.extract_strided_slice %608 {offsets = [0, 0], sizes = [4, 32], strides = [1, 1]} : vector<4x96xf32> to vector<4x32xf32>
    %611 = arith.addf %609, %610 : vector<4x32xf32>
    %612 = arith.negf %611 : vector<4x32xf32>
    %613 = math.exp %612 : vector<4x32xf32>
    %cst_131 = arith.constant 1.000000e+00 : f32
    %614 = vector.broadcast %cst_131 : f32 to vector<4x32xf32>
    %615 = arith.addf %614, %613 : vector<4x32xf32>
    %616 = arith.divf %614, %615 : vector<4x32xf32>
    %617 = vector.extract_strided_slice %607 {offsets = [0, 32], sizes = [4, 32], strides = [1, 1]} : vector<4x96xf32> to vector<4x32xf32>
    %618 = vector.extract_strided_slice %608 {offsets = [0, 32], sizes = [4, 32], strides = [1, 1]} : vector<4x96xf32> to vector<4x32xf32>
    %619 = arith.addf %617, %618 : vector<4x32xf32>
    %620 = arith.negf %619 : vector<4x32xf32>
    %621 = math.exp %620 : vector<4x32xf32>
    %cst_132 = arith.constant 1.000000e+00 : f32
    %622 = vector.broadcast %cst_132 : f32 to vector<4x32xf32>
    %623 = arith.addf %622, %621 : vector<4x32xf32>
    %624 = arith.divf %622, %623 : vector<4x32xf32>
    %625 = vector.extract_strided_slice %607 {offsets = [0, 64], sizes = [4, 32], strides = [1, 1]} : vector<4x96xf32> to vector<4x32xf32>
    %626 = vector.extract_strided_slice %608 {offsets = [0, 64], sizes = [4, 32], strides = [1, 1]} : vector<4x96xf32> to vector<4x32xf32>
    %627 = vector.broadcast %2 : vector<1x32xf32> to vector<4x32xf32>
    %628 = arith.addf %626, %627 : vector<4x32xf32>
    %629 = arith.mulf %616, %628 : vector<4x32xf32>
    %630 = arith.addf %625, %629 : vector<4x32xf32>
    %631 = math.tanh %630 : vector<4x32xf32>
    %cst_133 = arith.constant 1.000000e+00 : f32
    %632 = vector.broadcast %cst_133 : f32 to vector<4x32xf32>
    %633 = arith.subf %632, %624 : vector<4x32xf32>
    %634 = arith.mulf %633, %631 : vector<4x32xf32>
    %635 = arith.mulf %624, %564 : vector<4x32xf32>
    %636 = arith.addf %634, %635 : vector<4x32xf32>
    %cst_134 = arith.constant dense<0.000000e+00> : vector<4x112xf32>
    %637 = tpu.matmul %636, %3, %cst_134 {dimension_numbers = #tpu.dot_dimension_numbers<[1], [0], [0], [1], [0, 0, 1, 1], [], []>} : vector<4x32xf32>, vector<32x112xf32>, vector<4x112xf32> -> vector<4x112xf32>
    %638 = vector.extract_strided_slice %637 {offsets = [0, 96], sizes = [4, 16], strides = [1, 1]} : vector<4x112xf32> to vector<4x16xf32>
    %639 = vector.extract_strided_slice %637 {offsets = [0, 0], sizes = [4, 96], strides = [1, 1]} : vector<4x112xf32> to vector<4x96xf32>
    %640 = vector.broadcast %6 : vector<1x96xf32> to vector<4x96xf32>
    %641 = arith.addf %639, %640 : vector<4x96xf32>
    %cst_135 = arith.constant dense<0.000000e+00> : vector<4x96xf32>
    %642 = tpu.matmul %598, %5, %cst_135 {dimension_numbers = #tpu.dot_dimension_numbers<[1], [0], [0], [1], [0, 0, 1, 1], [], []>} : vector<4x32xf32>, vector<32x96xf32>, vector<4x96xf32> -> vector<4x96xf32>
    %643 = vector.extract_strided_slice %641 {offsets = [0, 0], sizes = [4, 32], strides = [1, 1]} : vector<4x96xf32> to vector<4x32xf32>
    %644 = vector.extract_strided_slice %642 {offsets = [0, 0], sizes = [4, 32], strides = [1, 1]} : vector<4x96xf32> to vector<4x32xf32>
    %645 = arith.addf %643, %644 : vector<4x32xf32>
    %646 = arith.negf %645 : vector<4x32xf32>
    %647 = math.exp %646 : vector<4x32xf32>
    %cst_136 = arith.constant 1.000000e+00 : f32
    %648 = vector.broadcast %cst_136 : f32 to vector<4x32xf32>
    %649 = arith.addf %648, %647 : vector<4x32xf32>
    %650 = arith.divf %648, %649 : vector<4x32xf32>
    %651 = vector.extract_strided_slice %641 {offsets = [0, 32], sizes = [4, 32], strides = [1, 1]} : vector<4x96xf32> to vector<4x32xf32>
    %652 = vector.extract_strided_slice %642 {offsets = [0, 32], sizes = [4, 32], strides = [1, 1]} : vector<4x96xf32> to vector<4x32xf32>
    %653 = arith.addf %651, %652 : vector<4x32xf32>
    %654 = arith.negf %653 : vector<4x32xf32>
    %655 = math.exp %654 : vector<4x32xf32>
    %cst_137 = arith.constant 1.000000e+00 : f32
    %656 = vector.broadcast %cst_137 : f32 to vector<4x32xf32>
    %657 = arith.addf %656, %655 : vector<4x32xf32>
    %658 = arith.divf %656, %657 : vector<4x32xf32>
    %659 = vector.extract_strided_slice %641 {offsets = [0, 64], sizes = [4, 32], strides = [1, 1]} : vector<4x96xf32> to vector<4x32xf32>
    %660 = vector.extract_strided_slice %642 {offsets = [0, 64], sizes = [4, 32], strides = [1, 1]} : vector<4x96xf32> to vector<4x32xf32>
    %661 = vector.broadcast %7 : vector<1x32xf32> to vector<4x32xf32>
    %662 = arith.addf %660, %661 : vector<4x32xf32>
    %663 = arith.mulf %650, %662 : vector<4x32xf32>
    %664 = arith.addf %659, %663 : vector<4x32xf32>
    %665 = math.tanh %664 : vector<4x32xf32>
    %cst_138 = arith.constant 1.000000e+00 : f32
    %666 = vector.broadcast %cst_138 : f32 to vector<4x32xf32>
    %667 = arith.subf %666, %658 : vector<4x32xf32>
    %668 = arith.mulf %667, %665 : vector<4x32xf32>
    %669 = arith.mulf %658, %598 : vector<4x32xf32>
    %670 = arith.addf %668, %669 : vector<4x32xf32>
    %cst_139 = arith.constant dense<0.000000e+00> : vector<4x16xf32>
    %671 = tpu.matmul %670, %8, %cst_139 {dimension_numbers = #tpu.dot_dimension_numbers<[1], [0], [0], [1], [0, 0, 1, 1], [], []>} : vector<4x32xf32>, vector<32x16xf32>, vector<4x16xf32> -> vector<4x16xf32>
    %672 = arith.addf %638, %671 : vector<4x16xf32>
    %673 = arith.addf %603, %672 : vector<4x16xf32>
    %674 = vector.broadcast %4 : vector<1x16xf32> to vector<4x16xf32>
    %675 = arith.addf %673, %674 : vector<4x16xf32>
    %cst_140 = arith.constant dense<0.000000e+00> : vector<4x96xf32>
    %676 = tpu.matmul %675, %0, %cst_140 {dimension_numbers = #tpu.dot_dimension_numbers<[1], [0], [0], [1], [0, 0, 1, 1], [], []>} : vector<4x16xf32>, vector<16x96xf32>, vector<4x96xf32> -> vector<4x96xf32>
    %c3_141 = arith.constant 3 : index
    %c0_142 = arith.constant 0 : index
    %c0_143 = arith.constant 0 : index
    %677 = vector.load %arg1[%c3_141, %c0_142, %c0_143] : memref<8x4x96xf32, #tpu.memory_space<vmem>>, vector<1x4x96xf32>
    %678 = vector.shape_cast %677 : vector<1x4x96xf32> to vector<4x96xf32>
    %679 = arith.addf %676, %678 : vector<4x96xf32>
    %cst_144 = arith.constant dense<0.000000e+00> : vector<4x96xf32>
    %680 = tpu.matmul %636, %1, %cst_144 {dimension_numbers = #tpu.dot_dimension_numbers<[1], [0], [0], [1], [0, 0, 1, 1], [], []>} : vector<4x32xf32>, vector<32x96xf32>, vector<4x96xf32> -> vector<4x96xf32>
    %681 = vector.extract_strided_slice %679 {offsets = [0, 0], sizes = [4, 32], strides = [1, 1]} : vector<4x96xf32> to vector<4x32xf32>
    %682 = vector.extract_strided_slice %680 {offsets = [0, 0], sizes = [4, 32], strides = [1, 1]} : vector<4x96xf32> to vector<4x32xf32>
    %683 = arith.addf %681, %682 : vector<4x32xf32>
    %684 = arith.negf %683 : vector<4x32xf32>
    %685 = math.exp %684 : vector<4x32xf32>
    %cst_145 = arith.constant 1.000000e+00 : f32
    %686 = vector.broadcast %cst_145 : f32 to vector<4x32xf32>
    %687 = arith.addf %686, %685 : vector<4x32xf32>
    %688 = arith.divf %686, %687 : vector<4x32xf32>
    %689 = vector.extract_strided_slice %679 {offsets = [0, 32], sizes = [4, 32], strides = [1, 1]} : vector<4x96xf32> to vector<4x32xf32>
    %690 = vector.extract_strided_slice %680 {offsets = [0, 32], sizes = [4, 32], strides = [1, 1]} : vector<4x96xf32> to vector<4x32xf32>
    %691 = arith.addf %689, %690 : vector<4x32xf32>
    %692 = arith.negf %691 : vector<4x32xf32>
    %693 = math.exp %692 : vector<4x32xf32>
    %cst_146 = arith.constant 1.000000e+00 : f32
    %694 = vector.broadcast %cst_146 : f32 to vector<4x32xf32>
    %695 = arith.addf %694, %693 : vector<4x32xf32>
    %696 = arith.divf %694, %695 : vector<4x32xf32>
    %697 = vector.extract_strided_slice %679 {offsets = [0, 64], sizes = [4, 32], strides = [1, 1]} : vector<4x96xf32> to vector<4x32xf32>
    %698 = vector.extract_strided_slice %680 {offsets = [0, 64], sizes = [4, 32], strides = [1, 1]} : vector<4x96xf32> to vector<4x32xf32>
    %699 = vector.broadcast %2 : vector<1x32xf32> to vector<4x32xf32>
    %700 = arith.addf %698, %699 : vector<4x32xf32>
    %701 = arith.mulf %688, %700 : vector<4x32xf32>
    %702 = arith.addf %697, %701 : vector<4x32xf32>
    %703 = math.tanh %702 : vector<4x32xf32>
    %cst_147 = arith.constant 1.000000e+00 : f32
    %704 = vector.broadcast %cst_147 : f32 to vector<4x32xf32>
    %705 = arith.subf %704, %696 : vector<4x32xf32>
    %706 = arith.mulf %705, %703 : vector<4x32xf32>
    %707 = arith.mulf %696, %636 : vector<4x32xf32>
    %708 = arith.addf %706, %707 : vector<4x32xf32>
    %cst_148 = arith.constant dense<0.000000e+00> : vector<4x112xf32>
    %709 = tpu.matmul %708, %3, %cst_148 {dimension_numbers = #tpu.dot_dimension_numbers<[1], [0], [0], [1], [0, 0, 1, 1], [], []>} : vector<4x32xf32>, vector<32x112xf32>, vector<4x112xf32> -> vector<4x112xf32>
    %710 = vector.extract_strided_slice %709 {offsets = [0, 96], sizes = [4, 16], strides = [1, 1]} : vector<4x112xf32> to vector<4x16xf32>
    %711 = vector.extract_strided_slice %709 {offsets = [0, 0], sizes = [4, 96], strides = [1, 1]} : vector<4x112xf32> to vector<4x96xf32>
    %712 = vector.broadcast %6 : vector<1x96xf32> to vector<4x96xf32>
    %713 = arith.addf %711, %712 : vector<4x96xf32>
    %cst_149 = arith.constant dense<0.000000e+00> : vector<4x96xf32>
    %714 = tpu.matmul %670, %5, %cst_149 {dimension_numbers = #tpu.dot_dimension_numbers<[1], [0], [0], [1], [0, 0, 1, 1], [], []>} : vector<4x32xf32>, vector<32x96xf32>, vector<4x96xf32> -> vector<4x96xf32>
    %715 = vector.extract_strided_slice %713 {offsets = [0, 0], sizes = [4, 32], strides = [1, 1]} : vector<4x96xf32> to vector<4x32xf32>
    %716 = vector.extract_strided_slice %714 {offsets = [0, 0], sizes = [4, 32], strides = [1, 1]} : vector<4x96xf32> to vector<4x32xf32>
    %717 = arith.addf %715, %716 : vector<4x32xf32>
    %718 = arith.negf %717 : vector<4x32xf32>
    %719 = math.exp %718 : vector<4x32xf32>
    %cst_150 = arith.constant 1.000000e+00 : f32
    %720 = vector.broadcast %cst_150 : f32 to vector<4x32xf32>
    %721 = arith.addf %720, %719 : vector<4x32xf32>
    %722 = arith.divf %720, %721 : vector<4x32xf32>
    %723 = vector.extract_strided_slice %713 {offsets = [0, 32], sizes = [4, 32], strides = [1, 1]} : vector<4x96xf32> to vector<4x32xf32>
    %724 = vector.extract_strided_slice %714 {offsets = [0, 32], sizes = [4, 32], strides = [1, 1]} : vector<4x96xf32> to vector<4x32xf32>
    %725 = arith.addf %723, %724 : vector<4x32xf32>
    %726 = arith.negf %725 : vector<4x32xf32>
    %727 = math.exp %726 : vector<4x32xf32>
    %cst_151 = arith.constant 1.000000e+00 : f32
    %728 = vector.broadcast %cst_151 : f32 to vector<4x32xf32>
    %729 = arith.addf %728, %727 : vector<4x32xf32>
    %730 = arith.divf %728, %729 : vector<4x32xf32>
    %731 = vector.extract_strided_slice %713 {offsets = [0, 64], sizes = [4, 32], strides = [1, 1]} : vector<4x96xf32> to vector<4x32xf32>
    %732 = vector.extract_strided_slice %714 {offsets = [0, 64], sizes = [4, 32], strides = [1, 1]} : vector<4x96xf32> to vector<4x32xf32>
    %733 = vector.broadcast %7 : vector<1x32xf32> to vector<4x32xf32>
    %734 = arith.addf %732, %733 : vector<4x32xf32>
    %735 = arith.mulf %722, %734 : vector<4x32xf32>
    %736 = arith.addf %731, %735 : vector<4x32xf32>
    %737 = math.tanh %736 : vector<4x32xf32>
    %cst_152 = arith.constant 1.000000e+00 : f32
    %738 = vector.broadcast %cst_152 : f32 to vector<4x32xf32>
    %739 = arith.subf %738, %730 : vector<4x32xf32>
    %740 = arith.mulf %739, %737 : vector<4x32xf32>
    %741 = arith.mulf %730, %670 : vector<4x32xf32>
    %742 = arith.addf %740, %741 : vector<4x32xf32>
    %cst_153 = arith.constant dense<0.000000e+00> : vector<4x16xf32>
    %743 = tpu.matmul %742, %8, %cst_153 {dimension_numbers = #tpu.dot_dimension_numbers<[1], [0], [0], [1], [0, 0, 1, 1], [], []>} : vector<4x32xf32>, vector<32x16xf32>, vector<4x16xf32> -> vector<4x16xf32>
    %744 = arith.addf %710, %743 : vector<4x16xf32>
    %745 = arith.addf %675, %744 : vector<4x16xf32>
    %746 = vector.broadcast %4 : vector<1x16xf32> to vector<4x16xf32>
    %747 = arith.addf %745, %746 : vector<4x16xf32>
    %cst_154 = arith.constant dense<0.000000e+00> : vector<4x96xf32>
    %748 = tpu.matmul %747, %0, %cst_154 {dimension_numbers = #tpu.dot_dimension_numbers<[1], [0], [0], [1], [0, 0, 1, 1], [], []>} : vector<4x16xf32>, vector<16x96xf32>, vector<4x96xf32> -> vector<4x96xf32>
    %c4_155 = arith.constant 4 : index
    %c0_156 = arith.constant 0 : index
    %c0_157 = arith.constant 0 : index
    %749 = vector.load %arg1[%c4_155, %c0_156, %c0_157] : memref<8x4x96xf32, #tpu.memory_space<vmem>>, vector<1x4x96xf32>
    %750 = vector.shape_cast %749 : vector<1x4x96xf32> to vector<4x96xf32>
    %751 = arith.addf %748, %750 : vector<4x96xf32>
    %cst_158 = arith.constant dense<0.000000e+00> : vector<4x96xf32>
    %752 = tpu.matmul %708, %1, %cst_158 {dimension_numbers = #tpu.dot_dimension_numbers<[1], [0], [0], [1], [0, 0, 1, 1], [], []>} : vector<4x32xf32>, vector<32x96xf32>, vector<4x96xf32> -> vector<4x96xf32>
    %753 = vector.extract_strided_slice %751 {offsets = [0, 0], sizes = [4, 32], strides = [1, 1]} : vector<4x96xf32> to vector<4x32xf32>
    %754 = vector.extract_strided_slice %752 {offsets = [0, 0], sizes = [4, 32], strides = [1, 1]} : vector<4x96xf32> to vector<4x32xf32>
    %755 = arith.addf %753, %754 : vector<4x32xf32>
    %756 = arith.negf %755 : vector<4x32xf32>
    %757 = math.exp %756 : vector<4x32xf32>
    %cst_159 = arith.constant 1.000000e+00 : f32
    %758 = vector.broadcast %cst_159 : f32 to vector<4x32xf32>
    %759 = arith.addf %758, %757 : vector<4x32xf32>
    %760 = arith.divf %758, %759 : vector<4x32xf32>
    %761 = vector.extract_strided_slice %751 {offsets = [0, 32], sizes = [4, 32], strides = [1, 1]} : vector<4x96xf32> to vector<4x32xf32>
    %762 = vector.extract_strided_slice %752 {offsets = [0, 32], sizes = [4, 32], strides = [1, 1]} : vector<4x96xf32> to vector<4x32xf32>
    %763 = arith.addf %761, %762 : vector<4x32xf32>
    %764 = arith.negf %763 : vector<4x32xf32>
    %765 = math.exp %764 : vector<4x32xf32>
    %cst_160 = arith.constant 1.000000e+00 : f32
    %766 = vector.broadcast %cst_160 : f32 to vector<4x32xf32>
    %767 = arith.addf %766, %765 : vector<4x32xf32>
    %768 = arith.divf %766, %767 : vector<4x32xf32>
    %769 = vector.extract_strided_slice %751 {offsets = [0, 64], sizes = [4, 32], strides = [1, 1]} : vector<4x96xf32> to vector<4x32xf32>
    %770 = vector.extract_strided_slice %752 {offsets = [0, 64], sizes = [4, 32], strides = [1, 1]} : vector<4x96xf32> to vector<4x32xf32>
    %771 = vector.broadcast %2 : vector<1x32xf32> to vector<4x32xf32>
    %772 = arith.addf %770, %771 : vector<4x32xf32>
    %773 = arith.mulf %760, %772 : vector<4x32xf32>
    %774 = arith.addf %769, %773 : vector<4x32xf32>
    %775 = math.tanh %774 : vector<4x32xf32>
    %cst_161 = arith.constant 1.000000e+00 : f32
    %776 = vector.broadcast %cst_161 : f32 to vector<4x32xf32>
    %777 = arith.subf %776, %768 : vector<4x32xf32>
    %778 = arith.mulf %777, %775 : vector<4x32xf32>
    %779 = arith.mulf %768, %708 : vector<4x32xf32>
    %780 = arith.addf %778, %779 : vector<4x32xf32>
    %cst_162 = arith.constant dense<0.000000e+00> : vector<4x112xf32>
    %781 = tpu.matmul %780, %3, %cst_162 {dimension_numbers = #tpu.dot_dimension_numbers<[1], [0], [0], [1], [0, 0, 1, 1], [], []>} : vector<4x32xf32>, vector<32x112xf32>, vector<4x112xf32> -> vector<4x112xf32>
    %782 = vector.extract_strided_slice %781 {offsets = [0, 96], sizes = [4, 16], strides = [1, 1]} : vector<4x112xf32> to vector<4x16xf32>
    %783 = vector.extract_strided_slice %781 {offsets = [0, 0], sizes = [4, 96], strides = [1, 1]} : vector<4x112xf32> to vector<4x96xf32>
    %784 = vector.broadcast %6 : vector<1x96xf32> to vector<4x96xf32>
    %785 = arith.addf %783, %784 : vector<4x96xf32>
    %cst_163 = arith.constant dense<0.000000e+00> : vector<4x96xf32>
    %786 = tpu.matmul %742, %5, %cst_163 {dimension_numbers = #tpu.dot_dimension_numbers<[1], [0], [0], [1], [0, 0, 1, 1], [], []>} : vector<4x32xf32>, vector<32x96xf32>, vector<4x96xf32> -> vector<4x96xf32>
    %787 = vector.extract_strided_slice %785 {offsets = [0, 0], sizes = [4, 32], strides = [1, 1]} : vector<4x96xf32> to vector<4x32xf32>
    %788 = vector.extract_strided_slice %786 {offsets = [0, 0], sizes = [4, 32], strides = [1, 1]} : vector<4x96xf32> to vector<4x32xf32>
    %789 = arith.addf %787, %788 : vector<4x32xf32>
    %790 = arith.negf %789 : vector<4x32xf32>
    %791 = math.exp %790 : vector<4x32xf32>
    %cst_164 = arith.constant 1.000000e+00 : f32
    %792 = vector.broadcast %cst_164 : f32 to vector<4x32xf32>
    %793 = arith.addf %792, %791 : vector<4x32xf32>
    %794 = arith.divf %792, %793 : vector<4x32xf32>
    %795 = vector.extract_strided_slice %785 {offsets = [0, 32], sizes = [4, 32], strides = [1, 1]} : vector<4x96xf32> to vector<4x32xf32>
    %796 = vector.extract_strided_slice %786 {offsets = [0, 32], sizes = [4, 32], strides = [1, 1]} : vector<4x96xf32> to vector<4x32xf32>
    %797 = arith.addf %795, %796 : vector<4x32xf32>
    %798 = arith.negf %797 : vector<4x32xf32>
    %799 = math.exp %798 : vector<4x32xf32>
    %cst_165 = arith.constant 1.000000e+00 : f32
    %800 = vector.broadcast %cst_165 : f32 to vector<4x32xf32>
    %801 = arith.addf %800, %799 : vector<4x32xf32>
    %802 = arith.divf %800, %801 : vector<4x32xf32>
    %803 = vector.extract_strided_slice %785 {offsets = [0, 64], sizes = [4, 32], strides = [1, 1]} : vector<4x96xf32> to vector<4x32xf32>
    %804 = vector.extract_strided_slice %786 {offsets = [0, 64], sizes = [4, 32], strides = [1, 1]} : vector<4x96xf32> to vector<4x32xf32>
    %805 = vector.broadcast %7 : vector<1x32xf32> to vector<4x32xf32>
    %806 = arith.addf %804, %805 : vector<4x32xf32>
    %807 = arith.mulf %794, %806 : vector<4x32xf32>
    %808 = arith.addf %803, %807 : vector<4x32xf32>
    %809 = math.tanh %808 : vector<4x32xf32>
    %cst_166 = arith.constant 1.000000e+00 : f32
    %810 = vector.broadcast %cst_166 : f32 to vector<4x32xf32>
    %811 = arith.subf %810, %802 : vector<4x32xf32>
    %812 = arith.mulf %811, %809 : vector<4x32xf32>
    %813 = arith.mulf %802, %742 : vector<4x32xf32>
    %814 = arith.addf %812, %813 : vector<4x32xf32>
    %cst_167 = arith.constant dense<0.000000e+00> : vector<4x16xf32>
    %815 = tpu.matmul %814, %8, %cst_167 {dimension_numbers = #tpu.dot_dimension_numbers<[1], [0], [0], [1], [0, 0, 1, 1], [], []>} : vector<4x32xf32>, vector<32x16xf32>, vector<4x16xf32> -> vector<4x16xf32>
    %816 = arith.addf %782, %815 : vector<4x16xf32>
    %817 = arith.addf %747, %816 : vector<4x16xf32>
    %818 = vector.broadcast %4 : vector<1x16xf32> to vector<4x16xf32>
    %819 = arith.addf %817, %818 : vector<4x16xf32>
    %cst_168 = arith.constant dense<0.000000e+00> : vector<4x96xf32>
    %820 = tpu.matmul %819, %0, %cst_168 {dimension_numbers = #tpu.dot_dimension_numbers<[1], [0], [0], [1], [0, 0, 1, 1], [], []>} : vector<4x16xf32>, vector<16x96xf32>, vector<4x96xf32> -> vector<4x96xf32>
    %c5_169 = arith.constant 5 : index
    %c0_170 = arith.constant 0 : index
    %c0_171 = arith.constant 0 : index
    %821 = vector.load %arg1[%c5_169, %c0_170, %c0_171] : memref<8x4x96xf32, #tpu.memory_space<vmem>>, vector<1x4x96xf32>
    %822 = vector.shape_cast %821 : vector<1x4x96xf32> to vector<4x96xf32>
    %823 = arith.addf %820, %822 : vector<4x96xf32>
    %cst_172 = arith.constant dense<0.000000e+00> : vector<4x96xf32>
    %824 = tpu.matmul %780, %1, %cst_172 {dimension_numbers = #tpu.dot_dimension_numbers<[1], [0], [0], [1], [0, 0, 1, 1], [], []>} : vector<4x32xf32>, vector<32x96xf32>, vector<4x96xf32> -> vector<4x96xf32>
    %825 = vector.extract_strided_slice %823 {offsets = [0, 0], sizes = [4, 32], strides = [1, 1]} : vector<4x96xf32> to vector<4x32xf32>
    %826 = vector.extract_strided_slice %824 {offsets = [0, 0], sizes = [4, 32], strides = [1, 1]} : vector<4x96xf32> to vector<4x32xf32>
    %827 = arith.addf %825, %826 : vector<4x32xf32>
    %828 = arith.negf %827 : vector<4x32xf32>
    %829 = math.exp %828 : vector<4x32xf32>
    %cst_173 = arith.constant 1.000000e+00 : f32
    %830 = vector.broadcast %cst_173 : f32 to vector<4x32xf32>
    %831 = arith.addf %830, %829 : vector<4x32xf32>
    %832 = arith.divf %830, %831 : vector<4x32xf32>
    %833 = vector.extract_strided_slice %823 {offsets = [0, 32], sizes = [4, 32], strides = [1, 1]} : vector<4x96xf32> to vector<4x32xf32>
    %834 = vector.extract_strided_slice %824 {offsets = [0, 32], sizes = [4, 32], strides = [1, 1]} : vector<4x96xf32> to vector<4x32xf32>
    %835 = arith.addf %833, %834 : vector<4x32xf32>
    %836 = arith.negf %835 : vector<4x32xf32>
    %837 = math.exp %836 : vector<4x32xf32>
    %cst_174 = arith.constant 1.000000e+00 : f32
    %838 = vector.broadcast %cst_174 : f32 to vector<4x32xf32>
    %839 = arith.addf %838, %837 : vector<4x32xf32>
    %840 = arith.divf %838, %839 : vector<4x32xf32>
    %841 = vector.extract_strided_slice %823 {offsets = [0, 64], sizes = [4, 32], strides = [1, 1]} : vector<4x96xf32> to vector<4x32xf32>
    %842 = vector.extract_strided_slice %824 {offsets = [0, 64], sizes = [4, 32], strides = [1, 1]} : vector<4x96xf32> to vector<4x32xf32>
    %843 = vector.broadcast %2 : vector<1x32xf32> to vector<4x32xf32>
    %844 = arith.addf %842, %843 : vector<4x32xf32>
    %845 = arith.mulf %832, %844 : vector<4x32xf32>
    %846 = arith.addf %841, %845 : vector<4x32xf32>
    %847 = math.tanh %846 : vector<4x32xf32>
    %cst_175 = arith.constant 1.000000e+00 : f32
    %848 = vector.broadcast %cst_175 : f32 to vector<4x32xf32>
    %849 = arith.subf %848, %840 : vector<4x32xf32>
    %850 = arith.mulf %849, %847 : vector<4x32xf32>
    %851 = arith.mulf %840, %780 : vector<4x32xf32>
    %852 = arith.addf %850, %851 : vector<4x32xf32>
    %cst_176 = arith.constant dense<0.000000e+00> : vector<4x112xf32>
    %853 = tpu.matmul %852, %3, %cst_176 {dimension_numbers = #tpu.dot_dimension_numbers<[1], [0], [0], [1], [0, 0, 1, 1], [], []>} : vector<4x32xf32>, vector<32x112xf32>, vector<4x112xf32> -> vector<4x112xf32>
    %854 = vector.extract_strided_slice %853 {offsets = [0, 96], sizes = [4, 16], strides = [1, 1]} : vector<4x112xf32> to vector<4x16xf32>
    %855 = vector.extract_strided_slice %853 {offsets = [0, 0], sizes = [4, 96], strides = [1, 1]} : vector<4x112xf32> to vector<4x96xf32>
    %856 = vector.broadcast %6 : vector<1x96xf32> to vector<4x96xf32>
    %857 = arith.addf %855, %856 : vector<4x96xf32>
    %cst_177 = arith.constant dense<0.000000e+00> : vector<4x96xf32>
    %858 = tpu.matmul %814, %5, %cst_177 {dimension_numbers = #tpu.dot_dimension_numbers<[1], [0], [0], [1], [0, 0, 1, 1], [], []>} : vector<4x32xf32>, vector<32x96xf32>, vector<4x96xf32> -> vector<4x96xf32>
    %859 = vector.extract_strided_slice %857 {offsets = [0, 0], sizes = [4, 32], strides = [1, 1]} : vector<4x96xf32> to vector<4x32xf32>
    %860 = vector.extract_strided_slice %858 {offsets = [0, 0], sizes = [4, 32], strides = [1, 1]} : vector<4x96xf32> to vector<4x32xf32>
    %861 = arith.addf %859, %860 : vector<4x32xf32>
    %862 = arith.negf %861 : vector<4x32xf32>
    %863 = math.exp %862 : vector<4x32xf32>
    %cst_178 = arith.constant 1.000000e+00 : f32
    %864 = vector.broadcast %cst_178 : f32 to vector<4x32xf32>
    %865 = arith.addf %864, %863 : vector<4x32xf32>
    %866 = arith.divf %864, %865 : vector<4x32xf32>
    %867 = vector.extract_strided_slice %857 {offsets = [0, 32], sizes = [4, 32], strides = [1, 1]} : vector<4x96xf32> to vector<4x32xf32>
    %868 = vector.extract_strided_slice %858 {offsets = [0, 32], sizes = [4, 32], strides = [1, 1]} : vector<4x96xf32> to vector<4x32xf32>
    %869 = arith.addf %867, %868 : vector<4x32xf32>
    %870 = arith.negf %869 : vector<4x32xf32>
    %871 = math.exp %870 : vector<4x32xf32>
    %cst_179 = arith.constant 1.000000e+00 : f32
    %872 = vector.broadcast %cst_179 : f32 to vector<4x32xf32>
    %873 = arith.addf %872, %871 : vector<4x32xf32>
    %874 = arith.divf %872, %873 : vector<4x32xf32>
    %875 = vector.extract_strided_slice %857 {offsets = [0, 64], sizes = [4, 32], strides = [1, 1]} : vector<4x96xf32> to vector<4x32xf32>
    %876 = vector.extract_strided_slice %858 {offsets = [0, 64], sizes = [4, 32], strides = [1, 1]} : vector<4x96xf32> to vector<4x32xf32>
    %877 = vector.broadcast %7 : vector<1x32xf32> to vector<4x32xf32>
    %878 = arith.addf %876, %877 : vector<4x32xf32>
    %879 = arith.mulf %866, %878 : vector<4x32xf32>
    %880 = arith.addf %875, %879 : vector<4x32xf32>
    %881 = math.tanh %880 : vector<4x32xf32>
    %cst_180 = arith.constant 1.000000e+00 : f32
    %882 = vector.broadcast %cst_180 : f32 to vector<4x32xf32>
    %883 = arith.subf %882, %874 : vector<4x32xf32>
    %884 = arith.mulf %883, %881 : vector<4x32xf32>
    %885 = arith.mulf %874, %814 : vector<4x32xf32>
    %886 = arith.addf %884, %885 : vector<4x32xf32>
    %cst_181 = arith.constant dense<0.000000e+00> : vector<4x16xf32>
    %887 = tpu.matmul %886, %8, %cst_181 {dimension_numbers = #tpu.dot_dimension_numbers<[1], [0], [0], [1], [0, 0, 1, 1], [], []>} : vector<4x32xf32>, vector<32x16xf32>, vector<4x16xf32> -> vector<4x16xf32>
    %888 = arith.addf %854, %887 : vector<4x16xf32>
    %889 = arith.addf %819, %888 : vector<4x16xf32>
    %890 = vector.broadcast %4 : vector<1x16xf32> to vector<4x16xf32>
    %891 = arith.addf %889, %890 : vector<4x16xf32>
    %cst_182 = arith.constant dense<0.000000e+00> : vector<4x96xf32>
    %892 = tpu.matmul %891, %0, %cst_182 {dimension_numbers = #tpu.dot_dimension_numbers<[1], [0], [0], [1], [0, 0, 1, 1], [], []>} : vector<4x16xf32>, vector<16x96xf32>, vector<4x96xf32> -> vector<4x96xf32>
    %c6_183 = arith.constant 6 : index
    %c0_184 = arith.constant 0 : index
    %c0_185 = arith.constant 0 : index
    %893 = vector.load %arg1[%c6_183, %c0_184, %c0_185] : memref<8x4x96xf32, #tpu.memory_space<vmem>>, vector<1x4x96xf32>
    %894 = vector.shape_cast %893 : vector<1x4x96xf32> to vector<4x96xf32>
    %895 = arith.addf %892, %894 : vector<4x96xf32>
    %cst_186 = arith.constant dense<0.000000e+00> : vector<4x96xf32>
    %896 = tpu.matmul %852, %1, %cst_186 {dimension_numbers = #tpu.dot_dimension_numbers<[1], [0], [0], [1], [0, 0, 1, 1], [], []>} : vector<4x32xf32>, vector<32x96xf32>, vector<4x96xf32> -> vector<4x96xf32>
    %897 = vector.extract_strided_slice %895 {offsets = [0, 0], sizes = [4, 32], strides = [1, 1]} : vector<4x96xf32> to vector<4x32xf32>
    %898 = vector.extract_strided_slice %896 {offsets = [0, 0], sizes = [4, 32], strides = [1, 1]} : vector<4x96xf32> to vector<4x32xf32>
    %899 = arith.addf %897, %898 : vector<4x32xf32>
    %900 = arith.negf %899 : vector<4x32xf32>
    %901 = math.exp %900 : vector<4x32xf32>
    %cst_187 = arith.constant 1.000000e+00 : f32
    %902 = vector.broadcast %cst_187 : f32 to vector<4x32xf32>
    %903 = arith.addf %902, %901 : vector<4x32xf32>
    %904 = arith.divf %902, %903 : vector<4x32xf32>
    %905 = vector.extract_strided_slice %895 {offsets = [0, 32], sizes = [4, 32], strides = [1, 1]} : vector<4x96xf32> to vector<4x32xf32>
    %906 = vector.extract_strided_slice %896 {offsets = [0, 32], sizes = [4, 32], strides = [1, 1]} : vector<4x96xf32> to vector<4x32xf32>
    %907 = arith.addf %905, %906 : vector<4x32xf32>
    %908 = arith.negf %907 : vector<4x32xf32>
    %909 = math.exp %908 : vector<4x32xf32>
    %cst_188 = arith.constant 1.000000e+00 : f32
    %910 = vector.broadcast %cst_188 : f32 to vector<4x32xf32>
    %911 = arith.addf %910, %909 : vector<4x32xf32>
    %912 = arith.divf %910, %911 : vector<4x32xf32>
    %913 = vector.extract_strided_slice %895 {offsets = [0, 64], sizes = [4, 32], strides = [1, 1]} : vector<4x96xf32> to vector<4x32xf32>
    %914 = vector.extract_strided_slice %896 {offsets = [0, 64], sizes = [4, 32], strides = [1, 1]} : vector<4x96xf32> to vector<4x32xf32>
    %915 = vector.broadcast %2 : vector<1x32xf32> to vector<4x32xf32>
    %916 = arith.addf %914, %915 : vector<4x32xf32>
    %917 = arith.mulf %904, %916 : vector<4x32xf32>
    %918 = arith.addf %913, %917 : vector<4x32xf32>
    %919 = math.tanh %918 : vector<4x32xf32>
    %cst_189 = arith.constant 1.000000e+00 : f32
    %920 = vector.broadcast %cst_189 : f32 to vector<4x32xf32>
    %921 = arith.subf %920, %912 : vector<4x32xf32>
    %922 = arith.mulf %921, %919 : vector<4x32xf32>
    %923 = arith.mulf %912, %852 : vector<4x32xf32>
    %924 = arith.addf %922, %923 : vector<4x32xf32>
    %cst_190 = arith.constant dense<0.000000e+00> : vector<4x112xf32>
    %925 = tpu.matmul %924, %3, %cst_190 {dimension_numbers = #tpu.dot_dimension_numbers<[1], [0], [0], [1], [0, 0, 1, 1], [], []>} : vector<4x32xf32>, vector<32x112xf32>, vector<4x112xf32> -> vector<4x112xf32>
    %926 = vector.extract_strided_slice %925 {offsets = [0, 96], sizes = [4, 16], strides = [1, 1]} : vector<4x112xf32> to vector<4x16xf32>
    %927 = vector.extract_strided_slice %925 {offsets = [0, 0], sizes = [4, 96], strides = [1, 1]} : vector<4x112xf32> to vector<4x96xf32>
    %928 = vector.broadcast %6 : vector<1x96xf32> to vector<4x96xf32>
    %929 = arith.addf %927, %928 : vector<4x96xf32>
    %cst_191 = arith.constant dense<0.000000e+00> : vector<4x96xf32>
    %930 = tpu.matmul %886, %5, %cst_191 {dimension_numbers = #tpu.dot_dimension_numbers<[1], [0], [0], [1], [0, 0, 1, 1], [], []>} : vector<4x32xf32>, vector<32x96xf32>, vector<4x96xf32> -> vector<4x96xf32>
    %931 = vector.extract_strided_slice %929 {offsets = [0, 0], sizes = [4, 32], strides = [1, 1]} : vector<4x96xf32> to vector<4x32xf32>
    %932 = vector.extract_strided_slice %930 {offsets = [0, 0], sizes = [4, 32], strides = [1, 1]} : vector<4x96xf32> to vector<4x32xf32>
    %933 = arith.addf %931, %932 : vector<4x32xf32>
    %934 = arith.negf %933 : vector<4x32xf32>
    %935 = math.exp %934 : vector<4x32xf32>
    %cst_192 = arith.constant 1.000000e+00 : f32
    %936 = vector.broadcast %cst_192 : f32 to vector<4x32xf32>
    %937 = arith.addf %936, %935 : vector<4x32xf32>
    %938 = arith.divf %936, %937 : vector<4x32xf32>
    %939 = vector.extract_strided_slice %929 {offsets = [0, 32], sizes = [4, 32], strides = [1, 1]} : vector<4x96xf32> to vector<4x32xf32>
    %940 = vector.extract_strided_slice %930 {offsets = [0, 32], sizes = [4, 32], strides = [1, 1]} : vector<4x96xf32> to vector<4x32xf32>
    %941 = arith.addf %939, %940 : vector<4x32xf32>
    %942 = arith.negf %941 : vector<4x32xf32>
    %943 = math.exp %942 : vector<4x32xf32>
    %cst_193 = arith.constant 1.000000e+00 : f32
    %944 = vector.broadcast %cst_193 : f32 to vector<4x32xf32>
    %945 = arith.addf %944, %943 : vector<4x32xf32>
    %946 = arith.divf %944, %945 : vector<4x32xf32>
    %947 = vector.extract_strided_slice %929 {offsets = [0, 64], sizes = [4, 32], strides = [1, 1]} : vector<4x96xf32> to vector<4x32xf32>
    %948 = vector.extract_strided_slice %930 {offsets = [0, 64], sizes = [4, 32], strides = [1, 1]} : vector<4x96xf32> to vector<4x32xf32>
    %949 = vector.broadcast %7 : vector<1x32xf32> to vector<4x32xf32>
    %950 = arith.addf %948, %949 : vector<4x32xf32>
    %951 = arith.mulf %938, %950 : vector<4x32xf32>
    %952 = arith.addf %947, %951 : vector<4x32xf32>
    %953 = math.tanh %952 : vector<4x32xf32>
    %cst_194 = arith.constant 1.000000e+00 : f32
    %954 = vector.broadcast %cst_194 : f32 to vector<4x32xf32>
    %955 = arith.subf %954, %946 : vector<4x32xf32>
    %956 = arith.mulf %955, %953 : vector<4x32xf32>
    %957 = arith.mulf %946, %886 : vector<4x32xf32>
    %958 = arith.addf %956, %957 : vector<4x32xf32>
    %cst_195 = arith.constant dense<0.000000e+00> : vector<4x16xf32>
    %959 = tpu.matmul %958, %8, %cst_195 {dimension_numbers = #tpu.dot_dimension_numbers<[1], [0], [0], [1], [0, 0, 1, 1], [], []>} : vector<4x32xf32>, vector<32x16xf32>, vector<4x16xf32> -> vector<4x16xf32>
    %960 = arith.addf %926, %959 : vector<4x16xf32>
    %961 = arith.addf %891, %960 : vector<4x16xf32>
    %962 = vector.broadcast %4 : vector<1x16xf32> to vector<4x16xf32>
    %963 = arith.addf %961, %962 : vector<4x16xf32>
    %cst_196 = arith.constant dense<0.000000e+00> : vector<4x96xf32>
    %964 = tpu.matmul %963, %0, %cst_196 {dimension_numbers = #tpu.dot_dimension_numbers<[1], [0], [0], [1], [0, 0, 1, 1], [], []>} : vector<4x16xf32>, vector<16x96xf32>, vector<4x96xf32> -> vector<4x96xf32>
    %c7 = arith.constant 7 : index
    %c0_197 = arith.constant 0 : index
    %c0_198 = arith.constant 0 : index
    %965 = vector.load %arg1[%c7, %c0_197, %c0_198] : memref<8x4x96xf32, #tpu.memory_space<vmem>>, vector<1x4x96xf32>
    %966 = vector.shape_cast %965 : vector<1x4x96xf32> to vector<4x96xf32>
    %967 = arith.addf %964, %966 : vector<4x96xf32>
    %cst_199 = arith.constant dense<0.000000e+00> : vector<4x96xf32>
    %968 = tpu.matmul %924, %1, %cst_199 {dimension_numbers = #tpu.dot_dimension_numbers<[1], [0], [0], [1], [0, 0, 1, 1], [], []>} : vector<4x32xf32>, vector<32x96xf32>, vector<4x96xf32> -> vector<4x96xf32>
    %969 = vector.extract_strided_slice %967 {offsets = [0, 0], sizes = [4, 32], strides = [1, 1]} : vector<4x96xf32> to vector<4x32xf32>
    %970 = vector.extract_strided_slice %968 {offsets = [0, 0], sizes = [4, 32], strides = [1, 1]} : vector<4x96xf32> to vector<4x32xf32>
    %971 = arith.addf %969, %970 : vector<4x32xf32>
    %972 = arith.negf %971 : vector<4x32xf32>
    %973 = math.exp %972 : vector<4x32xf32>
    %cst_200 = arith.constant 1.000000e+00 : f32
    %974 = vector.broadcast %cst_200 : f32 to vector<4x32xf32>
    %975 = arith.addf %974, %973 : vector<4x32xf32>
    %976 = arith.divf %974, %975 : vector<4x32xf32>
    %977 = vector.extract_strided_slice %967 {offsets = [0, 32], sizes = [4, 32], strides = [1, 1]} : vector<4x96xf32> to vector<4x32xf32>
    %978 = vector.extract_strided_slice %968 {offsets = [0, 32], sizes = [4, 32], strides = [1, 1]} : vector<4x96xf32> to vector<4x32xf32>
    %979 = arith.addf %977, %978 : vector<4x32xf32>
    %980 = arith.negf %979 : vector<4x32xf32>
    %981 = math.exp %980 : vector<4x32xf32>
    %cst_201 = arith.constant 1.000000e+00 : f32
    %982 = vector.broadcast %cst_201 : f32 to vector<4x32xf32>
    %983 = arith.addf %982, %981 : vector<4x32xf32>
    %984 = arith.divf %982, %983 : vector<4x32xf32>
    %985 = vector.extract_strided_slice %967 {offsets = [0, 64], sizes = [4, 32], strides = [1, 1]} : vector<4x96xf32> to vector<4x32xf32>
    %986 = vector.extract_strided_slice %968 {offsets = [0, 64], sizes = [4, 32], strides = [1, 1]} : vector<4x96xf32> to vector<4x32xf32>
    %987 = vector.broadcast %2 : vector<1x32xf32> to vector<4x32xf32>
    %988 = arith.addf %986, %987 : vector<4x32xf32>
    %989 = arith.mulf %976, %988 : vector<4x32xf32>
    %990 = arith.addf %985, %989 : vector<4x32xf32>
    %991 = math.tanh %990 : vector<4x32xf32>
    %cst_202 = arith.constant 1.000000e+00 : f32
    %992 = vector.broadcast %cst_202 : f32 to vector<4x32xf32>
    %993 = arith.subf %992, %984 : vector<4x32xf32>
    %994 = arith.mulf %993, %991 : vector<4x32xf32>
    %995 = arith.mulf %984, %924 : vector<4x32xf32>
    %996 = arith.addf %994, %995 : vector<4x32xf32>
    %cst_203 = arith.constant dense<0.000000e+00> : vector<4x112xf32>
    %997 = tpu.matmul %996, %3, %cst_203 {dimension_numbers = #tpu.dot_dimension_numbers<[1], [0], [0], [1], [0, 0, 1, 1], [], []>} : vector<4x32xf32>, vector<32x112xf32>, vector<4x112xf32> -> vector<4x112xf32>
    %998 = vector.extract_strided_slice %997 {offsets = [0, 96], sizes = [4, 16], strides = [1, 1]} : vector<4x112xf32> to vector<4x16xf32>
    %999 = vector.extract_strided_slice %997 {offsets = [0, 0], sizes = [4, 96], strides = [1, 1]} : vector<4x112xf32> to vector<4x96xf32>
    %1000 = vector.broadcast %6 : vector<1x96xf32> to vector<4x96xf32>
    %1001 = arith.addf %999, %1000 : vector<4x96xf32>
    %cst_204 = arith.constant dense<0.000000e+00> : vector<4x96xf32>
    %1002 = tpu.matmul %958, %5, %cst_204 {dimension_numbers = #tpu.dot_dimension_numbers<[1], [0], [0], [1], [0, 0, 1, 1], [], []>} : vector<4x32xf32>, vector<32x96xf32>, vector<4x96xf32> -> vector<4x96xf32>
    %1003 = vector.extract_strided_slice %1001 {offsets = [0, 0], sizes = [4, 32], strides = [1, 1]} : vector<4x96xf32> to vector<4x32xf32>
    %1004 = vector.extract_strided_slice %1002 {offsets = [0, 0], sizes = [4, 32], strides = [1, 1]} : vector<4x96xf32> to vector<4x32xf32>
    %1005 = arith.addf %1003, %1004 : vector<4x32xf32>
    %1006 = arith.negf %1005 : vector<4x32xf32>
    %1007 = math.exp %1006 : vector<4x32xf32>
    %cst_205 = arith.constant 1.000000e+00 : f32
    %1008 = vector.broadcast %cst_205 : f32 to vector<4x32xf32>
    %1009 = arith.addf %1008, %1007 : vector<4x32xf32>
    %1010 = arith.divf %1008, %1009 : vector<4x32xf32>
    %1011 = vector.extract_strided_slice %1001 {offsets = [0, 32], sizes = [4, 32], strides = [1, 1]} : vector<4x96xf32> to vector<4x32xf32>
    %1012 = vector.extract_strided_slice %1002 {offsets = [0, 32], sizes = [4, 32], strides = [1, 1]} : vector<4x96xf32> to vector<4x32xf32>
    %1013 = arith.addf %1011, %1012 : vector<4x32xf32>
    %1014 = arith.negf %1013 : vector<4x32xf32>
    %1015 = math.exp %1014 : vector<4x32xf32>
    %cst_206 = arith.constant 1.000000e+00 : f32
    %1016 = vector.broadcast %cst_206 : f32 to vector<4x32xf32>
    %1017 = arith.addf %1016, %1015 : vector<4x32xf32>
    %1018 = arith.divf %1016, %1017 : vector<4x32xf32>
    %1019 = vector.extract_strided_slice %1001 {offsets = [0, 64], sizes = [4, 32], strides = [1, 1]} : vector<4x96xf32> to vector<4x32xf32>
    %1020 = vector.extract_strided_slice %1002 {offsets = [0, 64], sizes = [4, 32], strides = [1, 1]} : vector<4x96xf32> to vector<4x32xf32>
    %1021 = vector.broadcast %7 : vector<1x32xf32> to vector<4x32xf32>
    %1022 = arith.addf %1020, %1021 : vector<4x32xf32>
    %1023 = arith.mulf %1010, %1022 : vector<4x32xf32>
    %1024 = arith.addf %1019, %1023 : vector<4x32xf32>
    %1025 = math.tanh %1024 : vector<4x32xf32>
    %cst_207 = arith.constant 1.000000e+00 : f32
    %1026 = vector.broadcast %cst_207 : f32 to vector<4x32xf32>
    %1027 = arith.subf %1026, %1018 : vector<4x32xf32>
    %1028 = arith.mulf %1027, %1025 : vector<4x32xf32>
    %1029 = arith.mulf %1018, %958 : vector<4x32xf32>
    %1030 = arith.addf %1028, %1029 : vector<4x32xf32>
    %cst_208 = arith.constant dense<0.000000e+00> : vector<4x16xf32>
    %1031 = tpu.matmul %1030, %8, %cst_208 {dimension_numbers = #tpu.dot_dimension_numbers<[1], [0], [0], [1], [0, 0, 1, 1], [], []>} : vector<4x32xf32>, vector<32x16xf32>, vector<4x16xf32> -> vector<4x16xf32>
    %1032 = arith.addf %998, %1031 : vector<4x16xf32>
    %1033 = arith.addf %963, %1032 : vector<4x16xf32>
    %1034 = vector.broadcast %4 : vector<1x16xf32> to vector<4x16xf32>
    %1035 = arith.addf %1033, %1034 : vector<4x16xf32>
    %1036 = tpu.concatenate %531, %603, %675, %747, %819, %891, %963, %1035 in 1 : vector<4x16xf32>, vector<4x16xf32>, vector<4x16xf32>, vector<4x16xf32>, vector<4x16xf32>, vector<4x16xf32>, vector<4x16xf32>, vector<4x16xf32> -> vector<4x128xf32>
    %c0_209 = arith.constant 0 : index
    %c0_210 = arith.constant 0 : index
    %1037 = vector.load %arg12[%c0_209, %c0_210] : memref<4x128xf32, #tpu.memory_space<vmem>>, vector<4x128xf32>
    tpu.vector_store %arg12[%c0_209, %c0_210], %1036 {strides = array<i32>} : memref<4x128xf32, #tpu.memory_space<vmem>>, vector<4x128xf32>,
    return
  }
}

</mosaic_0001>

<bundles_post_ra>
// kernel: tpu_custom_call.1
= control target key start
LH: loop header
LB: loop body
LE: loop exit
PB: predicated region body
PF: predicated region fallthrough
CT: control target
= control target key end

     0   :  { %17 = vsyncpa [#allocation3], 0  ;;  %s4330_s0 = inlined_call_operand.hbm [shape: f32[7,4,96], index: 0, kind: input, shape index: {}]   ;;  %s4331_s1 = inlined_call_operand.vmem [shape: f32[8,4,96], index: 1, kind: input, shape index: {}]   ;;  %s4332_s2 = inlined_call_operand.hbm [shape: f32[4,16], index: 2, kind: input, shape index: {}]   ;;  %s4333_s3 = inlined_call_operand.vmem [shape: f32[16,96], index: 3, kind: input, shape index: {}]   ;;  %s4334_s4 = inlined_call_operand.hbm [shape: f32[32,96], index: 4, kind: input, shape index: {}]   ;;  %s4335_s5 = inlined_call_operand.vmem [shape: f32[1,32], index: 5, kind: input, shape index: {}]   ;;  %s4336_s6 = inlined_call_operand.hbm [shape: f32[32,112], index: 6, kind: input, shape index: {}]   ;;  %s4337_s7 = inlined_call_operand.hbm [shape: f32[32,96], index: 7, kind: input, shape index: {}]   ;;  %s4338_s8 = inlined_call_operand.vmem [shape: f32[1,96], index: 8, kind: input, shape index: {}]   ;;  %s4339_s9 = inlined_call_operand.vmem [shape: f32[1,32], index: 9, kind: input, shape index: {}]   ;;  %s4340_s10 = inlined_call_operand.vmem [shape: f32[32,16], index: 10, kind: input, shape index: {}]   ;;  %s4341_s11 = inlined_call_operand.vmem [shape: f32[1,16], index: 11, kind: input, shape index: {}]   ;;  %s4342_s12 = inlined_call_operand.hbm [shape: f32[4,128], index: 12, kind: output, shape index: {}]  }
   0x1   :  { %18 = vsyncpa [#allocation6], 0 }
   0x2   :  { %19 = vsyncpa [#allocation9], 0  ;;  %s41_s23 = sshll.u32 %s4332_s2, 4  ;;  %s42_s23 = int_to_ptr.hbm [resolvable:$true] %s41_s23 }
   0x3   :  { %20 = vsyncpa [#allocation4], 0  ;;  %s3423_s24 = smov [#allocation5]   ;;  %s68_s28 = sshll.u32 %s4336_s6, 4  ;;  %s69_s28 = int_to_ptr.hbm [resolvable:$true] %s68_s28 }
   0x4   :  { %s43_s25 = sshll.u32 %s3423_s24, 4  ;;  %s3424_s29 = smov [#allocation8]   ;;  %s44_s25 = int_to_ptr.vmem [resolvable:$true] %s43_s25 }
   0x5   :  { %46 = dma.hbm_to_vmem [thread:$0]  %s42_s23, 64, %s44_s25, [#allocation6]  }
   0x6   :  { %s70_s30 = sshll.u32 %s3424_s29, 4  ;;  %s25_s15 = sshll.u32 %s4330_s0, 4  ;;  %s71_s30 = int_to_ptr.vmem [resolvable:$true] %s70_s30  ;;  %s26_s15 = int_to_ptr.hbm [resolvable:$true] %s25_s15 }
   0x7   :  { %s3425_s2 = smov 128   ;;  %s3426_s16 = smov 8  }
   0x8   :  { %76 = dma.hbm_to_vmem [thread:$0]  %s69_s28, 512, %s71_s30, [#allocation9], %s3425_s2, %s3425_s2, %s3426_s16  }
   0x9   :  { %s3427_s17 = smov [#allocation2]   ;;  %s53_s21 = sshll.u32 %s4334_s4, 4  ;;  %s54_s21 = int_to_ptr.hbm [resolvable:$true] %s53_s21 }
   0xa   :  { %s27_s18 = sshll.u32 %s3427_s17, 4  ;;  %s3428_s6 = smov 64   ;;  %s28_s18 = int_to_ptr.vmem [resolvable:$true] %s27_s18 }
   0xb   :  { %s3429_s22 = smov 4   ;;  %s3430_s23 = smov [#allocation7]  }
   0xc   :  { %33 = dma.hbm_to_vmem [thread:$0]  %s26_s15, 448, %s28_s18, [#allocation3], %s3428_s6, %s3428_s6, %s3429_s22  }
   0xd   :  { %s55_s0 = sshll.u32 %s3430_s23, 4  ;;  %s81_s26 = sshll.u32 %s4337_s7, 4  ;;  %s56_s0 = int_to_ptr.vmem [resolvable:$true] %s55_s0  ;;  %s82_s26 = int_to_ptr.hbm [resolvable:$true] %s81_s26 }
   0xe   :  { %61 = dma.hbm_to_vmem [thread:$0]  %s54_s21, 512, %s56_s0, [#allocation6], %s3425_s2, %s3425_s2, %s3426_s16  }
   0xf   :  { %s3431_s27 = smov [#allocation10]  }
  0x10   :  { %s83_s28 = sshll.u32 %s3431_s27, 4  ;;  %s84_s28 = int_to_ptr.vmem [resolvable:$true] %s83_s28 }
  0x11   :  { %89 = dma.hbm_to_vmem [thread:$0]  %s82_s26, 512, %s84_s28, [#allocation9], %s3425_s2, %s3425_s2, %s3426_s16  }
  0x12   :  { %3415 = dma.done.wait [#allocation3], 448  }
  0x13   :  { %3416 = vsyncadd [#allocation3], 4294966848 }
  0x14   :  { %3417 = dma.done.wait [#allocation6], 576  }
  0x15   :  { %3418 = vsyncadd [#allocation6], 4294966720 }
  0x16   :  { %3419 = dma.done.wait [#allocation9], 1024  }
  0x17   :  { %3420 = vsyncadd [#allocation9], 4294966272  ;;  %v3522_v0 = vld [vmem:[#allocation7 + $0x18] sm:$0xff]  ;;  %v3524_v1 = vld [vmem:[#allocation7 + $0x10] sm:$0xff]  ;;  %v3432_v5 = vmov 0.0   ;;  %vm141_vm4 = vcmask 261120  }
  0x18   :  { %157 = vmatpush.msra.mxu0 %v3522_v0  ;;  %v3527_v2 = vld [vmem:[#allocation7 + $0x8] sm:$0xff]  ;;  %v3054_v3 = vld [vmem:[%s4335_s5] ss:$0 sm:$0xff]  ;;  %318 = vmatpush.msra.mxu3 %v3522_v0  ;;  %v3547_v26 = vld [vmem:[#allocation10 + $0x18] sm:$0xff]  ;;  %s3433_s5 = smov 96   ;;  %s3434_s28 = smov 32  }
  0x19   :  { %187 = vrot.lane.b32.xlu0 %v3054_v3, %s3428_s6  ;;  %v3535_v4 = vld [vmem:[#allocation7] sm:$0xff]  ;;  %v3549_v27 = vld [vmem:[#allocation10 + $0x10] sm:$0xff]  ;;  %251 = vmatpush.msra.mxu2 %v3547_v26  ;;  %v3554_v31 = vld [vmem:[#allocation10 + $0x8] sm:$0xff]  ;;  %s3436_s14 = smov 80   ;;  %s3437_s15 = smov 48  }
  0x1a   :  { %158 = vmatpush.msra.mxu0 %v3524_v1  ;;  %319 = vmatpush.msra.mxu3 %v3524_v1  ;;  %v140_v9 = vld [vmem:[#allocation2] sm:$0xf]  ;;  %v3564_v33 = vld [vmem:[#allocation8 + $0x18] sm:$0xff]  ;;  %v3566_v34 = vld [vmem:[#allocation8 + $0x10] sm:$0xff]  ;;  %s2929_s17 = sshll.u32 %s4342_s12, 4  ;;  %s2930_s17 = int_to_ptr.hbm [resolvable:$true] %s2929_s17 }
  0x1b   :  { %252 = vmatpush.msra.mxu2 %v3549_v27  ;;  %v3556_v32 = vld [vmem:[#allocation10] sm:$0xff]  ;;  %227 = vmatpush.msra.mxu1 %v3564_v33  ;;  %v3570_v35 = vld [vmem:[#allocation8 + $0x8] sm:$0xff] }
  0x1c   :  { %159 = vmatpush.msra.mxu0 %v3527_v2  ;;  %320 = vmatpush.msra.mxu3 %v3527_v2  ;;  %v3576_v36 = vld [vmem:[#allocation8] sm:$0xff] }
  0x1d   :  { %253 = vmatpush.msra.mxu2 %v3554_v31  ;;  %228 = vmatpush.msra.mxu1 %v3566_v34  ;;  %v3055_v42 = vld [vmem:[%s4339_s9] ss:$0 sm:$0xff] }
  0x1e   :  { %160 = vmatpush.msra.mxu0 %v3535_v4  ;;  %321 = vmatpush.msra.mxu3 %v3535_v4  ;;  %v3621_v47 = vld [vmem:[%s4338_s8] ss:$0 sm:$0xff] }
  0x1f   :  { %161 = vmatmul.f32.vlgmr.msra.gmra.mxu0 %v3432_v5  ;;  %254 = vmatpush.msra.mxu2 %v3556_v32 }
  0x20   :  { %255 = vmatmul.f32.vlgmr.msra.gmra.mxu2 %v3432_v5  ;;  %383 = vmatpush.msrb.mxu0 %v3564_v33 }
  0x21   :  { %471 = vmatpush.msrb.mxu2 %v3522_v0  ;;  %536 = vmatpush.msrb.mxu3 %v3564_v33 }
  0x22   :  { %384 = vmatpush.msrb.mxu0 %v3566_v34  ;;  %229 = vmatpush.msra.mxu1 %v3570_v35 }
  0x23   :  { %472 = vmatpush.msrb.mxu2 %v3524_v1  ;;  %537 = vmatpush.msrb.mxu3 %v3566_v34 }
  0x24   :  { %385 = vmatpush.msrb.mxu0 %v3570_v35  ;;  %230 = vmatpush.msra.mxu1 %v3576_v36 }
  0x25   :  { %473 = vmatpush.msrb.mxu2 %v3527_v2  ;;  %538 = vmatpush.msrb.mxu3 %v3570_v35 }
  0x26   :  { %386 = vmatpush.msrb.mxu0 %v3576_v36  ;;  %409 = vmatpush.msrb.mxu1 %v3547_v26 }
  0x27   :  { %474 = vmatpush.msrb.mxu2 %v3535_v4  ;;  %539 = vmatpush.msrb.mxu3 %v3576_v36 }
  0x28   :  { %562 = vmatpush.msra.mxu0 %v3547_v26  ;;  %410 = vmatpush.msrb.mxu1 %v3549_v27 }
  0x29   :  { %689 = vmatpush.msra.mxu2 %v3564_v33 }
  0x2a   :  { %563 = vmatpush.msra.mxu0 %v3549_v27  ;;  %411 = vmatpush.msrb.mxu1 %v3554_v31 }
  0x2b   :  { %690 = vmatpush.msra.mxu2 %v3566_v34 }
  0x2c   :  { %564 = vmatpush.msra.mxu0 %v3554_v31  ;;  %412 = vmatpush.msrb.mxu1 %v3556_v32 }
  0x2d   :  { %691 = vmatpush.msra.mxu2 %v3570_v35 }
  0x2e   :  { %565 = vmatpush.msra.mxu0 %v3556_v32 }
  0x2f   :  { %692 = vmatpush.msra.mxu2 %v3576_v36 }
  0x8b   :  { %v3542_v6 = vpop.permute.xlu0 %187 }
  0x9c   :  { %v162_v7 = vpop.f32.mrf.mxu0 }
  0x9d   :  { %v190_v8 = vadd.f32 %v3542_v6, %v162_v7  ;;  %v165_v10 = vadd.f32 %v162_v7, %v140_v9 }
  0x9f   :  { %192 = vrot.lane.b32.xlu0 %v190_v8, %s3428_s6  ;;  %v2941_v11 = vmul.f32 -1.442695, %v165_v10 }
  0xa1   :  { %3058 = vpow2.f32 %v2941_v11 }
  0xa3   :  { %v256_v45 = vpop.f32.mrf.mxu2 }
  0xa7   :  { %v3059_v12 = vpop.eup %3058 }
  0xa8   :  { %v169_v13 = vadd.f32 1.0, %v3059_v12 }
  0xaa   :  { %3060 = vrcp.f32 %v169_v13  ;;  %v181_v19 = vand.u32 2147483648, %v169_v13  ;;  %vm175_vm1 = vweird.f32 %v169_v13  ;;  %v179_v20 = vand.u32 2147483647, %v169_v13 }
  0xac   :  { %v182_v22 = vor.u32 1.1754944e-38, %v181_v19  ;;  %vm180_vm3 = vcmp.eq.f32.partialorder %v179_v20, 8.507059e+37 }
  0xb0   :  { %v3061_v14 = vpop.eup %3060 }
  0xb1   :  { %v171_v15 = vmul.f32 %v3061_v14, %v169_v13  ;;  %vm176_vm0 = vweird.f32 %v3061_v14 }
  0xb2   :  { %vm177_vm2 = vmor %vm175_vm1, %vm176_vm0 }
  0xb3   :  { %v172_v16 = vsub.f32 1.0, %v171_v15 }
  0xb5   :  { %v173_v17 = vmul.f32 %v3061_v14, %v172_v16 }
  0xb7   :  { %v174_v18 = vadd.f32 %v3061_v14, %v173_v17 }
  0xb9   :  { %v178_v21 = vsel %vm177_vm2, %v3061_v14, %v174_v18 }
  0xba   :  { %v183_v24 = vsel %vm180_vm3, %v182_v22, %v178_v21 }
  0xbb   :  { %v202_v37 = vsub.f32 1.0, %v183_v24  ;;  %v208_v40 = vmul.f32 0.0, %v183_v24 }
 0x111   :  { %v193_v23 = vpop.permute.xlu0 %192 }
 0x112   :  { %v195_v25 = vmul.f32 %v193_v23, %v183_v24 }
 0x114   :  { %197 = vrot.lane.b32.xlu1 %v195_v25, %s3428_s6 }
 0x186   :  { %v198_v28 = vpop.permute.xlu1 %197 }
 0x187   :  { %v200_v29 = vadd.f32 %v198_v28, %v140_v9  ;;  %v305_v9 = vld [vmem:[#allocation2 + $0x4] sm:$0xf] }
 0x189   :  { %3062 = vtanh.f32 %v200_v29 }
 0x18f   :  { %v3063_v30 = vpop.eup %3062 }
 0x190   :  { %204 = vrot.lane.b32.xlu1 %v3063_v30, %s3433_s5 }
 0x202   :  { %v205_v38 = vpop.permute.xlu1 %204 }
 0x203   :  { %v207_v39 = vmul.f32 %v205_v38, %v202_v37 }
 0x205   :  { %v3596_v41 = vadd.f32 %v208_v40, %v207_v39 }
 0x207   :  { %211 = vrot.lane.b32.xlu2 %v3596_v41, %s3433_s5 }
 0x20f   :  { %281 = vrot.lane.b32.xlu2 %v3055_v42, %s3428_s6 }
 0x261   :  { %v212_v43 = vpop.permute.xlu2 %211 }
 0x262   :  { %2942 = vmatmul.msk.f32.vlgmr.msra.gmra.mxu1 %vm141_vm4, %v212_v43  ;;  %2944 = vmatmul.msk.f32.vlgmr.msra.gmra.mxu3 %vm141_vm4, %v212_v43 }
 0x263   :  { %624 = vmatpush.msra.mxu1 %v3522_v0  ;;  %715 = vmatpush.msra.mxu3 %v3547_v26 }
 0x265   :  { %625 = vmatpush.msra.mxu1 %v3524_v1  ;;  %716 = vmatpush.msra.mxu3 %v3549_v27 }
 0x267   :  { %626 = vmatpush.msra.mxu1 %v3527_v2  ;;  %717 = vmatpush.msra.mxu3 %v3554_v31 }
 0x269   :  { %v3612_v44 = vpop.permute.xlu2 %281  ;;  %627 = vmatpush.msra.mxu1 %v3535_v4  ;;  %718 = vmatpush.msra.mxu3 %v3556_v32 }
 0x26a   :  { %v284_v46 = vadd.f32 %v3612_v44, %v256_v45 }
 0x26c   :  { %286 = vrot.lane.b32.xlu1 %v284_v46, %s3428_s6 }
 0x2de   :  { %v287_v3 = vpop.permute.xlu1 %286 }
 0x2df   :  { %v232_v48 = vpop.f32.mrf.mxu1 }
 0x2e0   :  { %v238_v49 = vadd.f32 %v3621_v47, %v232_v48 }
 0x2e2   :  { %v259_v50 = vadd.f32 %v256_v45, %v238_v49 }
 0x2e4   :  { %v2943_v51 = vmul.f32 -1.442695, %v259_v50 }
 0x2e5   :  { %v323_v52 = vpop.f32.mrf.mxu3 }
 0x2e6   :  { %3064 = vpow2.f32 %v2943_v51  ;;  %v346_v53 = vadd.f32 %v323_v52, %v3542_v6  ;;  %v326_v10 = vadd.f32 %v323_v52, %v305_v9 }
 0x2e8   :  { %348 = vrot.lane.b32.xlu0 %v346_v53, %s3428_s6  ;;  %v2945_v11 = vmul.f32 -1.442695, %v326_v10 }
 0x2ec   :  { %v3065_v54 = vpop.eup %3064 }
 0x2ed   :  { %v263_v55 = vadd.f32 1.0, %v3065_v54 }
 0x2ef   :  { %3066 = vrcp.f32 %v263_v55  ;;  %v275_v59 = vand.u32 2147483648, %v263_v55  ;;  %v273_v61 = vand.u32 2147483647, %v263_v55  ;;  %vm269_vm6 = vweird.f32 %v263_v55 }
 0x2f0   :  { %3068 = vpow2.f32 %v2945_v11 }
 0x2f1   :  { %v276_v63 = vor.u32 1.1754944e-38, %v275_v59  ;;  %vm274_vm8 = vcmp.eq.f32.partialorder %v273_v61, 8.507059e+37 }
 0x2f5   :  { %v3067_v56 = vpop.eup %3066 }
 0x2f6   :  { %v265_v57 = vmul.f32 %v3067_v56, %v263_v55  ;;  %vm270_vm5 = vweird.f32 %v3067_v56  ;;  %v3069_v12 = vpop.eup %3068 }
 0x2f7   :  { %vm271_vm7 = vmor %vm269_vm6, %vm270_vm5  ;;  %v330_v13 = vadd.f32 1.0, %v3069_v12 }
 0x2f8   :  { %v266_v58 = vsub.f32 1.0, %v265_v57 }
 0x2f9   :  { %3070 = vrcp.f32 %v330_v13  ;;  %v342_v19 = vand.u32 2147483648, %v330_v13  ;;  %vm336_vm10 = vweird.f32 %v330_v13  ;;  %v340_v20 = vand.u32 2147483647, %v330_v13 }
 0x2fa   :  { %v267_v60 = vmul.f32 %v3067_v56, %v266_v58 }
 0x2fb   :  { %v343_v22 = vor.u32 1.1754944e-38, %v342_v19  ;;  %vm341_vm12 = vcmp.eq.f32.partialorder %v340_v20, 8.507059e+37 }
 0x2fc   :  { %v268_v62 = vadd.f32 %v3067_v56, %v267_v60 }
 0x2fe   :  { %v272_v5 = vsel %vm271_vm7, %v3067_v56, %v268_v62 }
 0x2ff   :  { %v277_v7 = vsel %vm274_vm8, %v276_v63, %v272_v5  ;;  %v3071_v14 = vpop.eup %3070 }
 0x300   :  { %v289_v8 = vmul.f32 %v287_v3, %v277_v7  ;;  %v332_v15 = vmul.f32 %v3071_v14, %v330_v13  ;;  %vm337_vm9 = vweird.f32 %v3071_v14  ;;  %v296_v40 = vsub.f32 1.0, %v277_v7 }
 0x301   :  { %vm338_vm11 = vmor %vm336_vm10, %vm337_vm9  ;;  %v302_v43 = vmul.f32 0.0, %v277_v7 }
 0x302   :  { %291 = vrot.lane.b32.xlu0 %v289_v8, %s3428_s6  ;;  %v333_v16 = vsub.f32 1.0, %v332_v15 }
 0x304   :  { %v334_v17 = vmul.f32 %v3071_v14, %v333_v16 }
 0x306   :  { %v335_v18 = vadd.f32 %v3071_v14, %v334_v17  ;;  %v458_v17 = vld [vmem:[#allocation2 + $0x8] sm:$0xf] }
 0x308   :  { %v339_v21 = vsel %vm338_vm11, %v3071_v14, %v335_v18 }
 0x309   :  { %v344_v24 = vsel %vm341_vm12, %v343_v22, %v339_v21 }
 0x30a   :  { %v358_v48 = vsub.f32 1.0, %v344_v24  ;;  %v364_v50 = vmul.f32 %v344_v24, %v3596_v41 }
 0x35a   :  { %v349_v23 = vpop.permute.xlu0 %348 }
 0x35b   :  { %v351_v25 = vmul.f32 %v349_v23, %v344_v24 }
 0x35d   :  { %353 = vrot.lane.b32.xlu2 %v351_v25, %s3428_s6 }
 0x374   :  { %v292_v28 = vpop.permute.xlu0 %291 }
 0x375   :  { %v294_v29 = vadd.f32 %v292_v28, %v238_v49 }
 0x377   :  { %3072 = vtanh.f32 %v294_v29 }
 0x37d   :  { %v3073_v30 = vpop.eup %3072 }
 0x37e   :  { %298 = vrot.lane.b32.xlu2 %v3073_v30, %s3433_s5 }
 0x3b7   :  { %v354_v37 = vpop.permute.xlu2 %353 }
 0x3b8   :  { %v356_v38 = vadd.f32 %v354_v37, %v305_v9 }
 0x3ba   :  { %3074 = vtanh.f32 %v356_v38 }
 0x3c0   :  { %v3075_v39 = vpop.eup %3074 }
 0x3c1   :  { %360 = vrot.lane.b32.xlu1 %v3075_v39, %s3433_s5 }
 0x3d8   :  { %v299_v42 = vpop.permute.xlu2 %298 }
 0x3d9   :  { %v301_v45 = vmul.f32 %v299_v42, %v296_v40 }
 0x3db   :  { %v3630_v46 = vadd.f32 %v302_v43, %v301_v45 }
 0x3dd   :  { %393 = vrot.lane.b32.xlu1 %v3630_v46, %s3433_s5 }
 0x433   :  { %v361_v49 = vpop.permute.xlu1 %360 }
 0x434   :  { %v363_v51 = vmul.f32 %v361_v49, %v358_v48 }
 0x436   :  { %v3635_v52 = vadd.f32 %v364_v50, %v363_v51 }
 0x438   :  { %367 = vrot.lane.b32.xlu0 %v3635_v52, %s3433_s5 }
 0x44f   :  { %v394_v53 = vpop.permute.xlu1 %393 }
 0x450   :  { %2947 = vmatmul.msk.f32.vlgmr.msrb.gmra.mxu1 %vm141_vm4, %v394_v53 }
 0x451   :  { %842 = vmatpush.msrb.mxu1 %v3564_v33 }
 0x453   :  { %843 = vmatpush.msrb.mxu1 %v3566_v34 }
 0x455   :  { %844 = vmatpush.msrb.mxu1 %v3570_v35 }
 0x457   :  { %845 = vmatpush.msrb.mxu1 %v3576_v36 }
 0x4aa   :  { %v368_v54 = vpop.permute.xlu0 %367 }
 0x4ab   :  { %2946 = vmatmul.msk.f32.vlgmr.msrb.gmra.mxu0 %vm141_vm4, %v368_v54  ;;  %2949 = vmatmul.msk.f32.vlgmr.msrb.gmra.mxu2 %vm141_vm4, %v368_v54 }
 0x4ac   :  { %777 = vmatpush.msrb.mxu0 %v3522_v0  ;;  %868 = vmatpush.msrb.mxu2 %v3547_v26 }
 0x4ae   :  { %778 = vmatpush.msrb.mxu0 %v3524_v1  ;;  %869 = vmatpush.msrb.mxu2 %v3549_v27 }
 0x4b0   :  { %779 = vmatpush.msrb.mxu0 %v3527_v2  ;;  %870 = vmatpush.msrb.mxu2 %v3554_v31 }
 0x4b2   :  { %780 = vmatpush.msrb.mxu0 %v3535_v4  ;;  %871 = vmatpush.msrb.mxu2 %v3556_v32 }
 0x4cd   :  { %v414_v41 = vpop.f32.mrf.mxu1 }
 0x4ce   :  { %v437_v55 = vadd.f32 %v414_v41, %v3612_v44 }
 0x4d0   :  { %439 = vrot.lane.b32.xlu0 %v437_v55, %s3428_s6 }
 0x528   :  { %v388_v56 = vpop.f32.mrf.mxu0 }
 0x529   :  { %v391_v57 = vadd.f32 %v3621_v47, %v388_v56 }
 0x52b   :  { %v417_v58 = vadd.f32 %v414_v41, %v391_v57 }
 0x52d   :  { %v2948_v59 = vmul.f32 -1.442695, %v417_v58 }
 0x52e   :  { %v476_v60 = vpop.f32.mrf.mxu2 }
 0x52f   :  { %3076 = vpow2.f32 %v2948_v59  ;;  %v499_v61 = vadd.f32 %v476_v60, %v3542_v6  ;;  %v479_v18 = vadd.f32 %v476_v60, %v458_v17 }
 0x531   :  { %501 = vrot.lane.b32.xlu2 %v499_v61, %s3428_s6  ;;  %v2950_v19 = vmul.f32 -1.442695, %v479_v18 }
 0x535   :  { %v3077_v62 = vpop.eup %3076 }
 0x536   :  { %v421_v63 = vadd.f32 1.0, %v3077_v62 }
 0x538   :  { %3078 = vrcp.f32 %v421_v63  ;;  %v433_v8 = vand.u32 2147483648, %v421_v63  ;;  %v431_v10 = vand.u32 2147483647, %v421_v63  ;;  %vm427_vm14 = vweird.f32 %v421_v63 }
 0x539   :  { %3080 = vpow2.f32 %v2950_v19 }
 0x53a   :  { %v434_v12 = vor.u32 1.1754944e-38, %v433_v8  ;;  %vm432_vm0 = vcmp.eq.f32.partialorder %v431_v10, 8.507059e+37 }
 0x53e   :  { %v3079_v3 = vpop.eup %3078 }
 0x53f   :  { %v423_v5 = vmul.f32 %v3079_v3, %v421_v63  ;;  %vm428_vm13 = vweird.f32 %v3079_v3  ;;  %v3081_v20 = vpop.eup %3080 }
 0x540   :  { %vm429_vm15 = vmor %vm427_vm14, %vm428_vm13  ;;  %v483_v21 = vadd.f32 1.0, %v3081_v20 }
 0x541   :  { %v424_v7 = vsub.f32 1.0, %v423_v5 }
 0x542   :  { %v440_v14 = vpop.permute.xlu0 %439  ;;  %3082 = vrcp.f32 %v483_v21  ;;  %v495_v29 = vand.u32 2147483648, %v483_v21  ;;  %vm489_vm2 = vweird.f32 %v483_v21  ;;  %v493_v30 = vand.u32 2147483647, %v483_v21 }
 0x543   :  { %v425_v9 = vmul.f32 %v3079_v3, %v424_v7 }
 0x544   :  { %v496_v38 = vor.u32 1.1754944e-38, %v495_v29  ;;  %vm494_vm5 = vcmp.eq.f32.partialorder %v493_v30, 8.507059e+37 }
 0x545   :  { %v426_v11 = vadd.f32 %v3079_v3, %v425_v9 }
 0x547   :  { %v430_v13 = vsel %vm429_vm15, %v3079_v3, %v426_v11 }
 0x548   :  { %v435_v15 = vsel %vm432_vm0, %v434_v12, %v430_v13  ;;  %v3083_v22 = vpop.eup %3082 }
 0x549   :  { %v442_v16 = vmul.f32 %v440_v14, %v435_v15  ;;  %v485_v23 = vmul.f32 %v3083_v22, %v483_v21  ;;  %vm490_vm1 = vweird.f32 %v3083_v22  ;;  %v449_v53 = vsub.f32 1.0, %v435_v15 }
 0x54a   :  { %vm491_vm3 = vmor %vm489_vm2, %vm490_vm1  ;;  %v455_v41 = vmul.f32 %v435_v15, %v3630_v46 }
 0x54b   :  { %444 = vrot.lane.b32.xlu2 %v442_v16, %s3428_s6  ;;  %v486_v24 = vsub.f32 1.0, %v485_v23 }
 0x54d   :  { %v487_v25 = vmul.f32 %v3083_v22, %v486_v24 }
 0x54f   :  { %v488_v28 = vadd.f32 %v3083_v22, %v487_v25  ;;  %v611_v25 = vld [vmem:[#allocation2 + $0xc] sm:$0xf] }
 0x551   :  { %v492_v37 = vsel %vm491_vm3, %v3083_v22, %v488_v28 }
 0x552   :  { %v497_v39 = vsel %vm494_vm5, %v496_v38, %v492_v37 }
 0x553   :  { %v517_v59 = vmul.f32 %v497_v39, %v3635_v52 }
 0x58b   :  { %v502_v40 = vpop.permute.xlu2 %501 }
 0x58c   :  { %v504_v42 = vmul.f32 %v502_v40, %v497_v39 }
 0x58e   :  { %506 = vrot.lane.b32.xlu1 %v504_v42, %s3428_s6 }
 0x5a5   :  { %v445_v43 = vpop.permute.xlu2 %444 }
 0x5a6   :  { %v447_v45 = vadd.f32 %v445_v43, %v391_v57  ;;  %v511_v57 = vsub.f32 1.0, %v497_v39 }
 0x5a8   :  { %3084 = vtanh.f32 %v447_v45 }
 0x5ae   :  { %v3085_v48 = vpop.eup %3084 }
 0x5af   :  { %451 = vrot.lane.b32.xlu1 %v3085_v48, %s3433_s5 }
 0x600   :  { %v507_v49 = vpop.permute.xlu1 %506 }
 0x601   :  { %v509_v50 = vadd.f32 %v507_v49, %v458_v17 }
 0x603   :  { %3086 = vtanh.f32 %v509_v50 }
 0x609   :  { %v3087_v51 = vpop.eup %3086 }
 0x60a   :  { %513 = vrot.lane.b32.xlu0 %v3087_v51, %s3433_s5 }
 0x621   :  { %v452_v54 = vpop.permute.xlu1 %451 }
 0x622   :  { %v454_v55 = vmul.f32 %v452_v54, %v449_v53 }
 0x624   :  { %v3664_v56 = vadd.f32 %v455_v41, %v454_v55 }
 0x626   :  { %546 = vrot.lane.b32.xlu0 %v3664_v56, %s3433_s5 }
 0x67c   :  { %v514_v58 = vpop.permute.xlu0 %513 }
 0x67d   :  { %v516_v60 = vmul.f32 %v514_v58, %v511_v57 }
 0x67f   :  { %v3669_v61 = vadd.f32 %v517_v59, %v516_v60 }
 0x681   :  { %520 = vrot.lane.b32.xlu2 %v3669_v61, %s3433_s5 }
 0x698   :  { %v547_v62 = vpop.permute.xlu0 %546 }
 0x699   :  { %2952 = vmatmul.msk.f32.vlgmr.msra.gmra.mxu0 %vm141_vm4, %v547_v62 }
 0x69a   :  { %995 = vmatpush.msra.mxu0 %v3564_v33 }
 0x69c   :  { %996 = vmatpush.msra.mxu0 %v3566_v34 }
 0x69e   :  { %997 = vmatpush.msra.mxu0 %v3570_v35 }
 0x6a0   :  { %998 = vmatpush.msra.mxu0 %v3576_v36 }
 0x6db   :  { %v521_v46 = vpop.permute.xlu2 %520 }
 0x6dc   :  { %2951 = vmatmul.msk.f32.vlgmr.msrb.gmra.mxu3 %vm141_vm4, %v521_v46  ;;  %2954 = vmatmul.msk.f32.vlgmr.msra.gmra.mxu1 %vm141_vm4, %v521_v46 }
 0x6dd   :  { %930 = vmatpush.msrb.mxu3 %v3522_v0  ;;  %1021 = vmatpush.msra.mxu1 %v3547_v26 }
 0x6df   :  { %931 = vmatpush.msrb.mxu3 %v3524_v1  ;;  %1022 = vmatpush.msra.mxu1 %v3549_v27 }
 0x6e1   :  { %932 = vmatpush.msrb.mxu3 %v3527_v2  ;;  %1023 = vmatpush.msra.mxu1 %v3554_v31 }
 0x6e3   :  { %933 = vmatpush.msrb.mxu3 %v3535_v4  ;;  %1024 = vmatpush.msra.mxu1 %v3556_v32 }
 0x716   :  { %v567_v52 = vpop.f32.mrf.mxu0 }
 0x717   :  { %v590_v63 = vadd.f32 %v567_v52, %v3612_v44 }
 0x719   :  { %592 = vrot.lane.b32.xlu2 %v590_v63, %s3428_s6 }
 0x759   :  { %v629_v3 = vpop.f32.mrf.mxu1 }
 0x75a   :  { %v652_v5 = vadd.f32 %v629_v3, %v3542_v6  ;;  %v632_v28 = vadd.f32 %v629_v3, %v611_v25 }
 0x75c   :  { %654 = vrot.lane.b32.xlu1 %v652_v5, %s3428_s6  ;;  %v2955_v29 = vmul.f32 -1.442695, %v632_v28 }
 0x75f   :  { %v541_v7 = vpop.f32.mrf.mxu3 }
 0x760   :  { %v544_v8 = vadd.f32 %v3621_v47, %v541_v7 }
 0x762   :  { %v570_v9 = vadd.f32 %v567_v52, %v544_v8 }
 0x764   :  { %v2953_v10 = vmul.f32 -1.442695, %v570_v9 }
 0x766   :  { %3088 = vpow2.f32 %v2953_v10 }
 0x76c   :  { %v3089_v11 = vpop.eup %3088 }
 0x76d   :  { %v574_v12 = vadd.f32 1.0, %v3089_v11 }
 0x76f   :  { %3090 = vrcp.f32 %v574_v12  ;;  %v586_v16 = vand.u32 2147483648, %v574_v12  ;;  %v584_v18 = vand.u32 2147483647, %v574_v12  ;;  %vm580_vm7 = vweird.f32 %v574_v12 }
 0x770   :  { %3092 = vpow2.f32 %v2955_v29 }
 0x771   :  { %v587_v20 = vor.u32 1.1754944e-38, %v586_v16  ;;  %vm585_vm9 = vcmp.eq.f32.partialorder %v584_v18, 8.507059e+37 }
 0x773   :  { %v593_v23 = vpop.permute.xlu2 %592 }
 0x775   :  { %v3091_v13 = vpop.eup %3090 }
 0x776   :  { %v576_v14 = vmul.f32 %v3091_v13, %v574_v12  ;;  %vm581_vm6 = vweird.f32 %v3091_v13  ;;  %v3093_v30 = vpop.eup %3092 }
 0x777   :  { %vm582_vm8 = vmor %vm580_vm7, %vm581_vm6  ;;  %v636_v37 = vadd.f32 1.0, %v3093_v30 }
 0x778   :  { %v577_v15 = vsub.f32 1.0, %v576_v14 }
 0x779   :  { %3094 = vrcp.f32 %v636_v37  ;;  %v648_v45 = vand.u32 2147483648, %v636_v37  ;;  %vm642_vm11 = vweird.f32 %v636_v37  ;;  %v646_v48 = vand.u32 2147483647, %v636_v37 }
 0x77a   :  { %v578_v17 = vmul.f32 %v3091_v13, %v577_v15 }
 0x77b   :  { %v649_v50 = vor.u32 1.1754944e-38, %v648_v45  ;;  %vm647_vm13 = vcmp.eq.f32.partialorder %v646_v48, 8.507059e+37 }
 0x77c   :  { %v579_v19 = vadd.f32 %v3091_v13, %v578_v17 }
 0x77e   :  { %v583_v21 = vsel %vm582_vm8, %v3091_v13, %v579_v19 }
 0x77f   :  { %v588_v22 = vsel %vm585_vm9, %v587_v20, %v583_v21  ;;  %v3095_v38 = vpop.eup %3094 }
 0x780   :  { %v595_v24 = vmul.f32 %v593_v23, %v588_v22  ;;  %v638_v39 = vmul.f32 %v3095_v38, %v636_v37  ;;  %vm643_vm10 = vweird.f32 %v3095_v38  ;;  %v602_v62 = vsub.f32 1.0, %v588_v22  ;;  %v764_v37 = vld [vmem:[#allocation2 + $0x10] sm:$0xf] }
 0x781   :  { %vm644_vm12 = vmor %vm642_vm11, %vm643_vm10  ;;  %v608_v52 = vmul.f32 %v588_v22, %v3664_v56 }
 0x782   :  { %597 = vrot.lane.b32.xlu1 %v595_v24, %s3428_s6  ;;  %v639_v40 = vsub.f32 1.0, %v638_v39 }
 0x784   :  { %v640_v42 = vmul.f32 %v3095_v38, %v639_v40 }
 0x786   :  { %v641_v43 = vadd.f32 %v3095_v38, %v640_v42 }
 0x788   :  { %v645_v49 = vsel %vm644_vm12, %v3095_v38, %v641_v43 }
 0x789   :  { %v650_v53 = vsel %vm647_vm13, %v649_v50, %v645_v49 }
 0x78a   :  { %v664_v5 = vsub.f32 1.0, %v650_v53 }
 0x7ce   :  { %v655_v51 = vpop.permute.xlu1 %654 }
 0x7cf   :  { %v657_v54 = vmul.f32 %v655_v51, %v650_v53 }
 0x7d1   :  { %659 = vrot.lane.b32.xlu0 %v657_v54, %s3428_s6 }
 0x7f4   :  { %v598_v41 = vpop.permute.xlu1 %597 }
 0x7f5   :  { %v600_v55 = vadd.f32 %v598_v41, %v544_v8  ;;  %v670_v8 = vmul.f32 %v650_v53, %v3669_v61 }
 0x7f7   :  { %3096 = vtanh.f32 %v600_v55 }
 0x7fd   :  { %v3097_v57 = vpop.eup %3096 }
 0x7fe   :  { %604 = vrot.lane.b32.xlu0 %v3097_v57, %s3433_s5 }
 0x843   :  { %v660_v58 = vpop.permute.xlu0 %659 }
 0x844   :  { %v662_v59 = vadd.f32 %v660_v58, %v611_v25 }
 0x846   :  { %3098 = vtanh.f32 %v662_v59 }
 0x84c   :  { %v3099_v60 = vpop.eup %3098 }
 0x84d   :  { %666 = vrot.lane.b32.xlu2 %v3099_v60, %s3433_s5 }
 0x870   :  { %v605_v46 = vpop.permute.xlu0 %604 }
 0x871   :  { %v607_v63 = vmul.f32 %v605_v46, %v602_v62 }
 0x873   :  { %v3698_v3 = vadd.f32 %v608_v52, %v607_v63 }
 0x875   :  { %699 = vrot.lane.b32.xlu2 %v3698_v3, %s3433_s5 }
 0x8a7   :  { %v667_v7 = vpop.permute.xlu2 %666 }
 0x8a8   :  { %v669_v9 = vmul.f32 %v667_v7, %v664_v5 }
 0x8aa   :  { %v3703_v10 = vadd.f32 %v670_v8, %v669_v9 }
 0x8ac   :  { %673 = vrot.lane.b32.xlu1 %v3703_v10, %s3433_s5 }
 0x8cf   :  { %v700_v11 = vpop.permute.xlu2 %699 }
 0x8d0   :  { %2957 = vmatmul.msk.f32.vlgmr.msra.gmra.mxu3 %vm141_vm4, %v700_v11 }
 0x8d1   :  { %1148 = vmatpush.msra.mxu3 %v3564_v33 }
 0x8d3   :  { %1149 = vmatpush.msra.mxu3 %v3566_v34 }
 0x8d5   :  { %1150 = vmatpush.msra.mxu3 %v3570_v35 }
 0x8d7   :  { %1151 = vmatpush.msra.mxu3 %v3576_v36 }
 0x91e   :  { %v674_v56 = vpop.permute.xlu1 %673 }
 0x91f   :  { %2956 = vmatmul.msk.f32.vlgmr.msra.gmra.mxu2 %vm141_vm4, %v674_v56  ;;  %2959 = vmatmul.msk.f32.vlgmr.msrb.gmra.mxu0 %vm141_vm4, %v674_v56 }
 0x920   :  { %1083 = vmatpush.msra.mxu2 %v3522_v0  ;;  %1174 = vmatpush.msrb.mxu0 %v3547_v26 }
 0x922   :  { %1084 = vmatpush.msra.mxu2 %v3524_v1  ;;  %1175 = vmatpush.msrb.mxu0 %v3549_v27 }
 0x924   :  { %1085 = vmatpush.msra.mxu2 %v3527_v2  ;;  %1176 = vmatpush.msrb.mxu0 %v3554_v31 }
 0x926   :  { %1086 = vmatpush.msra.mxu2 %v3535_v4  ;;  %1177 = vmatpush.msrb.mxu0 %v3556_v32 }
 0x953   :  { %v720_v61 = vpop.f32.mrf.mxu3 }
 0x954   :  { %v743_v12 = vadd.f32 %v720_v61, %v3612_v44 }
 0x956   :  { %745 = vrot.lane.b32.xlu1 %v743_v12, %s3428_s6 }
 0x99c   :  { %v782_v13 = vpop.f32.mrf.mxu0 }
 0x99d   :  { %v805_v26 = vadd.f32 %v782_v13, %v3542_v6  ;;  %v785_v38 = vadd.f32 %v782_v13, %v764_v37 }
 0x99f   :  { %807 = vrot.lane.b32.xlu0 %v805_v26, %s3428_s6  ;;  %v2960_v39 = vmul.f32 -1.442695, %v785_v38 }
 0x9a2   :  { %v694_v14 = vpop.f32.mrf.mxu2 }
 0x9a3   :  { %v697_v27 = vadd.f32 %v3621_v47, %v694_v14 }
 0x9a5   :  { %v723_v15 = vadd.f32 %v720_v61, %v697_v27 }
 0x9a7   :  { %v2958_v16 = vmul.f32 -1.442695, %v723_v15 }
 0x9a9   :  { %3100 = vpow2.f32 %v2958_v16 }
 0x9af   :  { %v3101_v31 = vpop.eup %3100 }
 0x9b0   :  { %v727_v17 = vadd.f32 1.0, %v3101_v31 }
 0x9b2   :  { %3102 = vrcp.f32 %v727_v17  ;;  %v739_v22 = vand.u32 2147483648, %v727_v17  ;;  %vm733_vm15 = vweird.f32 %v727_v17  ;;  %v737_v23 = vand.u32 2147483647, %v727_v17 }
 0x9b3   :  { %3104 = vpow2.f32 %v2960_v39 }
 0x9b4   :  { %v740_v25 = vor.u32 1.1754944e-38, %v739_v22  ;;  %vm738_vm1 = vcmp.eq.f32.partialorder %v737_v23, 8.507059e+37 }
 0x9b8   :  { %v3103_v32 = vpop.eup %3102 }
 0x9b9   :  { %v729_v18 = vmul.f32 %v3103_v32, %v727_v17  ;;  %vm734_vm14 = vweird.f32 %v3103_v32  ;;  %v3105_v40 = vpop.eup %3104 }
 0x9ba   :  { %vm735_vm0 = vmor %vm733_vm15, %vm734_vm14  ;;  %v789_v42 = vadd.f32 1.0, %v3105_v40 }
 0x9bb   :  { %v730_v19 = vsub.f32 1.0, %v729_v18 }
 0x9bc   :  { %3106 = vrcp.f32 %v789_v42  ;;  %v801_v51 = vand.u32 2147483648, %v789_v42  ;;  %vm795_vm3 = vweird.f32 %v789_v42  ;;  %v799_v53 = vand.u32 2147483647, %v789_v42 }
 0x9bd   :  { %v731_v20 = vmul.f32 %v3103_v32, %v730_v19 }
 0x9be   :  { %v802_v41 = vor.u32 1.1754944e-38, %v801_v51  ;;  %vm800_vm6 = vcmp.eq.f32.partialorder %v799_v53, 8.507059e+37 }
 0x9bf   :  { %v732_v21 = vadd.f32 %v3103_v32, %v731_v20  ;;  %v917_v20 = vld [vmem:[#allocation2 + $0x14] sm:$0xf] }
 0x9c1   :  { %v736_v24 = vsel %vm735_vm0, %v3103_v32, %v732_v21 }
 0x9c2   :  { %v741_v29 = vsel %vm738_vm1, %v740_v25, %v736_v24  ;;  %v3107_v43 = vpop.eup %3106 }
 0x9c3   :  { %v791_v45 = vmul.f32 %v3107_v43, %v789_v42  ;;  %vm796_vm2 = vweird.f32 %v3107_v43  ;;  %v755_v5 = vsub.f32 1.0, %v741_v29  ;;  %v761_v8 = vmul.f32 %v741_v29, %v3698_v3 }
 0x9c4   :  { %vm797_vm5 = vmor %vm795_vm3, %vm796_vm2 }
 0x9c5   :  { %v792_v48 = vsub.f32 1.0, %v791_v45 }
 0x9c7   :  { %v793_v49 = vmul.f32 %v3107_v43, %v792_v48 }
 0x9c8   :  { %v746_v28 = vpop.permute.xlu1 %745 }
 0x9c9   :  { %v748_v30 = vmul.f32 %v746_v28, %v741_v29  ;;  %v794_v50 = vadd.f32 %v3107_v43, %v793_v49 }
 0x9cb   :  { %750 = vrot.lane.b32.xlu0 %v748_v30, %s3428_s6  ;;  %v798_v54 = vsel %vm797_vm5, %v3107_v43, %v794_v50 }
 0x9cc   :  { %v803_v57 = vsel %vm800_vm6, %v802_v41, %v798_v54 }
 0x9cd   :  { %v817_v56 = vsub.f32 1.0, %v803_v57  ;;  %v823_v12 = vmul.f32 %v803_v57, %v3703_v10 }
 0xa11   :  { %v808_v55 = vpop.permute.xlu0 %807 }
 0xa12   :  { %v810_v58 = vmul.f32 %v808_v55, %v803_v57 }
 0xa14   :  { %812 = vrot.lane.b32.xlu2 %v810_v58, %s3428_s6 }
 0xa3d   :  { %v751_v59 = vpop.permute.xlu0 %750 }
 0xa3e   :  { %v753_v60 = vadd.f32 %v751_v59, %v697_v27 }
 0xa40   :  { %3108 = vtanh.f32 %v753_v60 }
 0xa46   :  { %v3109_v62 = vpop.eup %3108 }
 0xa47   :  { %757 = vrot.lane.b32.xlu2 %v3109_v62, %s3433_s5 }
 0xa6e   :  { %v813_v46 = vpop.permute.xlu2 %812 }
 0xa6f   :  { %v815_v52 = vadd.f32 %v813_v46, %v764_v37 }
 0xa71   :  { %3110 = vtanh.f32 %v815_v52 }
 0xa77   :  { %v3111_v63 = vpop.eup %3110 }
 0xa78   :  { %819 = vrot.lane.b32.xlu1 %v3111_v63, %s3433_s5 }
 0xaa1   :  { %v758_v7 = vpop.permute.xlu2 %757 }
 0xaa2   :  { %v760_v9 = vmul.f32 %v758_v7, %v755_v5 }
 0xaa4   :  { %v3732_v11 = vadd.f32 %v761_v8, %v760_v9 }
 0xaa6   :  { %852 = vrot.lane.b32.xlu1 %v3732_v11, %s3433_s5 }
 0xaea   :  { %v820_v61 = vpop.permute.xlu1 %819 }
 0xaeb   :  { %v822_v13 = vmul.f32 %v820_v61, %v817_v56 }
 0xaed   :  { %v3737_v26 = vadd.f32 %v823_v12, %v822_v13  ;;  %v3774_v13 = vld [vmem:[#allocation10 + $0x18] sm:$0xff] }
 0xaef   :  { %826 = vrot.lane.b32.xlu0 %v3737_v26, %s3433_s5 }
 0xb18   :  { %v853_v14 = vpop.permute.xlu1 %852 }
 0xb19   :  { %2962 = vmatmul.msk.f32.vlgmr.msrb.gmra.mxu2 %vm141_vm4, %v853_v14  ;;  %v3777_v14 = vld [vmem:[#allocation10 + $0x10] sm:$0xff] }
 0xb1a   :  { %1260 = vmatpush.msrb.mxu2 %v3522_v0 }
 0xb1c   :  { %1261 = vmatpush.msrb.mxu2 %v3524_v1 }
 0xb1e   :  { %1262 = vmatpush.msrb.mxu2 %v3527_v2 }
 0xb20   :  { %1263 = vmatpush.msrb.mxu2 %v3535_v4 }
 0xb61   :  { %v827_v3 = vpop.permute.xlu0 %826 }
 0xb62   :  { %2961 = vmatmul.msk.f32.vlgmr.msrb.gmra.mxu1 %vm141_vm4, %v827_v3  ;;  %2964 = vmatmul.msk.f32.vlgmr.msrb.gmra.mxu3 %vm141_vm4, %v827_v3  ;;  %v3783_v3 = vld [vmem:[#allocation10] sm:$0xff] }
 0xb63   :  { %1325 = vmatpush.msrb.mxu3 %v3564_v33 }
 0xb65   :  { %1326 = vmatpush.msrb.mxu3 %v3566_v34 }
 0xb67   :  { %1327 = vmatpush.msrb.mxu3 %v3570_v35 }
 0xb69   :  { %1328 = vmatpush.msrb.mxu3 %v3576_v36 }
 0xb9c   :  { %v873_v0 = vpop.f32.mrf.mxu2 }
 0xb9d   :  { %v896_v1 = vadd.f32 %v873_v0, %v3612_v44 }
 0xb9f   :  { %898 = vrot.lane.b32.xlu0 %v896_v1, %s3428_s6 }
 0xbdf   :  { %v847_v2 = vpop.f32.mrf.mxu1 }
 0xbe0   :  { %v850_v4 = vadd.f32 %v3621_v47, %v847_v2 }
 0xbe2   :  { %v876_v10 = vadd.f32 %v873_v0, %v850_v4 }
 0xbe4   :  { %v2963_v27 = vmul.f32 -1.442695, %v876_v10 }
 0xbe5   :  { %v935_v15 = vpop.f32.mrf.mxu3 }
 0xbe6   :  { %v958_v16 = vadd.f32 %v935_v15, %v3542_v6  ;;  %3112 = vpow2.f32 %v2963_v27  ;;  %v938_v23 = vadd.f32 %v935_v15, %v917_v20 }
 0xbe8   :  { %960 = vrot.lane.b32.xlu2 %v958_v16, %s3428_s6  ;;  %v2965_v29 = vmul.f32 -1.442695, %v938_v23 }
 0xbec   :  { %v3113_v33 = vpop.eup %3112 }
 0xbed   :  { %v880_v34 = vadd.f32 1.0, %v3113_v33 }
 0xbef   :  { %3114 = vrcp.f32 %v880_v34  ;;  %v892_v18 = vand.u32 2147483648, %v880_v34  ;;  %vm886_vm8 = vweird.f32 %v880_v34  ;;  %v890_v19 = vand.u32 2147483647, %v880_v34 }
 0xbf0   :  { %3116 = vpow2.f32 %v2965_v29 }
 0xbf1   :  { %v893_v22 = vor.u32 1.1754944e-38, %v892_v18  ;;  %vm891_vm10 = vcmp.eq.f32.partialorder %v890_v19, 8.507059e+37 }
 0xbf5   :  { %v3115_v35 = vpop.eup %3114 }
 0xbf6   :  { %v882_v36 = vmul.f32 %v3115_v35, %v880_v34  ;;  %vm887_vm7 = vweird.f32 %v3115_v35  ;;  %v3117_v30 = vpop.eup %3116 }
 0xbf7   :  { %vm888_vm9 = vmor %vm886_vm8, %vm887_vm7  ;;  %v942_v37 = vadd.f32 1.0, %v3117_v30  ;;  %vm1224_vm8 = vcmask 130048  }
 0xbf8   :  { %v883_v31 = vsub.f32 1.0, %v882_v36 }
 0xbf9   :  { %3118 = vrcp.f32 %v942_v37  ;;  %v954_v45 = vand.u32 2147483648, %v942_v37  ;;  %vm948_vm12 = vweird.f32 %v942_v37  ;;  %v952_v48 = vand.u32 2147483647, %v942_v37 }
 0xbfa   :  { %v884_v17 = vmul.f32 %v3115_v35, %v883_v31 }
 0xbfb   :  { %v955_v50 = vor.u32 1.1754944e-38, %v954_v45  ;;  %vm953_vm14 = vcmp.eq.f32.partialorder %v952_v48, 8.507059e+37 }
 0xbfc   :  { %v885_v32 = vadd.f32 %v3115_v35, %v884_v17 }
 0xbfe   :  { %v889_v21 = vsel %vm888_vm9, %v3115_v35, %v885_v32 }
 0xbff   :  { %v894_v25 = vsel %vm891_vm10, %v893_v22, %v889_v21  ;;  %v3119_v38 = vpop.eup %3118 }
 0xc00   :  { %v944_v39 = vmul.f32 %v3119_v38, %v942_v37  ;;  %vm949_vm11 = vweird.f32 %v3119_v38  ;;  %v908_v62 = vsub.f32 1.0, %v894_v25  ;;  %v914_v52 = vmul.f32 %v894_v25, %v3732_v11 }
 0xc01   :  { %vm950_vm13 = vmor %vm948_vm12, %vm949_vm11 }
 0xc02   :  { %v945_v40 = vsub.f32 1.0, %v944_v39 }
 0xc04   :  { %v946_v42 = vmul.f32 %v3119_v38, %v945_v40 }
 0xc06   :  { %v947_v43 = vadd.f32 %v3119_v38, %v946_v42 }
 0xc08   :  { %v951_v49 = vsel %vm950_vm13, %v3119_v38, %v947_v43 }
 0xc09   :  { %v956_v51 = vsel %vm953_vm14, %v955_v50, %v951_v49 }
 0xc0a   :  { %v970_v7 = vsub.f32 1.0, %v956_v51  ;;  %v976_v9 = vmul.f32 %v956_v51, %v3737_v26  ;;  %v3780_v26 = vld [vmem:[#allocation10 + $0x8] sm:$0xff] }
 0xc11   :  { %v899_v24 = vpop.permute.xlu0 %898 }
 0xc12   :  { %v901_v28 = vmul.f32 %v899_v24, %v894_v25  ;;  %v1070_v24 = vld [vmem:[#allocation2 + $0x18] sm:$0xf] }
 0xc14   :  { %903 = vrot.lane.b32.xlu2 %v901_v28, %s3428_s6 }
 0xc42   :  { %v961_v53 = vpop.permute.xlu2 %960 }
 0xc43   :  { %v963_v54 = vmul.f32 %v961_v53, %v956_v51 }
 0xc45   :  { %965 = vrot.lane.b32.xlu1 %v963_v54, %s3428_s6 }
 0xc6e   :  { %v904_v41 = vpop.permute.xlu2 %903 }
 0xc6f   :  { %v906_v55 = vadd.f32 %v904_v41, %v850_v4 }
 0xc71   :  { %3120 = vtanh.f32 %v906_v55 }
 0xc77   :  { %v3121_v57 = vpop.eup %3120 }
 0xc78   :  { %910 = vrot.lane.b32.xlu1 %v3121_v57, %s3433_s5 }
 0xcb7   :  { %v966_v58 = vpop.permute.xlu1 %965 }
 0xcb8   :  { %v968_v59 = vadd.f32 %v966_v58, %v917_v20 }
 0xcba   :  { %3122 = vtanh.f32 %v968_v59 }
 0xcc0   :  { %v3123_v60 = vpop.eup %3122 }
 0xcc1   :  { %972 = vrot.lane.b32.xlu0 %v3123_v60, %s3433_s5 }
 0xcea   :  { %v911_v46 = vpop.permute.xlu1 %910 }
 0xceb   :  { %v913_v63 = vmul.f32 %v911_v46, %v908_v62 }
 0xced   :  { %v3762_v5 = vadd.f32 %v914_v52, %v913_v63 }
 0xcef   :  { %1005 = vrot.lane.b32.xlu0 %v3762_v5, %s3433_s5 }
 0xd33   :  { %v973_v8 = vpop.permute.xlu0 %972 }
 0xd34   :  { %v975_v56 = vmul.f32 %v973_v8, %v970_v7 }
 0xd36   :  { %v3767_v61 = vadd.f32 %v976_v9, %v975_v56 }
 0xd38   :  { %979 = vrot.lane.b32.xlu2 %v3767_v61, %s3433_s5 }
 0xd61   :  { %v1006_v12 = vpop.permute.xlu0 %1005 }
 0xd62   :  { %2967 = vmatmul.msk.f32.vlgmr.msra.gmra.mxu1 %vm141_vm4, %v1006_v12 }
 0xd92   :  { %v980_v11 = vpop.permute.xlu2 %979 }
 0xd93   :  { %2966 = vmatmul.msk.f32.vlgmr.msra.gmra.mxu0 %vm141_vm4, %v980_v11  ;;  %2969 = vmatmul.msk.f32.vlgmr.msra.gmra.mxu2 %vm141_vm4, %v980_v11 }
 0xd94   :  { %1351 = vmatpush.msra.mxu0 %v3774_v13 }
 0xd96   :  { %1352 = vmatpush.msra.mxu0 %v3777_v14 }
 0xd98   :  { %1353 = vmatpush.msra.mxu0 %v3780_v26 }
 0xd9a   :  { %1354 = vmatpush.msra.mxu0 %v3783_v3 }
 0xddf   :  { %v1026_v0 = vpop.f32.mrf.mxu1 }
 0xde0   :  { %v1049_v1 = vadd.f32 %v1026_v0, %v3612_v44 }
 0xde2   :  { %1051 = vrot.lane.b32.xlu2 %v1049_v1, %s3428_s6  ;;  %v3812_v1 = vld [vmem:[#allocation8 + $0x8] sm:$0xff] }
 0xe10   :  { %v1000_v2 = vpop.f32.mrf.mxu0 }
 0xe11   :  { %v1003_v4 = vadd.f32 %v3621_v47, %v1000_v2  ;;  %v3821_v2 = vld [vmem:[%s4333_s3 + $0x8] sm:$0xff] }
 0xe12   :  { %1242 = vmatpush.msrb.mxu1 %v3821_v2  ;;  %1457 = vmatpush.msra.mxu2 %v3821_v2 }
 0xe13   :  { %v1029_v10 = vadd.f32 %v1026_v0, %v1003_v4  ;;  %v3809_v0 = vld [vmem:[#allocation8 + $0x10] sm:$0xff] }
 0xe15   :  { %v2968_v27 = vmul.f32 -1.442695, %v1029_v10  ;;  %v3829_v10 = vld [vmem:[#allocation5] sm:$0xf] }
 0xe16   :  { %v1088_v15 = vpop.f32.mrf.mxu2 }
 0xe17   :  { %3124 = vpow2.f32 %v2968_v27  ;;  %v1111_v16 = vadd.f32 %v1088_v15, %v3542_v6  ;;  %v1091_v25 = vadd.f32 %v1088_v15, %v1070_v24  ;;  %v3838_v15 = vld [vmem:[#allocation7 + $0x18] sm:$0xff] }
 0xe19   :  { %1113 = vrot.lane.b32.xlu1 %v1111_v16, %s3428_s6  ;;  %v2970_v28 = vmul.f32 -1.442695, %v1091_v25  ;;  %v3841_v16 = vld [vmem:[#allocation7 + $0x10] sm:$0xff] }
 0xe1d   :  { %v3125_v33 = vpop.eup %3124 }
 0xe1e   :  { %v1033_v34 = vadd.f32 1.0, %v3125_v33  ;;  %v3844_v33 = vld [vmem:[#allocation7 + $0x8] sm:$0xff] }
 0xe20   :  { %3126 = vrcp.f32 %v1033_v34  ;;  %v1045_v18 = vand.u32 2147483648, %v1033_v34  ;;  %vm1039_vm0 = vweird.f32 %v1033_v34  ;;  %v1043_v47 = vand.u32 2147483647, %v1033_v34 }
 0xe21   :  { %3128 = vpow2.f32 %v2970_v28 }
 0xe22   :  { %v1046_v20 = vor.u32 1.1754944e-38, %v1045_v18  ;;  %vm1044_vm2 = vcmp.eq.f32.partialorder %v1043_v47, 8.507059e+37 }
 0xe26   :  { %v3127_v35 = vpop.eup %3126 }
 0xe27   :  { %v1035_v36 = vmul.f32 %v3127_v35, %v1033_v34  ;;  %vm1040_vm15 = vweird.f32 %v3127_v35  ;;  %v3129_v29 = vpop.eup %3128  ;;  %v3847_v34 = vld [vmem:[#allocation7] sm:$0xff] }
 0xe28   :  { %vm1041_vm1 = vmor %vm1039_vm0, %vm1040_vm15  ;;  %v1095_v30 = vadd.f32 1.0, %v3129_v29 }
 0xe29   :  { %v1036_v31 = vsub.f32 1.0, %v1035_v36 }
 0xe2a   :  { %3130 = vrcp.f32 %v1095_v30  ;;  %v1107_v43 = vand.u32 2147483648, %v1095_v30  ;;  %vm1101_vm5 = vweird.f32 %v1095_v30  ;;  %v1105_v45 = vand.u32 2147483647, %v1095_v30 }
 0xe2b   :  { %v1037_v17 = vmul.f32 %v3127_v35, %v1036_v31 }
 0xe2c   :  { %v1108_v49 = vor.u32 1.1754944e-38, %v1107_v43  ;;  %vm1106_vm7 = vcmp.eq.f32.partialorder %v1105_v45, 8.507059e+37  ;;  %v1223_v45 = vld [vmem:[%s4331_s1] sm:$0xf] }
 0xe2d   :  { %v1038_v32 = vadd.f32 %v3127_v35, %v1037_v17 }
 0xe2f   :  { %v1042_v19 = vsel %vm1041_vm1, %v3127_v35, %v1038_v32  ;;  %v3855_v32 = vld [vmem:[%s4338_s8] ss:$0 sm:$0xff] }
 0xe30   :  { %v1047_v21 = vsel %vm1044_vm2, %v1046_v20, %v1042_v19  ;;  %v3131_v37 = vpop.eup %3130 }
 0xe31   :  { %v1097_v38 = vmul.f32 %v3131_v37, %v1095_v30  ;;  %vm1102_vm3 = vweird.f32 %v3131_v37  ;;  %v1061_v60 = vsub.f32 1.0, %v1047_v21  ;;  %v1067_v46 = vmul.f32 %v1047_v21, %v3762_v5  ;;  %v3806_v5 = vld [vmem:[#allocation8 + $0x18] sm:$0xff] }
 0xe32   :  { %vm1103_vm6 = vmor %vm1101_vm5, %vm1102_vm3 }
 0xe33   :  { %v1098_v39 = vsub.f32 1.0, %v1097_v38 }
 0xe35   :  { %v1099_v40 = vmul.f32 %v3131_v37, %v1098_v39 }
 0xe37   :  { %v1100_v42 = vadd.f32 %v3131_v37, %v1099_v40 }
 0xe39   :  { %v1104_v48 = vsel %vm1103_vm6, %v3131_v37, %v1100_v42 }
 0xe3a   :  { %v1109_v51 = vsel %vm1106_vm7, %v1108_v49, %v1104_v48 }
 0xe3b   :  { %v1123_v7 = vsub.f32 1.0, %v1109_v51  ;;  %v1129_v9 = vmul.f32 %v1109_v51, %v3767_v61  ;;  %v3815_v61 = vld [vmem:[#allocation8] sm:$0xff] }
 0xe3c   :  { %v1052_v22 = vpop.permute.xlu2 %1051 }
 0xe3d   :  { %v1054_v23 = vmul.f32 %v1052_v22, %v1047_v21 }
 0xe3f   :  { %1056 = vrot.lane.b32.xlu1 %v1054_v23, %s3428_s6 }
 0xe8b   :  { %v1114_v50 = vpop.permute.xlu1 %1113 }
 0xe8c   :  { %v1116_v53 = vmul.f32 %v1114_v50, %v1109_v51 }
 0xe8e   :  { %1118 = vrot.lane.b32.xlu0 %v1116_v53, %s3428_s6 }
 0xeb1   :  { %v1057_v54 = vpop.permute.xlu1 %1056 }
 0xeb2   :  { %v1059_v41 = vadd.f32 %v1057_v54, %v1003_v4  ;;  %v3826_v4 = vld [vmem:[%s4333_s3] sm:$0xff] }
 0xeb3   :  { %1243 = vmatpush.msrb.mxu1 %v3826_v4  ;;  %1458 = vmatpush.msra.mxu2 %v3826_v4 }
 0xeb4   :  { %3132 = vtanh.f32 %v1059_v41  ;;  %2974 = vmatmul.msk.f32.vlgmr.msrb.gmra.mxu1 %vm1224_vm8, %v3829_v10 }
 0xeba   :  { %v3133_v55 = vpop.eup %3132 }
 0xebb   :  { %1063 = vrot.lane.b32.xlu0 %v3133_v55, %s3433_s5 }
 0xf00   :  { %v1119_v57 = vpop.permute.xlu0 %1118 }
 0xf01   :  { %v1121_v58 = vadd.f32 %v1119_v57, %v1070_v24 }
 0xf03   :  { %3134 = vtanh.f32 %v1121_v58 }
 0xf09   :  { %v3135_v59 = vpop.eup %3134 }
 0xf0a   :  { %1125 = vrot.lane.b32.xlu2 %v3135_v59, %s3433_s5 }
 0xf2d   :  { %v1064_v62 = vpop.permute.xlu0 %1063 }
 0xf2e   :  { %v1066_v52 = vmul.f32 %v1064_v62, %v1061_v60 }
 0xf30   :  { %v3796_v63 = vadd.f32 %v1067_v46, %v1066_v52 }
 0xf31   :  { %v1245_v48 = vpop.f32.mrf.mxu1 }
 0xf32   :  { %1158 = vrot.lane.b32.xlu2 %v3796_v63, %s3433_s5  ;;  %v1246_v49 = vadd.f32 %v1245_v48, %v1223_v45 }
 0xf64   :  { %v1126_v8 = vpop.permute.xlu2 %1125 }
 0xf65   :  { %v1128_v56 = vmul.f32 %v1126_v8, %v1123_v7 }
 0xf67   :  { %v3801_v12 = vadd.f32 %v1129_v9, %v1128_v56 }
 0xf69   :  { %1132 = vrot.lane.b32.xlu1 %v3801_v12, %s3433_s5 }
 0xf8c   :  { %v1159_v11 = vpop.permute.xlu2 %1158 }
 0xf8d   :  { %2972 = vmatmul.msk.f32.vlgmr.msrb.gmra.mxu0 %vm141_vm4, %v1159_v11 }
 0xf8e   :  { %1540 = vmatpush.msrb.mxu0 %v3806_v5 }
 0xf90   :  { %1541 = vmatpush.msrb.mxu0 %v3809_v0 }
 0xf92   :  { %1542 = vmatpush.msrb.mxu0 %v3812_v1 }
 0xf94   :  { %1543 = vmatpush.msrb.mxu0 %v3815_v61 }
 0xfdb   :  { %v1133_v27 = vpop.permute.xlu1 %1132 }
 0xfdc   :  { %2971 = vmatmul.msk.f32.vlgmr.msra.gmra.mxu3 %vm141_vm4, %v1133_v27  ;;  %2975 = vmatmul.msk.f32.vlgmr.msrb.gmra.mxu2 %vm141_vm4, %v1133_v27 }
 0xfdd   :  { %1475 = vmatpush.msra.mxu3 %v3838_v15 }
 0xfdf   :  { %1476 = vmatpush.msra.mxu3 %v3841_v16 }
 0xfe1   :  { %1477 = vmatpush.msra.mxu3 %v3844_v33 }
 0xfe3   :  { %1478 = vmatpush.msra.mxu3 %v3847_v34 }
0x100a   :  { %v1179_v35 = vpop.f32.mrf.mxu0 }
0x100b   :  { %v1202_v36 = vadd.f32 %v1179_v35, %v3612_v44 }
0x100d   :  { %1204 = vrot.lane.b32.xlu0 %v1202_v36, %s3428_s6 }
0x105f   :  { %v1153_v31 = vpop.f32.mrf.mxu3  ;;  %v1265_v17 = vpop.f32.mrf.mxu2 }
0x1060   :  { %v1156_v18 = vadd.f32 %v3855_v32, %v1153_v31  ;;  %v1288_v47 = vadd.f32 %v1265_v17, %v3542_v6  ;;  %v1268_v50 = vadd.f32 %v1265_v17, %v1246_v49 }
0x1062   :  { %v1182_v19 = vadd.f32 %v1179_v35, %v1156_v18  ;;  %1290 = vrot.lane.b32.xlu1 %v1288_v47, %s3428_s6  ;;  %v2976_v51 = vmul.f32 -1.442695, %v1268_v50 }
0x1064   :  { %v2973_v20 = vmul.f32 -1.442695, %v1182_v19 }
0x1066   :  { %3136 = vpow2.f32 %v2973_v20 }
0x106c   :  { %v3137_v21 = vpop.eup %3136 }
0x106d   :  { %v1186_v22 = vadd.f32 1.0, %v3137_v21 }
0x106f   :  { %3138 = vrcp.f32 %v1186_v22  ;;  %v1198_v28 = vand.u32 2147483648, %v1186_v22  ;;  %v1196_v30 = vand.u32 2147483647, %v1186_v22  ;;  %vm1192_vm10 = vweird.f32 %v1186_v22 }
0x1070   :  { %3140 = vpow2.f32 %v2976_v51 }
0x1071   :  { %v1199_v38 = vor.u32 1.1754944e-38, %v1198_v28  ;;  %vm1197_vm12 = vcmp.eq.f32.partialorder %v1196_v30, 8.507059e+37 }
0x1075   :  { %v3139_v23 = vpop.eup %3138 }
0x1076   :  { %v1188_v24 = vmul.f32 %v3139_v23, %v1186_v22  ;;  %vm1193_vm9 = vweird.f32 %v3139_v23  ;;  %v3141_v53 = vpop.eup %3140 }
0x1077   :  { %vm1194_vm11 = vmor %vm1192_vm10, %vm1193_vm9  ;;  %v1272_v54 = vadd.f32 1.0, %v3141_v53 }
0x1078   :  { %v1189_v25 = vsub.f32 1.0, %v1188_v24 }
0x1079   :  { %3142 = vrcp.f32 %v1272_v54  ;;  %v1284_v60 = vand.u32 2147483648, %v1272_v54  ;;  %vm1278_vm14 = vweird.f32 %v1272_v54  ;;  %v1282_v62 = vand.u32 2147483647, %v1272_v54 }
0x107a   :  { %v1190_v29 = vmul.f32 %v3139_v23, %v1189_v25 }
0x107b   :  { %v1285_v52 = vor.u32 1.1754944e-38, %v1284_v60  ;;  %vm1283_vm0 = vcmp.eq.f32.partialorder %v1282_v62, 8.507059e+37 }
0x107c   :  { %v1191_v37 = vadd.f32 %v3139_v23, %v1190_v29 }
0x107e   :  { %v1195_v39 = vsel %vm1194_vm11, %v3139_v23, %v1191_v37 }
0x107f   :  { %v1205_v40 = vpop.permute.xlu0 %1204  ;;  %v1200_v42 = vsel %vm1197_vm12, %v1199_v38, %v1195_v39  ;;  %v3143_v41 = vpop.eup %3142 }
0x1080   :  { %v1207_v43 = vmul.f32 %v1205_v40, %v1200_v42  ;;  %v1274_v55 = vmul.f32 %v3143_v41, %v1272_v54  ;;  %vm1279_vm13 = vweird.f32 %v3143_v41  ;;  %v1214_v17 = vsub.f32 1.0, %v1200_v42 }
0x1081   :  { %vm1280_vm15 = vmor %vm1278_vm14, %vm1279_vm13  ;;  %v1220_v19 = vmul.f32 %v1200_v42, %v3796_v63 }
0x1082   :  { %1209 = vrot.lane.b32.xlu2 %v1207_v43, %s3428_s6  ;;  %v1275_v57 = vsub.f32 1.0, %v1274_v55 }
0x1084   :  { %v1276_v58 = vmul.f32 %v3143_v41, %v1275_v57 }
0x1086   :  { %v1277_v59 = vadd.f32 %v3143_v41, %v1276_v58 }
0x1088   :  { %v1281_v46 = vsel %vm1280_vm15, %v3143_v41, %v1277_v59 }
0x1089   :  { %v1286_v8 = vsel %vm1283_vm0, %v1285_v52, %v1281_v46  ;;  %v3897_v46 = vld [vmem:[%s4340_s10 + $0x18] sm:$0xff]  ;;  %v3902_v52 = vld [vmem:[%s4340_s10 + $0x10] sm:$0xff] }
0x108a   :  { %v1306_v23 = vmul.f32 %v1286_v8, %v3801_v12  ;;  %1416 = vmatpush.msra.mxu1 %v3897_v46  ;;  %1626 = vmatpush.msrb.mxu2 %v3897_v46 }
0x108c   :  { %1417 = vmatpush.msra.mxu1 %v3902_v52  ;;  %1627 = vmatpush.msrb.mxu2 %v3902_v52 }
0x10d4   :  { %v1291_v7 = vpop.permute.xlu1 %1290 }
0x10d5   :  { %v1293_v9 = vmul.f32 %v1291_v7, %v1286_v8  ;;  %v3909_v7 = vld [vmem:[%s4340_s10 + $0x8] sm:$0xff] }
0x10d6   :  { %1418 = vmatpush.msra.mxu1 %v3909_v7  ;;  %1628 = vmatpush.msrb.mxu2 %v3909_v7 }
0x10d7   :  { %1295 = vrot.lane.b32.xlu0 %v1293_v9, %s3428_s6 }
0x10dc   :  { %v1210_v56 = vpop.permute.xlu2 %1209 }
0x10dd   :  { %v1212_v11 = vadd.f32 %v1210_v56, %v1156_v18  ;;  %v1300_v18 = vsub.f32 1.0, %v1286_v8  ;;  %v3917_v8 = vld [vmem:[%s4340_s10] sm:$0xff] }
0x10de   :  { %1419 = vmatpush.msra.mxu1 %v3917_v8  ;;  %1629 = vmatpush.msrb.mxu2 %v3917_v8 }
0x10df   :  { %3144 = vtanh.f32 %v1212_v11 }
0x10e0   :  { %1561 = vmatpush.msrb.mxu1 %v3774_v13 }
0x10e2   :  { %1562 = vmatpush.msrb.mxu1 %v3777_v14 }
0x10e4   :  { %1563 = vmatpush.msrb.mxu1 %v3780_v26 }
0x10e5   :  { %v3145_v27 = vpop.eup %3144 }
0x10e6   :  { %1216 = vrot.lane.b32.xlu1 %v3145_v27, %s3433_s5  ;;  %1564 = vmatpush.msrb.mxu1 %v3783_v3 }
0x1149   :  { %v1296_v35 = vpop.permute.xlu0 %1295 }
0x114a   :  { %v1298_v36 = vadd.f32 %v1296_v35, %v1246_v49 }
0x114c   :  { %3146 = vtanh.f32 %v1298_v36 }
0x1152   :  { %v3147_v31 = vpop.eup %3146 }
0x1153   :  { %1302 = vrot.lane.b32.xlu2 %v3147_v31, %s3433_s5 }
0x1158   :  { %v1217_v47 = vpop.permute.xlu1 %1216 }
0x1159   :  { %v1219_v20 = vmul.f32 %v1217_v47, %v1214_v17 }
0x115b   :  { %v3868_v21 = vadd.f32 %v1220_v19, %v1219_v20 }
0x115d   :  { %1335 = vrot.lane.b32.xlu0 %v3868_v21, %s3433_s5 }
0x11ad   :  { %v1303_v22 = vpop.permute.xlu2 %1302 }
0x11ae   :  { %v1305_v24 = vmul.f32 %v1303_v22, %v1300_v18 }
0x11b0   :  { %v3873_v25 = vadd.f32 %v1306_v23, %v1305_v24  ;;  %v2981_v24 = vld [vmem:[%s4331_s1 + $0x4] sm:$0xf] }
0x11b2   :  { %1309 = vrot.lane.b32.xlu1 %v3873_v25, %s3433_s5 }
0x11cf   :  { %v1336_v28 = vpop.permute.xlu0 %1335 }
0x11d0   :  { %2978 = vmatmul.msk.f32.vlgmr.msra.gmra.mxu0 %vm141_vm4, %v1336_v28 }
0x11d1   :  { %1682 = vmatpush.msra.mxu0 %v3838_v15 }
0x11d3   :  { %1683 = vmatpush.msra.mxu0 %v3841_v16 }
0x11d5   :  { %1684 = vmatpush.msra.mxu0 %v3844_v33 }
0x11d7   :  { %1685 = vmatpush.msra.mxu0 %v3847_v34 }
0x1224   :  { %v1310_v63 = vpop.permute.xlu1 %1309 }
0x1225   :  { %2977 = vmatmul.msk.f32.vlgmr.msrb.gmra.mxu3 %vm141_vm4, %v1310_v63 }
0x1226   :  { %1664 = vmatpush.msrb.mxu3 %v3821_v2 }
0x1228   :  { %1665 = vmatpush.msrb.mxu3 %v3826_v4 }
0x122d   :  { %2983 = vmatmul.msk.f32.vlgmr.msra.gmra.mxu3 %vm141_vm4, %v1310_v63 }
0x122e   :  { %1833 = vmatpush.msra.mxu3 %v3897_v46 }
0x1230   :  { %1834 = vmatpush.msra.mxu3 %v3902_v52 }
0x1232   :  { %1835 = vmatpush.msra.mxu3 %v3909_v7 }
0x1234   :  { %1836 = vmatpush.msra.mxu3 %v3917_v8 }
0x124d   :  { %v1356_v12 = vpop.f32.mrf.mxu0 }
0x124e   :  { %v1379_v29 = vadd.f32 %v1356_v12, %v3612_v44 }
0x1250   :  { %1381 = vrot.lane.b32.xlu2 %v1379_v29, %s3428_s6 }
0x12a8   :  { %v3888_v30 = vpop.f32.mrf.mxu3 }
0x12a9   :  { %v1333_v37 = vadd.f32 %v3855_v32, %v3888_v30 }
0x12aa   :  { %v1382_v55 = vpop.permute.xlu2 %1381 }
0x12ab   :  { %v1359_v38 = vadd.f32 %v1356_v12, %v1333_v37 }
0x12ad   :  { %v2979_v39 = vmul.f32 -1.442695, %v1359_v38 }
0x12af   :  { %3148 = vpow2.f32 %v2979_v39 }
0x12b0   :  { %v1480_v36 = vpop.f32.mrf.mxu3 }
0x12b1   :  { %v1503_v31 = vadd.f32 %v1480_v36, %v3542_v6 }
0x12b5   :  { %v3149_v40 = vpop.eup %3148 }
0x12b6   :  { %v1363_v42 = vadd.f32 1.0, %v3149_v40 }
0x12b8   :  { %3150 = vrcp.f32 %v1363_v42  ;;  %v1375_v49 = vand.u32 2147483648, %v1363_v42  ;;  %v1373_v51 = vand.u32 2147483647, %v1363_v42  ;;  %vm1369_vm2 = vweird.f32 %v1363_v42 }
0x12ba   :  { %v1376_v54 = vor.u32 1.1754944e-38, %v1375_v49  ;;  %vm1374_vm5 = vcmp.eq.f32.partialorder %v1373_v51, 8.507059e+37 }
0x12be   :  { %v3151_v43 = vpop.eup %3150 }
0x12bf   :  { %v1365_v45 = vmul.f32 %v3151_v43, %v1363_v42  ;;  %vm1370_vm1 = vweird.f32 %v3151_v43 }
0x12c0   :  { %vm1371_vm3 = vmor %vm1369_vm2, %vm1370_vm1 }
0x12c1   :  { %v1366_v48 = vsub.f32 1.0, %v1365_v45 }
0x12c3   :  { %v1367_v50 = vmul.f32 %v3151_v43, %v1366_v48 }
0x12c5   :  { %v1368_v53 = vadd.f32 %v3151_v43, %v1367_v50 }
0x12c7   :  { %v1372_v41 = vsel %vm1371_vm3, %v3151_v43, %v1368_v53 }
0x12c8   :  { %v1377_v57 = vsel %vm1374_vm5, %v1376_v54, %v1372_v41 }
0x12c9   :  { %v1384_v58 = vmul.f32 %v1382_v55, %v1377_v57  ;;  %v1391_v9 = vsub.f32 1.0, %v1377_v57  ;;  %v1397_v11 = vmul.f32 %v1377_v57, %v3868_v21  ;;  %v3953_v21 = vld [vmem:[%s4341_s11] ss:$0 sm:$0xff] }
0x12cb   :  { %1386 = vrot.lane.b32.xlu0 %v1384_v58, %s3428_s6 }
0x133d   :  { %v1387_v59 = vpop.permute.xlu0 %1386 }
0x133e   :  { %v1389_v60 = vadd.f32 %v1387_v59, %v1333_v37 }
0x1340   :  { %3152 = vtanh.f32 %v1389_v60 }
0x1346   :  { %v3153_v62 = vpop.eup %3152 }
0x1347   :  { %1393 = vrot.lane.b32.xlu1 %v3153_v62, %s3433_s5 }
0x13b9   :  { %v1394_v56 = vpop.permute.xlu1 %1393 }
0x13ba   :  { %v1396_v27 = vmul.f32 %v1394_v56, %v1391_v9 }
0x13bc   :  { %v3931_v35 = vadd.f32 %v1397_v11, %v1396_v27 }
0x13be   :  { %1400 = vrot.lane.b32.xlu2 %v3931_v35, %s3433_s5 }
0x13c6   :  { %1505 = vrot.lane.b32.xlu2 %v1503_v31, %s3428_s6 }
0x1418   :  { %v1401_v17 = vpop.permute.xlu2 %1400 }
0x1419   :  { %2980 = vmatmul.msk.f32.vlgmr.msra.gmra.mxu1 %vm141_vm4, %v1401_v17 }
0x141a   :  { %1747 = vmatpush.msra.mxu1 %v3806_v5 }
0x141c   :  { %1748 = vmatpush.msra.mxu1 %v3809_v0 }
0x141e   :  { %1749 = vmatpush.msra.mxu1 %v3812_v1 }
0x1420   :  { %1750 = vmatpush.msra.mxu1 %v3815_v61  ;;  %v1506_v50 = vpop.permute.xlu2 %1505 }
0x1421   :  { %2986 = vmatmul.msk.f32.vlgmr.msrb.gmra.mxu1 %vm141_vm4, %v1401_v17 }
0x1422   :  { %1889 = vmatpush.msrb.mxu1 %v3838_v15 }
0x1424   :  { %1890 = vmatpush.msrb.mxu1 %v3841_v16 }
0x1426   :  { %1891 = vmatpush.msrb.mxu1 %v3844_v33 }
0x1428   :  { %1892 = vmatpush.msrb.mxu1 %v3847_v34 }
0x1496   :  { %v1421_v47 = vpop.f32.mrf.mxu1 }
0x1497   :  { %1425 = vrot.lane.b32.xlu0 %v1421_v47, %s3433_s5 }
0x149e   :  { %v1566_v54 = vpop.f32.mrf.mxu1 }
0x149f   :  { %v1589_v41 = vadd.f32 %v1566_v54, %v3612_v44 }
0x1509   :  { %v1426_v19 = vpop.permute.xlu0 %1425 }
0x150a   :  { %v1428_v20 = vadd.f32 %v1426_v19, %v3888_v30 }
0x150c   :  { %1430 = vrot.lane.b32.xlu1 %v1428_v20, %s3434_s28 }
0x157e   :  { %v1431_v18 = vpop.permute.xlu1 %1430 }
0x157f   :  { %v1433_v22 = vadd.f32 %v1431_v18, %v3829_v10 }
0x1581   :  { %v3957_v23 = vadd.f32 %v3953_v21, %v1433_v22 }
0x1583   :  { %2982 = vmatmul.msk.f32.vlgmr.msra.gmra.mxu2 %vm1224_vm8, %v3957_v23 }
0x1584   :  { %1768 = vmatpush.msra.mxu2 %v3774_v13 }
0x1586   :  { %1769 = vmatpush.msra.mxu2 %v3777_v14 }
0x1588   :  { %1770 = vmatpush.msra.mxu2 %v3780_v26 }
0x158a   :  { %1771 = vmatpush.msra.mxu2 %v3783_v3 }
0x1606   :  { %v1460_v28 = vpop.f32.mrf.mxu2 }
0x1607   :  { %v1461_v10 = vadd.f32 %v2981_v24, %v1460_v28 }
0x1609   :  { %v1483_v63 = vadd.f32 %v1480_v36, %v1461_v10 }
0x160b   :  { %v2984_v12 = vmul.f32 -1.442695, %v1483_v63 }
0x160d   :  { %3154 = vpow2.f32 %v2984_v12 }
0x1613   :  { %v3155_v29 = vpop.eup %3154 }
0x1614   :  { %v1487_v30 = vadd.f32 1.0, %v3155_v29 }
0x1616   :  { %3156 = vrcp.f32 %v1487_v30  ;;  %v1499_v40 = vand.u32 2147483648, %v1487_v30  ;;  %v1497_v43 = vand.u32 2147483647, %v1487_v30  ;;  %vm1493_vm7 = vweird.f32 %v1487_v30 }
0x1618   :  { %v1500_v48 = vor.u32 1.1754944e-38, %v1499_v40  ;;  %vm1498_vm10 = vcmp.eq.f32.partialorder %v1497_v43, 8.507059e+37 }
0x161c   :  { %v3157_v37 = vpop.eup %3156 }
0x161d   :  { %v1489_v38 = vmul.f32 %v3157_v37, %v1487_v30  ;;  %vm1494_vm6 = vweird.f32 %v3157_v37 }
0x161e   :  { %vm1495_vm9 = vmor %vm1493_vm7, %vm1494_vm6 }
0x161f   :  { %v1490_v39 = vsub.f32 1.0, %v1489_v38 }
0x1621   :  { %v1491_v42 = vmul.f32 %v3157_v37, %v1490_v39 }
0x1623   :  { %v1492_v45 = vadd.f32 %v3157_v37, %v1491_v42 }
0x1625   :  { %v1496_v49 = vsel %vm1495_vm9, %v3157_v37, %v1492_v45 }
0x1626   :  { %v1501_v51 = vsel %vm1498_vm10, %v1500_v48, %v1496_v49 }
0x1627   :  { %v1508_v53 = vmul.f32 %v1506_v50, %v1501_v51  ;;  %v1515_v59 = vsub.f32 1.0, %v1501_v51  ;;  %v1521_v62 = vmul.f32 %v1501_v51, %v3873_v25 }
0x1629   :  { %1510 = vrot.lane.b32.xlu0 %v1508_v53, %s3428_s6 }
0x1631   :  { %1591 = vrot.lane.b32.xlu0 %v1589_v41, %s3428_s6 }
0x169b   :  { %v1511_v55 = vpop.permute.xlu0 %1510 }
0x169c   :  { %v1513_v57 = vadd.f32 %v1511_v55, %v1461_v10 }
0x169e   :  { %3158 = vtanh.f32 %v1513_v57 }
0x16a3   :  { %v1592_v29 = vpop.permute.xlu0 %1591 }
0x16a4   :  { %v3159_v58 = vpop.eup %3158 }
0x16a5   :  { %1517 = vrot.lane.b32.xlu1 %v3159_v58, %s3433_s5 }
0x1717   :  { %v1518_v60 = vpop.permute.xlu1 %1517 }
0x1718   :  { %v1520_v9 = vmul.f32 %v1518_v60, %v1515_v59  ;;  %v2989_v59 = vld [vmem:[%s4331_s1 + $0x8] sm:$0xf] }
0x171a   :  { %v3973_v56 = vadd.f32 %v1521_v62, %v1520_v9 }
0x171c   :  { %1524 = vrot.lane.b32.xlu2 %v3973_v56, %s3433_s5 }
0x1776   :  { %v1525_v11 = vpop.permute.xlu2 %1524 }
0x1777   :  { %2985 = vmatmul.msk.f32.vlgmr.msrb.gmra.mxu0 %vm141_vm4, %v1525_v11 }
0x1778   :  { %1871 = vmatpush.msrb.mxu0 %v3821_v2 }
0x177a   :  { %1872 = vmatpush.msrb.mxu0 %v3826_v4 }
0x177f   :  { %2991 = vmatmul.msk.f32.vlgmr.msra.gmra.mxu0 %vm141_vm4, %v1525_v11 }
0x1780   :  { %2040 = vmatpush.msra.mxu0 %v3897_v46 }
0x1782   :  { %2041 = vmatpush.msra.mxu0 %v3902_v52 }
0x1784   :  { %2042 = vmatpush.msra.mxu0 %v3909_v7 }
0x1786   :  { %2043 = vmatpush.msra.mxu0 %v3917_v8 }
0x17f4   :  { %v1545_v25 = vpop.f32.mrf.mxu0 }
0x17f5   :  { %v1548_v27 = vadd.f32 %v3855_v32, %v1545_v25 }
0x17f7   :  { %v1569_v36 = vadd.f32 %v1566_v54, %v1548_v27 }
0x17f9   :  { %v2987_v31 = vmul.f32 -1.442695, %v1569_v36 }
0x17fb   :  { %3160 = vpow2.f32 %v2987_v31 }
0x17fc   :  { %v1687_v50 = vpop.f32.mrf.mxu0 }
0x17fd   :  { %v1710_v51 = vadd.f32 %v1687_v50, %v3542_v6 }
0x1801   :  { %v3161_v17 = vpop.eup %3160 }
0x1802   :  { %v1573_v47 = vadd.f32 1.0, %v3161_v17 }
0x1804   :  { %3162 = vrcp.f32 %v1573_v47  ;;  %v1585_v22 = vand.u32 2147483648, %v1573_v47  ;;  %v1583_v28 = vand.u32 2147483647, %v1573_v47  ;;  %vm1579_vm12 = vweird.f32 %v1573_v47 }
0x1806   :  { %v1586_v63 = vor.u32 1.1754944e-38, %v1585_v22  ;;  %vm1584_vm14 = vcmp.eq.f32.partialorder %v1583_v28, 8.507059e+37 }
0x180a   :  { %v3163_v19 = vpop.eup %3162 }
0x180b   :  { %v1575_v20 = vmul.f32 %v3163_v19, %v1573_v47  ;;  %vm1580_vm11 = vweird.f32 %v3163_v19 }
0x180c   :  { %vm1581_vm13 = vmor %vm1579_vm12, %vm1580_vm11 }
0x180d   :  { %v1576_v18 = vsub.f32 1.0, %v1575_v20 }
0x180f   :  { %v1577_v24 = vmul.f32 %v3163_v19, %v1576_v18 }
0x1811   :  { %v1578_v10 = vadd.f32 %v3163_v19, %v1577_v24 }
0x1813   :  { %v1582_v12 = vsel %vm1581_vm13, %v3163_v19, %v1578_v10 }
0x1814   :  { %v1587_v30 = vsel %vm1584_vm14, %v1586_v63, %v1582_v12 }
0x1815   :  { %v1594_v37 = vmul.f32 %v1592_v29, %v1587_v30  ;;  %v1601_v42 = vsub.f32 1.0, %v1587_v30  ;;  %v1607_v45 = vmul.f32 %v1587_v30, %v3931_v35 }
0x1817   :  { %1596 = vrot.lane.b32.xlu1 %v1594_v37, %s3428_s6 }
0x1889   :  { %v1597_v38 = vpop.permute.xlu1 %1596 }
0x188a   :  { %v1599_v39 = vadd.f32 %v1597_v38, %v1548_v27 }
0x188c   :  { %3164 = vtanh.f32 %v1599_v39 }
0x1892   :  { %v3165_v40 = vpop.eup %3164 }
0x1893   :  { %1603 = vrot.lane.b32.xlu2 %v3165_v40, %s3433_s5 }
0x18ed   :  { %v1604_v43 = vpop.permute.xlu2 %1603 }
0x18ee   :  { %v1606_v48 = vmul.f32 %v1604_v43, %v1601_v42 }
0x18f0   :  { %v3989_v49 = vadd.f32 %v1607_v45, %v1606_v48 }
0x18f2   :  { %1610 = vrot.lane.b32.xlu0 %v3989_v49, %s3433_s5 }
0x18fa   :  { %1712 = vrot.lane.b32.xlu0 %v1710_v51, %s3428_s6 }
0x1964   :  { %v1611_v53 = vpop.permute.xlu0 %1610 }
0x1965   :  { %2988 = vmatmul.msk.f32.vlgmr.msrb.gmra.mxu2 %vm141_vm4, %v1611_v53 }
0x1966   :  { %1954 = vmatpush.msrb.mxu2 %v3806_v5 }
0x1968   :  { %1955 = vmatpush.msrb.mxu2 %v3809_v0 }
0x196a   :  { %1956 = vmatpush.msrb.mxu2 %v3812_v1 }
0x196c   :  { %1957 = vmatpush.msrb.mxu2 %v3815_v61  ;;  %v1713_v28 = vpop.permute.xlu0 %1712 }
0x196d   :  { %2994 = vmatmul.msk.f32.vlgmr.msra.gmra.mxu2 %vm141_vm4, %v1611_v53 }
0x196e   :  { %2096 = vmatpush.msra.mxu2 %v3838_v15 }
0x1970   :  { %2097 = vmatpush.msra.mxu2 %v3841_v16 }
0x1972   :  { %2098 = vmatpush.msra.mxu2 %v3844_v33 }
0x1974   :  { %2099 = vmatpush.msra.mxu2 %v3847_v34 }
0x19e8   :  { %v1631_v35 = vpop.f32.mrf.mxu2 }
0x19e9   :  { %1635 = vrot.lane.b32.xlu1 %v1631_v35, %s3433_s5 }
0x19f0   :  { %v1773_v12 = vpop.f32.mrf.mxu2 }
0x19f1   :  { %v1796_v29 = vadd.f32 %v1773_v12, %v3612_v44 }
0x1a5b   :  { %v1636_v54 = vpop.permute.xlu1 %1635 }
0x1a5c   :  { %v1638_v41 = vadd.f32 %v1636_v54, %v1545_v25 }
0x1a5e   :  { %1640 = vrot.lane.b32.xlu2 %v1638_v41, %s3434_s28 }
0x1ab8   :  { %v1641_v55 = vpop.permute.xlu2 %1640 }
0x1ab9   :  { %v1643_v57 = vadd.f32 %v1641_v55, %v3957_v23 }
0x1abb   :  { %v4009_v58 = vadd.f32 %v3953_v21, %v1643_v57 }
0x1abd   :  { %2990 = vmatmul.msk.f32.vlgmr.msrb.gmra.mxu3 %vm1224_vm8, %v4009_v58 }
0x1abe   :  { %1975 = vmatpush.msrb.mxu3 %v3774_v13 }
0x1ac0   :  { %1976 = vmatpush.msrb.mxu3 %v3777_v14 }
0x1ac2   :  { %1977 = vmatpush.msrb.mxu3 %v3780_v26 }
0x1ac4   :  { %1978 = vmatpush.msrb.mxu3 %v3783_v3 }
0x1b40   :  { %v1667_v60 = vpop.f32.mrf.mxu3 }
0x1b41   :  { %v1668_v62 = vadd.f32 %v2989_v59, %v1667_v60 }
0x1b43   :  { %v1690_v9 = vadd.f32 %v1687_v50, %v1668_v62 }
0x1b45   :  { %v2992_v11 = vmul.f32 -1.442695, %v1690_v9 }
0x1b47   :  { %3166 = vpow2.f32 %v2992_v11 }
0x1b4d   :  { %v3167_v25 = vpop.eup %3166 }
0x1b4e   :  { %v1694_v27 = vadd.f32 1.0, %v3167_v25 }
0x1b50   :  { %3168 = vrcp.f32 %v1694_v27  ;;  %v1706_v47 = vand.u32 2147483648, %v1694_v27  ;;  %v1704_v20 = vand.u32 2147483647, %v1694_v27  ;;  %vm1700_vm0 = vweird.f32 %v1694_v27 }
0x1b52   :  { %v1707_v22 = vor.u32 1.1754944e-38, %v1706_v47  ;;  %vm1705_vm2 = vcmp.eq.f32.partialorder %v1704_v20, 8.507059e+37 }
0x1b56   :  { %v3169_v36 = vpop.eup %3168 }
0x1b57   :  { %v1696_v31 = vmul.f32 %v3169_v36, %v1694_v27  ;;  %vm1701_vm15 = vweird.f32 %v3169_v36 }
0x1b58   :  { %vm1702_vm1 = vmor %vm1700_vm0, %vm1701_vm15 }
0x1b59   :  { %v1697_v17 = vsub.f32 1.0, %v1696_v31 }
0x1b5b   :  { %v1698_v19 = vmul.f32 %v3169_v36, %v1697_v17 }
0x1b5d   :  { %v1699_v18 = vadd.f32 %v3169_v36, %v1698_v19 }
0x1b5f   :  { %v1703_v24 = vsel %vm1702_vm1, %v3169_v36, %v1699_v18 }
0x1b60   :  { %v1708_v10 = vsel %vm1705_vm2, %v1707_v22, %v1703_v24 }
0x1b61   :  { %v1715_v63 = vmul.f32 %v1713_v28, %v1708_v10  ;;  %v1722_v39 = vsub.f32 1.0, %v1708_v10  ;;  %v1728_v42 = vmul.f32 %v1708_v10, %v3973_v56 }
0x1b63   :  { %1717 = vrot.lane.b32.xlu1 %v1715_v63, %s3428_s6 }
0x1b6b   :  { %1798 = vrot.lane.b32.xlu1 %v1796_v29, %s3428_s6 }
0x1bd5   :  { %v1718_v30 = vpop.permute.xlu1 %1717 }
0x1bd6   :  { %v1720_v37 = vadd.f32 %v1718_v30, %v1668_v62  ;;  %v2997_v30 = vld [vmem:[%s4331_s1 + $0xc] sm:$0xf] }
0x1bd8   :  { %3170 = vtanh.f32 %v1720_v37 }
0x1bdd   :  { %v1799_v27 = vpop.permute.xlu1 %1798 }
0x1bde   :  { %v3171_v38 = vpop.eup %3170 }
0x1bdf   :  { %1724 = vrot.lane.b32.xlu2 %v3171_v38, %s3433_s5 }
0x1c39   :  { %v1725_v40 = vpop.permute.xlu2 %1724 }
0x1c3a   :  { %v1727_v43 = vmul.f32 %v1725_v40, %v1722_v39 }
0x1c3c   :  { %v4025_v45 = vadd.f32 %v1728_v42, %v1727_v43 }
0x1c3e   :  { %1731 = vrot.lane.b32.xlu0 %v4025_v45, %s3433_s5 }
0x1cb0   :  { %v1732_v48 = vpop.permute.xlu0 %1731 }
0x1cb1   :  { %2993 = vmatmul.msk.f32.vlgmr.msra.gmra.mxu1 %vm141_vm4, %v1732_v48 }
0x1cb2   :  { %2078 = vmatpush.msra.mxu1 %v3821_v2 }
0x1cb4   :  { %2079 = vmatpush.msra.mxu1 %v3826_v4 }
0x1cb9   :  { %2999 = vmatmul.msk.f32.vlgmr.msrb.gmra.mxu1 %vm141_vm4, %v1732_v48 }
0x1cba   :  { %2247 = vmatpush.msrb.mxu1 %v3897_v46 }
0x1cbc   :  { %2248 = vmatpush.msrb.mxu1 %v3902_v52 }
0x1cbe   :  { %2249 = vmatpush.msrb.mxu1 %v3909_v7 }
0x1cc0   :  { %2250 = vmatpush.msrb.mxu1 %v3917_v8 }
0x1d2e   :  { %v1752_v56 = vpop.f32.mrf.mxu1 }
0x1d2f   :  { %v1755_v50 = vadd.f32 %v3855_v32, %v1752_v56 }
0x1d31   :  { %v1776_v51 = vadd.f32 %v1773_v12, %v1755_v50 }
0x1d33   :  { %v2995_v53 = vmul.f32 -1.442695, %v1776_v51 }
0x1d35   :  { %3172 = vpow2.f32 %v2995_v53 }
0x1d36   :  { %v1894_v10 = vpop.f32.mrf.mxu1 }
0x1d37   :  { %v1917_v63 = vadd.f32 %v1894_v10, %v3542_v6 }
0x1d3b   :  { %v3173_v35 = vpop.eup %3172 }
0x1d3c   :  { %v1780_v54 = vadd.f32 1.0, %v3173_v35 }
0x1d3e   :  { %3174 = vrcp.f32 %v1780_v54  ;;  %v1792_v59 = vand.u32 2147483648, %v1780_v54  ;;  %v1790_v62 = vand.u32 2147483647, %v1780_v54  ;;  %vm1786_vm5 = vweird.f32 %v1780_v54 }
0x1d40   :  { %v1793_v11 = vor.u32 1.1754944e-38, %v1792_v59  ;;  %vm1791_vm7 = vcmp.eq.f32.partialorder %v1790_v62, 8.507059e+37 }
0x1d44   :  { %v3175_v41 = vpop.eup %3174 }
0x1d45   :  { %v1782_v55 = vmul.f32 %v3175_v41, %v1780_v54  ;;  %vm1787_vm3 = vweird.f32 %v3175_v41 }
0x1d46   :  { %vm1788_vm6 = vmor %vm1786_vm5, %vm1787_vm3 }
0x1d47   :  { %v1783_v57 = vsub.f32 1.0, %v1782_v55 }
0x1d49   :  { %v1784_v60 = vmul.f32 %v3175_v41, %v1783_v57 }
0x1d4b   :  { %v1785_v9 = vadd.f32 %v3175_v41, %v1784_v60 }
0x1d4d   :  { %v1789_v25 = vsel %vm1788_vm6, %v3175_v41, %v1785_v9 }
0x1d4e   :  { %v1794_v36 = vsel %vm1791_vm7, %v1793_v11, %v1789_v25 }
0x1d4f   :  { %v1801_v31 = vmul.f32 %v1799_v27, %v1794_v36  ;;  %v1808_v20 = vsub.f32 1.0, %v1794_v36  ;;  %v1814_v22 = vmul.f32 %v1794_v36, %v3989_v49 }
0x1d51   :  { %1803 = vrot.lane.b32.xlu2 %v1801_v31, %s3428_s6 }
0x1dab   :  { %v1804_v17 = vpop.permute.xlu2 %1803 }
0x1dac   :  { %v1806_v47 = vadd.f32 %v1804_v17, %v1755_v50 }
0x1dae   :  { %3176 = vtanh.f32 %v1806_v47 }
0x1db4   :  { %v3177_v19 = vpop.eup %3176 }
0x1db5   :  { %1810 = vrot.lane.b32.xlu0 %v3177_v19, %s3433_s5 }
0x1e27   :  { %v1811_v18 = vpop.permute.xlu0 %1810 }
0x1e28   :  { %v1813_v24 = vmul.f32 %v1811_v18, %v1808_v20 }
0x1e2a   :  { %v4041_v28 = vadd.f32 %v1814_v22, %v1813_v24 }
0x1e2c   :  { %1817 = vrot.lane.b32.xlu1 %v4041_v28, %s3433_s5 }
0x1e34   :  { %1919 = vrot.lane.b32.xlu1 %v1917_v63, %s3428_s6 }
0x1e9e   :  { %v1818_v12 = vpop.permute.xlu1 %1817 }
0x1e9f   :  { %2996 = vmatmul.msk.f32.vlgmr.msra.gmra.mxu3 %vm141_vm4, %v1818_v12 }
0x1ea0   :  { %2161 = vmatpush.msra.mxu3 %v3806_v5 }
0x1ea2   :  { %2162 = vmatpush.msra.mxu3 %v3809_v0 }
0x1ea4   :  { %2163 = vmatpush.msra.mxu3 %v3812_v1 }
0x1ea6   :  { %2164 = vmatpush.msra.mxu3 %v3815_v61  ;;  %v1920_v35 = vpop.permute.xlu1 %1919 }
0x1ea7   :  { %3002 = vmatmul.msk.f32.vlgmr.msrb.gmra.mxu3 %vm141_vm4, %v1818_v12 }
0x1ea8   :  { %2303 = vmatpush.msrb.mxu3 %v3838_v15 }
0x1eaa   :  { %2304 = vmatpush.msrb.mxu3 %v3841_v16 }
0x1eac   :  { %2305 = vmatpush.msrb.mxu3 %v3844_v33 }
0x1eae   :  { %2306 = vmatpush.msrb.mxu3 %v3847_v34 }
0x1f22   :  { %v1838_v49 = vpop.f32.mrf.mxu3 }
0x1f23   :  { %1842 = vrot.lane.b32.xlu2 %v1838_v49, %s3433_s5 }
0x1f2a   :  { %v1980_v55 = vpop.f32.mrf.mxu3 }
0x1f2b   :  { %v2003_v57 = vadd.f32 %v1980_v55, %v3612_v44 }
0x1f7d   :  { %v1843_v5 = vpop.permute.xlu2 %1842 }
0x1f7e   :  { %v1845_v29 = vadd.f32 %v1843_v5, %v1752_v56 }
0x1f80   :  { %1847 = vrot.lane.b32.xlu0 %v1845_v29, %s3434_s28 }
0x1ff2   :  { %v1848_v0 = vpop.permute.xlu0 %1847 }
0x1ff3   :  { %v1850_v1 = vadd.f32 %v1848_v0, %v4009_v58 }
0x1ff5   :  { %v4061_v61 = vadd.f32 %v3953_v21, %v1850_v1 }
0x1ff7   :  { %2998 = vmatmul.msk.f32.vlgmr.msrb.gmra.mxu0 %vm1224_vm8, %v4061_v61 }
0x1ff8   :  { %2182 = vmatpush.msrb.mxu0 %v3774_v13 }
0x1ffa   :  { %2183 = vmatpush.msrb.mxu0 %v3777_v14 }
0x1ffc   :  { %2184 = vmatpush.msrb.mxu0 %v3780_v26 }
0x1ffe   :  { %2185 = vmatpush.msrb.mxu0 %v3783_v3 }
0x2074   :  { %v1874_v37 = vpop.f32.mrf.mxu0 }
0x2075   :  { %v1875_v38 = vadd.f32 %v2997_v30, %v1874_v37 }
0x2077   :  { %v1897_v39 = vadd.f32 %v1894_v10, %v1875_v38 }
0x2079   :  { %v3000_v40 = vmul.f32 -1.442695, %v1897_v39 }
0x207b   :  { %3178 = vpow2.f32 %v3000_v40 }
0x2081   :  { %v3179_v42 = vpop.eup %3178 }
0x2082   :  { %v1901_v43 = vadd.f32 1.0, %v3179_v42 }
0x2084   :  { %3180 = vrcp.f32 %v1901_v43  ;;  %v1913_v14 = vand.u32 2147483648, %v1901_v43  ;;  %v1911_v26 = vand.u32 2147483647, %v1901_v43  ;;  %vm1907_vm10 = vweird.f32 %v1901_v43 }
0x2086   :  { %v1914_v51 = vor.u32 1.1754944e-38, %v1913_v14  ;;  %vm1912_vm12 = vcmp.eq.f32.partialorder %v1911_v26, 8.507059e+37  ;;  %v4100_v14 = vld [vmem:[#allocation8 + $0x18] sm:$0xff]  ;;  %v4109_v26 = vld [vmem:[#allocation8] sm:$0xff] }
0x208a   :  { %v3181_v48 = vpop.eup %3180 }
0x208b   :  { %v1903_v13 = vmul.f32 %v3181_v48, %v1901_v43  ;;  %vm1908_vm9 = vweird.f32 %v3181_v48 }
0x208c   :  { %vm1909_vm11 = vmor %vm1907_vm10, %vm1908_vm9 }
0x208d   :  { %v1904_v56 = vsub.f32 1.0, %v1903_v13 }
0x208f   :  { %v1905_v50 = vmul.f32 %v3181_v48, %v1904_v56 }
0x2091   :  { %v1906_v3 = vadd.f32 %v3181_v48, %v1905_v50  ;;  %v4103_v50 = vld [vmem:[#allocation8 + $0x10] sm:$0xff] }
0x2093   :  { %v1910_v53 = vsel %vm1909_vm11, %v3181_v48, %v1906_v3 }
0x2094   :  { %v1915_v54 = vsel %vm1912_vm12, %v1914_v51, %v1910_v53 }
0x2095   :  { %v1922_v41 = vmul.f32 %v1920_v35, %v1915_v54  ;;  %v1929_v9 = vsub.f32 1.0, %v1915_v54  ;;  %v1935_v25 = vmul.f32 %v1915_v54, %v4025_v45 }
0x2097   :  { %1924 = vrot.lane.b32.xlu2 %v1922_v41, %s3428_s6 }
0x209f   :  { %2005 = vrot.lane.b32.xlu2 %v2003_v57, %s3428_s6 }
0x20f1   :  { %v1925_v59 = vpop.permute.xlu2 %1924 }
0x20f2   :  { %v1927_v60 = vadd.f32 %v1925_v59, %v1875_v38 }
0x20f4   :  { %3182 = vtanh.f32 %v1927_v60 }
0x20fa   :  { %v3183_v62 = vpop.eup %3182 }
0x20fb   :  { %1931 = vrot.lane.b32.xlu0 %v3183_v62, %s3433_s5 }
0x216d   :  { %v1932_v11 = vpop.permute.xlu0 %1931 }
0x216e   :  { %v1934_v27 = vmul.f32 %v1932_v11, %v1929_v9 }
0x2170   :  { %v4077_v36 = vadd.f32 %v1935_v25, %v1934_v27 }
0x2172   :  { %1938 = vrot.lane.b32.xlu1 %v4077_v36, %s3433_s5 }
0x21e4   :  { %v1939_v31 = vpop.permute.xlu1 %1938 }
0x21e5   :  { %3001 = vmatmul.msk.f32.vlgmr.msrb.gmra.mxu2 %vm141_vm4, %v1939_v31 }
0x21e6   :  { %2285 = vmatpush.msrb.mxu2 %v3821_v2 }
0x21e8   :  { %2286 = vmatpush.msrb.mxu2 %v3826_v4 }
0x21ed   :  { %3007 = vmatmul.msk.f32.vlgmr.msra.gmra.mxu2 %vm141_vm4, %v1939_v31 }
0x21ee   :  { %2454 = vmatpush.msra.mxu2 %v3897_v46 }
0x21f0   :  { %2455 = vmatpush.msra.mxu2 %v3902_v52 }
0x21f2   :  { %2456 = vmatpush.msra.mxu2 %v3909_v7 }
0x21f4   :  { %2457 = vmatpush.msra.mxu2 %v3917_v8 }
0x2268   :  { %v1959_v45 = vpop.f32.mrf.mxu2 }
0x2269   :  { %v1962_v17 = vadd.f32 %v3855_v32, %v1959_v45  ;;  %v2006_v32 = vpop.permute.xlu2 %2005 }
0x226b   :  { %v1983_v47 = vadd.f32 %v1980_v55, %v1962_v17  ;;  %v3005_v55 = vld [vmem:[%s4331_s1 + $0x10] sm:$0xf] }
0x226d   :  { %v3003_v19 = vmul.f32 -1.442695, %v1983_v47 }
0x226f   :  { %3184 = vpow2.f32 %v3003_v19 }
0x2270   :  { %v2101_v48 = vpop.f32.mrf.mxu2 }
0x2271   :  { %v2124_v13 = vadd.f32 %v2101_v48, %v3542_v6 }
0x2275   :  { %v3185_v20 = vpop.eup %3184 }
0x2276   :  { %v1987_v2 = vadd.f32 1.0, %v3185_v20 }
0x2278   :  { %3186 = vrcp.f32 %v1987_v2  ;;  %v1999_v24 = vand.u32 2147483648, %v1987_v2  ;;  %v1997_v63 = vand.u32 2147483647, %v1987_v2  ;;  %vm1993_vm14 = vweird.f32 %v1987_v2 }
0x227a   :  { %v2000_v49 = vor.u32 1.1754944e-38, %v1999_v24  ;;  %vm1998_vm0 = vcmp.eq.f32.partialorder %v1997_v63, 8.507059e+37 }
0x227e   :  { %v3187_v4 = vpop.eup %3186 }
0x227f   :  { %v1989_v18 = vmul.f32 %v3187_v4, %v1987_v2  ;;  %vm1994_vm13 = vweird.f32 %v3187_v4 }
0x2280   :  { %vm1995_vm15 = vmor %vm1993_vm14, %vm1994_vm13 }
0x2281   :  { %v1990_v22 = vsub.f32 1.0, %v1989_v18 }
0x2283   :  { %v1991_v10 = vmul.f32 %v3187_v4, %v1990_v22 }
0x2285   :  { %v1992_v12 = vadd.f32 %v3187_v4, %v1991_v10 }
0x2287   :  { %v1996_v5 = vsel %vm1995_vm15, %v3187_v4, %v1992_v12 }
0x2288   :  { %v2001_v29 = vsel %vm1998_vm0, %v2000_v49, %v1996_v5 }
0x2289   :  { %v2008_v0 = vmul.f32 %v2006_v32, %v2001_v29  ;;  %v2015_v38 = vsub.f32 1.0, %v2001_v29  ;;  %v2021_v40 = vmul.f32 %v2001_v29, %v4041_v28  ;;  %v4106_v28 = vld [vmem:[#allocation8 + $0x8] sm:$0xff] }
0x228b   :  { %2010 = vrot.lane.b32.xlu0 %v2008_v0, %s3428_s6 }
0x22fd   :  { %v2011_v1 = vpop.permute.xlu0 %2010 }
0x22fe   :  { %v2013_v30 = vadd.f32 %v2011_v1, %v1962_v17 }
0x2300   :  { %3188 = vtanh.f32 %v2013_v30 }
0x2306   :  { %v3189_v37 = vpop.eup %3188 }
0x2307   :  { %2017 = vrot.lane.b32.xlu1 %v3189_v37, %s3433_s5  ;;  %v4153_v37 = vld [vmem:[%s4333_s3 + $0x8] sm:$0xff] }
0x2379   :  { %v2018_v39 = vpop.permute.xlu1 %2017 }
0x237a   :  { %v2020_v42 = vmul.f32 %v2018_v39, %v2015_v38  ;;  %v4170_v39 = vld [vmem:[%s4338_s8] ss:$0 sm:$0xff] }
0x237c   :  { %v4093_v43 = vadd.f32 %v2021_v40, %v2020_v42 }
0x237e   :  { %2024 = vrot.lane.b32.xlu2 %v4093_v43, %s3433_s5 }
0x2386   :  { %2126 = vrot.lane.b32.xlu2 %v2124_v13, %s3428_s6 }
0x23d8   :  { %v2025_v56 = vpop.permute.xlu2 %2024 }
0x23d9   :  { %3004 = vmatmul.msk.f32.vlgmr.msra.gmra.mxu0 %vm141_vm4, %v2025_v56 }
0x23da   :  { %2368 = vmatpush.msra.mxu0 %v4100_v14 }
0x23dc   :  { %2369 = vmatpush.msra.mxu0 %v4103_v50 }
0x23de   :  { %2370 = vmatpush.msra.mxu0 %v4106_v28 }
0x23e0   :  { %2371 = vmatpush.msra.mxu0 %v4109_v26  ;;  %v2127_v4 = vpop.permute.xlu2 %2126 }
0x23e1   :  { %3010 = vmatmul.msk.f32.vlgmr.msrb.gmra.mxu0 %vm141_vm4, %v2025_v56 }
0x23e2   :  { %2510 = vmatpush.msrb.mxu0 %v3838_v15  ;;  %v4125_v15 = vld [vmem:[#allocation10 + $0x18] sm:$0xff] }
0x23e4   :  { %2511 = vmatpush.msrb.mxu0 %v3841_v16  ;;  %v4128_v16 = vld [vmem:[#allocation10 + $0x10] sm:$0xff] }
0x23e6   :  { %2512 = vmatpush.msrb.mxu0 %v3844_v33  ;;  %v4131_v33 = vld [vmem:[#allocation10 + $0x8] sm:$0xff] }
0x23e8   :  { %2513 = vmatpush.msrb.mxu0 %v3847_v34  ;;  %v4134_v34 = vld [vmem:[#allocation10] sm:$0xff] }
0x2456   :  { %v2045_v3 = vpop.f32.mrf.mxu0 }
0x2457   :  { %2049 = vrot.lane.b32.xlu0 %v2045_v3, %s3433_s5 }
0x245e   :  { %v2187_v24 = vpop.f32.mrf.mxu0 }
0x245f   :  { %v2210_v10 = vadd.f32 %v2187_v24, %v3612_v44 }
0x24c9   :  { %v2050_v51 = vpop.permute.xlu0 %2049 }
0x24ca   :  { %v2052_v53 = vadd.f32 %v2050_v51, %v1959_v45 }
0x24cc   :  { %2054 = vrot.lane.b32.xlu1 %v2052_v53, %s3434_s28 }
0x253e   :  { %v2055_v35 = vpop.permute.xlu1 %2054 }
0x253f   :  { %v2057_v54 = vadd.f32 %v2055_v35, %v4061_v61 }
0x2541   :  { %v4121_v41 = vadd.f32 %v3953_v21, %v2057_v54 }
0x2543   :  { %3006 = vmatmul.msk.f32.vlgmr.msra.gmra.mxu1 %vm1224_vm8, %v4121_v41 }
0x2544   :  { %2389 = vmatpush.msra.mxu1 %v4125_v15 }
0x2546   :  { %2390 = vmatpush.msra.mxu1 %v4128_v16 }
0x2548   :  { %2391 = vmatpush.msra.mxu1 %v4131_v33 }
0x254a   :  { %2392 = vmatpush.msra.mxu1 %v4134_v34 }
0x25c0   :  { %v2081_v57 = vpop.f32.mrf.mxu1 }
0x25c1   :  { %v2082_v59 = vadd.f32 %v3005_v55, %v2081_v57 }
0x25c3   :  { %v2104_v60 = vadd.f32 %v2101_v48, %v2082_v59 }
0x25c5   :  { %v3008_v62 = vmul.f32 -1.442695, %v2104_v60 }
0x25c7   :  { %3190 = vpow2.f32 %v3008_v62 }
0x25cd   :  { %v3191_v9 = vpop.eup %3190 }
0x25ce   :  { %v2108_v11 = vadd.f32 1.0, %v3191_v9 }
0x25d0   :  { %3192 = vrcp.f32 %v2108_v11  ;;  %v2120_v45 = vand.u32 2147483648, %v2108_v11  ;;  %v2118_v47 = vand.u32 2147483647, %v2108_v11  ;;  %vm2114_vm2 = vweird.f32 %v2108_v11 }
0x25d2   :  { %v2121_v20 = vor.u32 1.1754944e-38, %v2120_v45  ;;  %vm2119_vm5 = vcmp.eq.f32.partialorder %v2118_v47, 8.507059e+37 }
0x25d6   :  { %v3193_v25 = vpop.eup %3192 }
0x25d7   :  { %v2110_v27 = vmul.f32 %v3193_v25, %v2108_v11  ;;  %vm2115_vm1 = vweird.f32 %v3193_v25 }
0x25d8   :  { %vm2116_vm3 = vmor %vm2114_vm2, %vm2115_vm1 }
0x25d9   :  { %v2111_v31 = vsub.f32 1.0, %v2110_v27 }
0x25db   :  { %v2112_v17 = vmul.f32 %v3193_v25, %v2111_v31 }
0x25dd   :  { %v2113_v19 = vadd.f32 %v3193_v25, %v2112_v17 }
0x25df   :  { %v2117_v2 = vsel %vm2116_vm3, %v3193_v25, %v2113_v19 }
0x25e0   :  { %v2122_v18 = vsel %vm2119_vm5, %v2121_v20, %v2117_v2  ;;  %v3263_v20 = vld [vmem:[#allocation7 + $0x10] sm:$0xff]  ;;  %v3264_v2 = vld [vmem:[#allocation7 + $0x8] sm:$0xff] }
0x25e1   :  { %v2129_v22 = vmul.f32 %v2127_v4, %v2122_v18  ;;  %v2136_v5 = vsub.f32 1.0, %v2122_v18  ;;  %v2142_v29 = vmul.f32 %v2122_v18, %v4077_v36  ;;  %v4159_v36 = vld [vmem:[%s4333_s3] sm:$0xff] }
0x25e2   :  { %v3265_v4 = vld [vmem:[#allocation7] sm:$0xff] }
0x25e3   :  { %2131 = vrot.lane.b32.xlu0 %v2129_v22, %s3428_s6 }
0x25eb   :  { %2212 = vrot.lane.b32.xlu0 %v2210_v10, %s3428_s6 }
0x2655   :  { %v2132_v63 = vpop.permute.xlu0 %2131 }
0x2656   :  { %v2134_v12 = vadd.f32 %v2132_v63, %v2082_v59 }
0x2658   :  { %3194 = vtanh.f32 %v2134_v12 }
0x265d   :  { %v2213_v55 = vpop.permute.xlu0 %2212 }
0x265e   :  { %v3195_v49 = vpop.eup %3194 }
0x265f   :  { %2138 = vrot.lane.b32.xlu1 %v3195_v49, %s3433_s5  ;;  %v3013_v49 = vld [vmem:[%s4331_s1 + $0x14] sm:$0xf] }
0x26d1   :  { %v2139_v32 = vpop.permute.xlu1 %2138 }
0x26d2   :  { %v2141_v0 = vmul.f32 %v2139_v32, %v2136_v5 }
0x26d4   :  { %v4145_v1 = vadd.f32 %v2142_v29, %v2141_v0 }
0x26d6   :  { %2145 = vrot.lane.b32.xlu2 %v4145_v1, %s3433_s5 }
0x2730   :  { %v2146_v30 = vpop.permute.xlu2 %2145 }
0x2731   :  { %3009 = vmatmul.msk.f32.vlgmr.msra.gmra.mxu3 %vm141_vm4, %v2146_v30 }
0x2732   :  { %2492 = vmatpush.msra.mxu3 %v4153_v37 }
0x2734   :  { %2493 = vmatpush.msra.mxu3 %v4159_v36 }
0x2739   :  { %3015 = vmatmul.msk.f32.vlgmr.msrb.gmra.mxu3 %vm141_vm4, %v2146_v30 }
0x273a   :  { %2661 = vmatpush.msrb.mxu3 %v3897_v46 }
0x273c   :  { %2662 = vmatpush.msrb.mxu3 %v3902_v52 }
0x273e   :  { %2663 = vmatpush.msrb.mxu3 %v3909_v7 }
0x2740   :  { %2664 = vmatpush.msrb.mxu3 %v3917_v8 }
0x27b4   :  { %v2166_v38 = vpop.f32.mrf.mxu3 }
0x27b5   :  { %v2169_v40 = vadd.f32 %v4170_v39, %v2166_v38 }
0x27b7   :  { %v2190_v42 = vadd.f32 %v2187_v24, %v2169_v40 }
0x27b9   :  { %v3011_v48 = vmul.f32 -1.442695, %v2190_v42 }
0x27bb   :  { %3196 = vpow2.f32 %v3011_v48 }
0x27bc   :  { %v2308_v17 = vpop.f32.mrf.mxu3 }
0x27bd   :  { %v2331_v47 = vadd.f32 %v2308_v17, %v3542_v6 }
0x27c1   :  { %v3197_v13 = vpop.eup %3196 }
0x27c2   :  { %v2194_v56 = vadd.f32 1.0, %v3197_v13 }
0x27c4   :  { %3198 = vrcp.f32 %v2194_v56  ;;  %v2206_v7 = vand.u32 2147483648, %v2194_v56  ;;  %v2204_v8 = vand.u32 2147483647, %v2194_v56  ;;  %vm2200_vm7 = vweird.f32 %v2194_v56 }
0x27c6   :  { %v2207_v35 = vor.u32 1.1754944e-38, %v2206_v7  ;;  %vm2205_vm10 = vcmp.eq.f32.partialorder %v2204_v8, 8.507059e+37 }
0x27ca   :  { %v3199_v46 = vpop.eup %3198 }
0x27cb   :  { %v2196_v52 = vmul.f32 %v3199_v46, %v2194_v56  ;;  %vm2201_vm6 = vweird.f32 %v3199_v46 }
0x27cc   :  { %vm2202_vm9 = vmor %vm2200_vm7, %vm2201_vm6 }
0x27cd   :  { %v2197_v3 = vsub.f32 1.0, %v2196_v52 }
0x27cf   :  { %v2198_v51 = vmul.f32 %v3199_v46, %v2197_v3 }
0x27d1   :  { %v2199_v53 = vadd.f32 %v3199_v46, %v2198_v51 }
0x27d3   :  { %v2203_v54 = vsel %vm2202_vm9, %v3199_v46, %v2199_v53 }
0x27d4   :  { %v2208_v57 = vsel %vm2205_vm10, %v2207_v35, %v2203_v54 }
0x27d5   :  { %v2215_v59 = vmul.f32 %v2213_v55, %v2208_v57  ;;  %v2222_v11 = vsub.f32 1.0, %v2208_v57  ;;  %v2228_v27 = vmul.f32 %v2208_v57, %v4093_v43  ;;  %v3262_v43 = vld [vmem:[#allocation7 + $0x18] sm:$0xff] }
0x27d7   :  { %2217 = vrot.lane.b32.xlu1 %v2215_v59, %s3428_s6 }
0x2849   :  { %v2218_v60 = vpop.permute.xlu1 %2217 }
0x284a   :  { %v2220_v62 = vadd.f32 %v2218_v60, %v2169_v40 }
0x284c   :  { %3200 = vtanh.f32 %v2220_v62 }
0x2852   :  { %v3201_v9 = vpop.eup %3200 }
0x2853   :  { %2224 = vrot.lane.b32.xlu2 %v3201_v9, %s3433_s5 }
0x28ad   :  { %v2225_v25 = vpop.permute.xlu2 %2224 }
0x28ae   :  { %v2227_v31 = vmul.f32 %v2225_v25, %v2222_v11 }
0x28b0   :  { %v4176_v45 = vadd.f32 %v2228_v27, %v2227_v31  ;;  %v3266_v27 = vld [vmem:[%s4340_s10 + $0x18] sm:$0xff]  ;;  %v3268_v31 = vld [vmem:[%s4340_s10 + $0x8] sm:$0xff] }
0x28b2   :  { %2231 = vrot.lane.b32.xlu0 %v4176_v45, %s3433_s5 }
0x28ba   :  { %2333 = vrot.lane.b32.xlu0 %v2331_v47, %s3428_s6 }
0x2924   :  { %v2232_v19 = vpop.permute.xlu0 %2231 }
0x2925   :  { %3012 = vmatmul.msk.f32.vlgmr.msrb.gmra.mxu1 %vm141_vm4, %v2232_v19 }
0x2926   :  { %2575 = vmatpush.msrb.mxu1 %v4100_v14 }
0x2928   :  { %2576 = vmatpush.msrb.mxu1 %v4103_v50 }
0x292a   :  { %2577 = vmatpush.msrb.mxu1 %v4106_v28 }
0x292c   :  { %2578 = vmatpush.msrb.mxu1 %v4109_v26  ;;  %v2334_v7 = vpop.permute.xlu0 %2333 }
0x292d   :  { %3018 = vmatmul.msk.f32.vlgmr.msra.gmra.mxu1 %vm141_vm4, %v2232_v19 }
0x292e   :  { %2717 = vmatpush.msra.mxu1 %v3262_v43 }
0x2930   :  { %2718 = vmatpush.msra.mxu1 %v3263_v20 }
0x2932   :  { %2719 = vmatpush.msra.mxu1 %v3264_v2 }
0x2934   :  { %2720 = vmatpush.msra.mxu1 %v3265_v4 }
0x29a2   :  { %v2252_v18 = vpop.f32.mrf.mxu1 }
0x29a3   :  { %2256 = vrot.lane.b32.xlu1 %v2252_v18, %s3433_s5 }
0x29aa   :  { %v2394_v53 = vpop.f32.mrf.mxu1 }
0x29ab   :  { %v2417_v35 = vadd.f32 %v2394_v53, %v3612_v44 }
0x2a15   :  { %v2257_v22 = vpop.permute.xlu1 %2256 }
0x2a16   :  { %v2259_v24 = vadd.f32 %v2257_v22, %v2166_v38 }
0x2a18   :  { %2261 = vrot.lane.b32.xlu2 %v2259_v24, %s3434_s28 }
0x2a72   :  { %v2262_v10 = vpop.permute.xlu2 %2261 }
0x2a73   :  { %v2264_v63 = vadd.f32 %v2262_v10, %v4121_v41 }
0x2a75   :  { %v4192_v12 = vadd.f32 %v3953_v21, %v2264_v63 }
0x2a77   :  { %3014 = vmatmul.msk.f32.vlgmr.msrb.gmra.mxu2 %vm1224_vm8, %v4192_v12 }
0x2a78   :  { %2596 = vmatpush.msrb.mxu2 %v4125_v15 }
0x2a7a   :  { %2597 = vmatpush.msrb.mxu2 %v4128_v16 }
0x2a7c   :  { %2598 = vmatpush.msrb.mxu2 %v4131_v33 }
0x2a7e   :  { %2599 = vmatpush.msrb.mxu2 %v4134_v34 }
0x2afa   :  { %v2288_v5 = vpop.f32.mrf.mxu2 }
0x2afb   :  { %v2289_v32 = vadd.f32 %v3013_v49, %v2288_v5 }
0x2afd   :  { %v2311_v29 = vadd.f32 %v2308_v17, %v2289_v32 }
0x2aff   :  { %v3016_v21 = vmul.f32 -1.442695, %v2311_v29 }
0x2b01   :  { %3202 = vpow2.f32 %v3016_v21 }
0x2b07   :  { %v3203_v0 = vpop.eup %3202 }
0x2b08   :  { %v2315_v30 = vadd.f32 1.0, %v3203_v0 }
0x2b0a   :  { %3204 = vrcp.f32 %v2315_v30  ;;  %v2327_v48 = vand.u32 2147483648, %v2315_v30  ;;  %v2325_v56 = vand.u32 2147483647, %v2315_v30  ;;  %vm2321_vm12 = vweird.f32 %v2315_v30 }
0x2b0c   :  { %v2328_v52 = vor.u32 1.1754944e-38, %v2327_v48  ;;  %vm2326_vm14 = vcmp.eq.f32.partialorder %v2325_v56, 8.507059e+37 }
0x2b10   :  { %v3205_v38 = vpop.eup %3204 }
0x2b11   :  { %v2317_v40 = vmul.f32 %v3205_v38, %v2315_v30  ;;  %vm2322_vm11 = vweird.f32 %v3205_v38 }
0x2b12   :  { %vm2323_vm13 = vmor %vm2321_vm12, %vm2322_vm11 }
0x2b13   :  { %v2318_v42 = vsub.f32 1.0, %v2317_v40 }
0x2b15   :  { %v2319_v13 = vmul.f32 %v3205_v38, %v2318_v42 }
0x2b17   :  { %v2320_v46 = vadd.f32 %v3205_v38, %v2319_v13 }
0x2b19   :  { %v2324_v3 = vsel %vm2323_vm13, %v3205_v38, %v2320_v46 }
0x2b1a   :  { %v2329_v51 = vsel %vm2326_vm14, %v2328_v52, %v2324_v3 }
0x2b1b   :  { %v2336_v8 = vmul.f32 %v2334_v7, %v2329_v51  ;;  %v2343_v59 = vsub.f32 1.0, %v2329_v51  ;;  %v2349_v62 = vmul.f32 %v2329_v51, %v4145_v1  ;;  %v3267_v1 = vld [vmem:[%s4340_s10 + $0x10] sm:$0xff] }
0x2b1d   :  { %2338 = vrot.lane.b32.xlu1 %v2336_v8, %s3428_s6 }
0x2b25   :  { %2419 = vrot.lane.b32.xlu1 %v2417_v35, %s3428_s6 }
0x2b8f   :  { %v2339_v54 = vpop.permute.xlu1 %2338 }
0x2b90   :  { %v2341_v55 = vadd.f32 %v2339_v54, %v2289_v32 }
0x2b92   :  { %3206 = vtanh.f32 %v2341_v55 }
0x2b97   :  { %v2420_v32 = vpop.permute.xlu1 %2419 }
0x2b98   :  { %v3207_v57 = vpop.eup %3206 }
0x2b99   :  { %2345 = vrot.lane.b32.xlu2 %v3207_v57, %s3433_s5 }
0x2bf3   :  { %v2346_v60 = vpop.permute.xlu2 %2345 }
0x2bf4   :  { %v2348_v9 = vmul.f32 %v2346_v60, %v2343_v59 }
0x2bf6   :  { %v4208_v11 = vadd.f32 %v2349_v62, %v2348_v9 }
0x2bf8   :  { %2352 = vrot.lane.b32.xlu0 %v4208_v11, %s3433_s5 }
0x2c6a   :  { %v2353_v25 = vpop.permute.xlu0 %2352 }
0x2c6b   :  { %3017 = vmatmul.msk.f32.vlgmr.msra.gmra.mxu0 %vm141_vm4, %v2353_v25 }
0x2c6c   :  { %2699 = vmatpush.msra.mxu0 %v4153_v37  ;;  %v3269_v37 = vld [vmem:[%s4340_s10] sm:$0xff] }
0x2c6e   :  { %2700 = vmatpush.msra.mxu0 %v4159_v36 }
0x2c73   :  { %3023 = vmatmul.msk.f32.vlgmr.msrb.gmra.mxu0 %vm141_vm4, %v2353_v25 }
0x2c74   :  { %2868 = vmatpush.msrb.mxu0 %v3266_v27 }
0x2c76   :  { %2869 = vmatpush.msrb.mxu0 %v3267_v1 }
0x2c78   :  { %2870 = vmatpush.msrb.mxu0 %v3268_v31 }
0x2c7a   :  { %2871 = vmatpush.msrb.mxu0 %v3269_v37 }
0x2ce8   :  { %v2373_v36 = vpop.f32.mrf.mxu0 }
0x2ce9   :  { %v2376_v17 = vadd.f32 %v4170_v39, %v2373_v36 }
0x2ceb   :  { %v2397_v47 = vadd.f32 %v2394_v53, %v2376_v17 }
0x2ced   :  { %v3019_v19 = vmul.f32 -1.442695, %v2397_v47 }
0x2cef   :  { %3208 = vpow2.f32 %v3019_v19 }
0x2cf0   :  { %v2515_v46 = vpop.f32.mrf.mxu0 }
0x2cf1   :  { %v2538_v52 = vadd.f32 %v2515_v46, %v3542_v6 }
0x2cf5   :  { %v3209_v43 = vpop.eup %3208 }
0x2cf6   :  { %v2401_v20 = vadd.f32 1.0, %v3209_v43 }
0x2cf8   :  { %3210 = vrcp.f32 %v2401_v20  ;;  %v2413_v22 = vand.u32 2147483648, %v2401_v20  ;;  %v2411_v10 = vand.u32 2147483647, %v2401_v20  ;;  %vm2407_vm0 = vweird.f32 %v2401_v20 }
0x2cfa   :  { %v2414_v49 = vor.u32 1.1754944e-38, %v2413_v22  ;;  %vm2412_vm2 = vcmp.eq.f32.partialorder %v2411_v10, 8.507059e+37 }
0x2cfe   :  { %v3211_v2 = vpop.eup %3210 }
0x2cff   :  { %v2403_v4 = vmul.f32 %v3211_v2, %v2401_v20  ;;  %vm2408_vm15 = vweird.f32 %v3211_v2 }
0x2d00   :  { %vm2409_vm1 = vmor %vm2407_vm0, %vm2408_vm15 }
0x2d01   :  { %v2404_v18 = vsub.f32 1.0, %v2403_v4 }
0x2d03   :  { %v2405_v24 = vmul.f32 %v3211_v2, %v2404_v18 }
0x2d05   :  { %v2406_v63 = vadd.f32 %v3211_v2, %v2405_v24 }
0x2d07   :  { %v2410_v5 = vsel %vm2409_vm1, %v3211_v2, %v2406_v63 }
0x2d08   :  { %v2415_v29 = vsel %vm2412_vm2, %v2414_v49, %v2410_v5 }
0x2d09   :  { %v2422_v21 = vmul.f32 %v2420_v32, %v2415_v29  ;;  %v2429_v40 = vsub.f32 1.0, %v2415_v29  ;;  %v2435_v48 = vmul.f32 %v2415_v29, %v4176_v45 }
0x2d0b   :  { %2424 = vrot.lane.b32.xlu2 %v2422_v21, %s3428_s6 }
0x2d65   :  { %v2425_v0 = vpop.permute.xlu2 %2424 }
0x2d66   :  { %v2427_v30 = vadd.f32 %v2425_v0, %v2376_v17 }
0x2d68   :  { %3212 = vtanh.f32 %v2427_v30 }
0x2d6e   :  { %v3213_v38 = vpop.eup %3212 }
0x2d6f   :  { %2431 = vrot.lane.b32.xlu0 %v3213_v38, %s3433_s5 }
0x2de1   :  { %v2432_v42 = vpop.permute.xlu0 %2431 }
0x2de2   :  { %v2434_v13 = vmul.f32 %v2432_v42, %v2429_v40 }
0x2de4   :  { %v4232_v56 = vadd.f32 %v2435_v48, %v2434_v13 }
0x2de6   :  { %2438 = vrot.lane.b32.xlu1 %v4232_v56, %s3433_s5 }
0x2dee   :  { %2540 = vrot.lane.b32.xlu1 %v2538_v52, %s3428_s6 }
0x2e58   :  { %v2439_v3 = vpop.permute.xlu1 %2438 }
0x2e59   :  { %3020 = vmatmul.msk.f32.vlgmr.msra.gmra.mxu2 %vm141_vm4, %v2439_v3 }
0x2e5a   :  { %2782 = vmatpush.msra.mxu2 %v4100_v14  ;;  %v4250_v14 = vld [vmem:[%s4341_s11] ss:$0 sm:$0xff] }
0x2e5c   :  { %2783 = vmatpush.msra.mxu2 %v4103_v50 }
0x2e5e   :  { %2784 = vmatpush.msra.mxu2 %v4106_v28  ;;  %v3021_v28 = vld [vmem:[%s4331_s1 + $0x18] sm:$0xf] }
0x2e60   :  { %2785 = vmatpush.msra.mxu2 %v4109_v26  ;;  %v2541_v1 = vpop.permute.xlu1 %2540 }
0x2e61   :  { %3026 = vmatmul.msk.f32.vlgmr.msrb.gmra.mxu2 %vm141_vm4, %v2439_v3 }
0x2edc   :  { %v2459_v45 = vpop.f32.mrf.mxu2 }
0x2edd   :  { %2463 = vrot.lane.b32.xlu2 %v2459_v45, %s3433_s5 }
0x2f37   :  { %v2464_v7 = vpop.permute.xlu2 %2463 }
0x2f38   :  { %v2466_v51 = vadd.f32 %v2464_v7, %v2373_v36  ;;  %v2601_v36 = vpop.f32.mrf.mxu2 }
0x2f39   :  { %v2624_v17 = vadd.f32 %v2601_v36, %v3612_v44 }
0x2f3a   :  { %2468 = vrot.lane.b32.xlu0 %v2466_v51, %s3434_s28 }
0x2fac   :  { %v2469_v8 = vpop.permute.xlu0 %2468 }
0x2fad   :  { %v2471_v53 = vadd.f32 %v2469_v8, %v4192_v12 }
0x2faf   :  { %v4253_v50 = vadd.f32 %v4250_v14, %v2471_v53 }
0x2fb1   :  { %3022 = vmatmul.msk.f32.vlgmr.msra.gmra.mxu3 %vm1224_vm8, %v4253_v50 }
0x2fb2   :  { %2803 = vmatpush.msra.mxu3 %v4125_v15 }
0x2fb4   :  { %2804 = vmatpush.msra.mxu3 %v4128_v16 }
0x2fb6   :  { %2805 = vmatpush.msra.mxu3 %v4131_v33 }
0x2fb8   :  { %2806 = vmatpush.msra.mxu3 %v4134_v34 }
0x3034   :  { %v2495_v26 = vpop.f32.mrf.mxu3 }
0x3035   :  { %v2496_v35 = vadd.f32 %v3021_v28, %v2495_v26 }
0x3037   :  { %v2518_v54 = vadd.f32 %v2515_v46, %v2496_v35 }
0x3039   :  { %v3024_v55 = vmul.f32 -1.442695, %v2518_v54 }
0x303b   :  { %3214 = vpow2.f32 %v3024_v55 }
0x3041   :  { %v3215_v57 = vpop.eup %3214 }
0x3042   :  { %v2522_v59 = vadd.f32 1.0, %v3215_v57 }
0x3044   :  { %3216 = vrcp.f32 %v2522_v59  ;;  %v2534_v16 = vand.u32 2147483648, %v2522_v59  ;;  %v2532_v33 = vand.u32 2147483647, %v2522_v59  ;;  %vm2528_vm5 = vweird.f32 %v2522_v59 }
0x3046   :  { %v2535_v25 = vor.u32 1.1754944e-38, %v2534_v16  ;;  %vm2533_vm7 = vcmp.eq.f32.partialorder %v2532_v33, 8.507059e+37 }
0x304a   :  { %v3217_v60 = vpop.eup %3216 }
0x304b   :  { %v2524_v15 = vmul.f32 %v3217_v60, %v2522_v59  ;;  %vm2529_vm3 = vweird.f32 %v3217_v60 }
0x304c   :  { %vm2530_vm6 = vmor %vm2528_vm5, %vm2529_vm3 }
0x304d   :  { %v2525_v62 = vsub.f32 1.0, %v2524_v15 }
0x304f   :  { %v2526_v9 = vmul.f32 %v3217_v60, %v2525_v62 }
0x3051   :  { %v2527_v34 = vadd.f32 %v3217_v60, %v2526_v9 }
0x3053   :  { %v2531_v27 = vsel %vm2530_vm6, %v3217_v60, %v2527_v34  ;;  %vm2911_vm6 = vcmask 392192  }
0x3054   :  { %v2536_v31 = vsel %vm2533_vm7, %v2535_v25, %v2531_v27  ;;  %vm2913_vm7 = vcmask 523264  }
0x3055   :  { %v2543_v37 = vmul.f32 %v2541_v1, %v2536_v31  ;;  %v2550_v20 = vsub.f32 1.0, %v2536_v31  ;;  %v2556_v4 = vmul.f32 %v2536_v31, %v4208_v11 }
0x3057   :  { %2545 = vrot.lane.b32.xlu2 %v2543_v37, %s3428_s6 }
0x305f   :  { %2626 = vrot.lane.b32.xlu2 %v2624_v17, %s3428_s6 }
0x30b1   :  { %v2546_v47 = vpop.permute.xlu2 %2545 }
0x30b2   :  { %v2548_v19 = vadd.f32 %v2546_v47, %v2496_v35 }
0x30b4   :  { %3218 = vtanh.f32 %v2548_v19 }
0x30b9   :  { %v2627_v46 = vpop.permute.xlu2 %2626 }
0x30ba   :  { %v3219_v43 = vpop.eup %3218 }
0x30bb   :  { %2552 = vrot.lane.b32.xlu0 %v3219_v43, %s3433_s5 }
0x312d   :  { %v2553_v2 = vpop.permute.xlu0 %2552 }
0x312e   :  { %v2555_v18 = vmul.f32 %v2553_v2, %v2550_v20 }
0x3130   :  { %v4269_v22 = vadd.f32 %v2556_v4, %v2555_v18 }
0x3132   :  { %2559 = vrot.lane.b32.xlu1 %v4269_v22, %s3433_s5 }
0x31a4   :  { %v2560_v24 = vpop.permute.xlu1 %2559 }
0x31a5   :  { %3025 = vmatmul.msk.f32.vlgmr.msrb.gmra.mxu1 %vm141_vm4, %v2560_v24 }
0x31ad   :  { %3031 = vmatmul.msk.f32.vlgmr.msra.gmra.mxu1 %vm141_vm4, %v2560_v24 }
0x3222   :  { %v2580_v10 = vpop.f32.mrf.mxu1 }
0x3223   :  { %v2583_v63 = vadd.f32 %v4170_v39, %v2580_v10 }
0x3225   :  { %v2604_v49 = vadd.f32 %v2601_v36, %v2583_v63 }
0x3227   :  { %v3027_v5 = vmul.f32 -1.442695, %v2604_v49 }
0x3229   :  { %3220 = vpow2.f32 %v3027_v5 }
0x322a   :  { %v2722_v54 = vpop.f32.mrf.mxu1 }
0x322b   :  { %v2745_v55 = vadd.f32 %v2722_v54, %v3542_v6  ;;  %v3029_v6 = vld [vmem:[%s4331_s1 + $0x1c] sm:$0xf]  ;;  %s3435_s1 = smov 16  }
0x322f   :  { %v3221_v32 = vpop.eup %3220 }
0x3230   :  { %v2608_v29 = vadd.f32 1.0, %v3221_v32 }
0x3232   :  { %3222 = vrcp.f32 %v2608_v29  ;;  %v2620_v30 = vand.u32 2147483648, %v2608_v29  ;;  %v2618_v40 = vand.u32 2147483647, %v2608_v29  ;;  %vm2614_vm10 = vweird.f32 %v2608_v29 }
0x3234   :  { %v2621_v48 = vor.u32 1.1754944e-38, %v2620_v30  ;;  %vm2619_vm12 = vcmp.eq.f32.partialorder %v2618_v40, 8.507059e+37 }
0x3238   :  { %v3223_v11 = vpop.eup %3222 }
0x3239   :  { %v2610_v21 = vmul.f32 %v3223_v11, %v2608_v29  ;;  %vm2615_vm9 = vweird.f32 %v3223_v11 }
0x323a   :  { %vm2616_vm11 = vmor %vm2614_vm10, %vm2615_vm9  ;;  %vm2915_vm9 = vcmask 654336   ;;  %vm2917_vm10 = vcmask 785408  }
0x323b   :  { %v2611_v0 = vsub.f32 1.0, %v2610_v21 }
0x323d   :  { %v2612_v38 = vmul.f32 %v3223_v11, %v2611_v0 }
0x323f   :  { %v2613_v42 = vadd.f32 %v3223_v11, %v2612_v38 }
0x3241   :  { %v2617_v13 = vsel %vm2616_vm11, %v3223_v11, %v2613_v42  ;;  %vm2919_vm11 = vcmask 916480  }
0x3242   :  { %v2622_v52 = vsel %vm2619_vm12, %v2621_v48, %v2617_v13 }
0x3243   :  { %v2629_v3 = vmul.f32 %v2627_v46, %v2622_v52  ;;  %v2636_v8 = vsub.f32 1.0, %v2622_v52  ;;  %v2642_v28 = vmul.f32 %v2622_v52, %v4232_v56 }
0x3245   :  { %2631 = vrot.lane.b32.xlu0 %v2629_v3, %s3428_s6 }
0x32b7   :  { %v2632_v45 = vpop.permute.xlu0 %2631 }
0x32b8   :  { %v2634_v7 = vadd.f32 %v2632_v45, %v2583_v63 }
0x32ba   :  { %3224 = vtanh.f32 %v2634_v7 }
0x32c0   :  { %v3225_v51 = vpop.eup %3224 }
0x32c1   :  { %2638 = vrot.lane.b32.xlu1 %v3225_v51, %s3433_s5 }
0x3333   :  { %v2639_v53 = vpop.permute.xlu1 %2638 }
0x3334   :  { %v2641_v26 = vmul.f32 %v2639_v53, %v2636_v8 }
0x3336   :  { %v4279_v35 = vadd.f32 %v2642_v28, %v2641_v26 }
0x3338   :  { %2645 = vrot.lane.b32.xlu2 %v4279_v35, %s3433_s5 }
0x3340   :  { %2747 = vrot.lane.b32.xlu2 %v2745_v55, %s3428_s6 }
0x3392   :  { %v2646_v57 = vpop.permute.xlu2 %2645 }
0x3393   :  { %3028 = vmatmul.msk.f32.vlgmr.msrb.gmra.mxu3 %vm141_vm4, %v2646_v57 }
0x339a   :  { %v2748_v4 = vpop.permute.xlu2 %2747 }
0x339b   :  { %3034 = vmatmul.msk.f32.vlgmr.msra.gmra.mxu3 %vm141_vm4, %v2646_v57 }
0x3416   :  { %v2666_v59 = vpop.f32.mrf.mxu3 }
0x3417   :  { %2670 = vrot.lane.b32.xlu0 %v2666_v59, %s3433_s5 }
0x3489   :  { %v2671_v56 = vpop.permute.xlu0 %2670 }
0x348a   :  { %v2673_v60 = vadd.f32 %v2671_v56, %v2580_v10  ;;  %v2808_v10 = vpop.f32.mrf.mxu3 }
0x348b   :  { %v2831_v63 = vadd.f32 %v2808_v10, %v3612_v44 }
0x348c   :  { %2675 = vrot.lane.b32.xlu1 %v2673_v60, %s3434_s28 }
0x34fe   :  { %v2676_v15 = vpop.permute.xlu1 %2675 }
0x34ff   :  { %v2678_v62 = vadd.f32 %v2676_v15, %v4253_v50 }
0x3501   :  { %v4291_v16 = vadd.f32 %v4250_v14, %v2678_v62 }
0x3503   :  { %3030 = vmatmul.msk.f32.vlgmr.msra.gmra.mxu0 %vm1224_vm8, %v4291_v16 }
0x3580   :  { %v2702_v9 = vpop.f32.mrf.mxu0 }
0x3581   :  { %v2703_v33 = vadd.f32 %v3029_v6, %v2702_v9 }
0x3583   :  { %v2725_v34 = vadd.f32 %v2722_v54, %v2703_v33 }
0x3585   :  { %v3032_v25 = vmul.f32 -1.442695, %v2725_v34 }
0x3587   :  { %3226 = vpow2.f32 %v3032_v25 }
0x358d   :  { %v3227_v27 = vpop.eup %3226 }
0x358e   :  { %v2729_v1 = vadd.f32 1.0, %v3227_v27 }
0x3590   :  { %3228 = vrcp.f32 %v2729_v1  ;;  %v2741_v17 = vand.u32 2147483648, %v2729_v1  ;;  %v2739_v19 = vand.u32 2147483647, %v2729_v1  ;;  %vm2735_vm14 = vweird.f32 %v2729_v1 }
0x3592   :  { %v2742_v20 = vor.u32 1.1754944e-38, %v2741_v17  ;;  %vm2740_vm0 = vcmp.eq.f32.partialorder %v2739_v19, 8.507059e+37 }
0x3596   :  { %v3229_v31 = vpop.eup %3228 }
0x3597   :  { %v2731_v37 = vmul.f32 %v3229_v31, %v2729_v1  ;;  %vm2736_vm13 = vweird.f32 %v3229_v31 }
0x3598   :  { %vm2737_vm15 = vmor %vm2735_vm14, %vm2736_vm13 }
0x3599   :  { %v2732_v36 = vsub.f32 1.0, %v2731_v37 }
0x359b   :  { %v2733_v47 = vmul.f32 %v3229_v31, %v2732_v36 }
0x359d   :  { %v2734_v43 = vadd.f32 %v3229_v31, %v2733_v47 }
0x359f   :  { %v2738_v2 = vsel %vm2737_vm15, %v3229_v31, %v2734_v43 }
0x35a0   :  { %v2743_v18 = vsel %vm2740_vm0, %v2742_v20, %v2738_v2 }
0x35a1   :  { %v2750_v24 = vmul.f32 %v2748_v4, %v2743_v18  ;;  %v2757_v29 = vsub.f32 1.0, %v2743_v18  ;;  %v2763_v21 = vmul.f32 %v2743_v18, %v4269_v22 }
0x35a3   :  { %2752 = vrot.lane.b32.xlu0 %v2750_v24, %s3428_s6 }
0x35ab   :  { %2833 = vrot.lane.b32.xlu0 %v2831_v63, %s3428_s6 }
0x3615   :  { %v2753_v49 = vpop.permute.xlu0 %2752 }
0x3616   :  { %v2755_v5 = vadd.f32 %v2753_v49, %v2703_v33 }
0x3618   :  { %3230 = vtanh.f32 %v2755_v5 }
0x361e   :  { %v3231_v32 = vpop.eup %3230 }
0x361f   :  { %2759 = vrot.lane.b32.xlu1 %v3231_v32, %s3433_s5 }
0x3691   :  { %v2760_v11 = vpop.permute.xlu1 %2759 }
0x3692   :  { %v2762_v0 = vmul.f32 %v2760_v11, %v2757_v29 }
0x3694   :  { %v2764_v30 = vadd.f32 %v2763_v21, %v2762_v0 }
0x3696   :  { %2766 = vrot.lane.b32.xlu2 %v2764_v30, %s3433_s5 }
0x36f0   :  { %v2767_v38 = vpop.permute.xlu2 %2766 }
0x36f1   :  { %3033 = vmatmul.msk.f32.vlgmr.msra.gmra.mxu2 %vm141_vm4, %v2767_v38 }
0x3774   :  { %v2787_v44 = vpop.f32.mrf.mxu2 }
0x3775   :  { %v2790_v40 = vadd.f32 %v4170_v39, %v2787_v44  ;;  %v2834_v39 = vpop.permute.xlu0 %2833 }
0x3777   :  { %v2811_v42 = vadd.f32 %v2808_v10, %v2790_v40 }
0x3779   :  { %v3035_v48 = vmul.f32 -1.442695, %v2811_v42 }
0x377b   :  { %3232 = vpow2.f32 %v3035_v48 }
0x3781   :  { %v3233_v13 = vpop.eup %3232 }
0x3782   :  { %v2815_v46 = vadd.f32 1.0, %v3233_v13 }
0x3784   :  { %3234 = vrcp.f32 %v2815_v46  ;;  %v2827_v22 = vand.u32 2147483648, %v2815_v46  ;;  %v2825_v51 = vand.u32 2147483647, %v2815_v46  ;;  %vm2821_vm2 = vweird.f32 %v2815_v46 }
0x3786   :  { %v2828_v53 = vor.u32 1.1754944e-38, %v2827_v22  ;;  %vm2826_vm5 = vcmp.eq.f32.partialorder %v2825_v51, 8.507059e+37 }
0x378a   :  { %v3235_v52 = vpop.eup %3234 }
0x378b   :  { %v2817_v3 = vmul.f32 %v3235_v52, %v2815_v46  ;;  %vm2822_vm1 = vweird.f32 %v3235_v52 }
0x378c   :  { %vm2823_vm3 = vmor %vm2821_vm2, %vm2822_vm1 }
0x378d   :  { %v2818_v45 = vsub.f32 1.0, %v2817_v3 }
0x378f   :  { %v2819_v7 = vmul.f32 %v3235_v52, %v2818_v45 }
0x3791   :  { %v2820_v8 = vadd.f32 %v3235_v52, %v2819_v7 }
0x3793   :  { %v2824_v28 = vsel %vm2823_vm3, %v3235_v52, %v2820_v8 }
0x3794   :  { %v2829_v26 = vsel %vm2826_vm5, %v2828_v53, %v2824_v28 }
0x3795   :  { %v2836_v54 = vmul.f32 %v2834_v39, %v2829_v26  ;;  %v2843_v56 = vsub.f32 1.0, %v2829_v26  ;;  %v2849_v15 = vmul.f32 %v2829_v26, %v4279_v35 }
0x3797   :  { %2838 = vrot.lane.b32.xlu1 %v2836_v54, %s3428_s6 }
0x3809   :  { %v2839_v55 = vpop.permute.xlu1 %2838 }
0x380a   :  { %v2841_v57 = vadd.f32 %v2839_v55, %v2790_v40 }
0x380c   :  { %3236 = vtanh.f32 %v2841_v57 }
0x3812   :  { %v3237_v59 = vpop.eup %3236 }
0x3813   :  { %2845 = vrot.lane.b32.xlu2 %v3237_v59, %s3433_s5 }
0x386d   :  { %v2846_v60 = vpop.permute.xlu2 %2845 }
0x386e   :  { %v2848_v62 = vmul.f32 %v2846_v60, %v2843_v56 }
0x3870   :  { %v2850_v6 = vadd.f32 %v2849_v15, %v2848_v62 }
0x3872   :  { %2852 = vrot.lane.b32.xlu0 %v2850_v6, %s3433_s5 }
0x387a   :  { %2887 = vrot.lane.b32.xlu0 %v4009_v58, %s3435_s1 }
0x3882   :  { %2896 = vrot.lane.b32.xlu0 %v4192_v12, %s3428_s6  ;;  %s3438_s6 = smov 112  }
0x38e4   :  { %v2853_v9 = vpop.permute.xlu0 %2852 }
0x38e5   :  { %3036 = vmatmul.msk.f32.vlgmr.msrb.gmra.mxu0 %vm141_vm4, %v2853_v9 }
0x3962   :  { %v2873_v33 = vpop.f32.mrf.mxu0 }
0x3963   :  { %2877 = vrot.lane.b32.xlu1 %v2873_v33, %s3433_s5 }
0x396b   :  { %2890 = vrot.lane.b32.xlu1 %v4061_v61, %s3434_s28  ;;  %v2888_v61 = vpop.permute.xlu0 %2887 }
0x396c   :  { %v2909_v1 = vsel %vm1224_vm8, %v3957_v23, %v2888_v61 }
0x3973   :  { %2899 = vrot.lane.b32.xlu1 %v4253_v50, %s3436_s14  ;;  %v2897_v31 = vpop.permute.xlu0 %2896 }
0x39d5   :  { %v2878_v35 = vpop.permute.xlu1 %2877 }
0x39d6   :  { %v2880_v34 = vadd.f32 %v2878_v35, %v2787_v44 }
0x39d8   :  { %2882 = vrot.lane.b32.xlu2 %v2880_v34, %s3434_s28 }
0x39dd   :  { %v2891_v50 = vpop.permute.xlu1 %2890 }
0x39e0   :  { %2893 = vrot.lane.b32.xlu2 %v4121_v41, %s3437_s15  ;;  %v2910_v41 = vsel %vm141_vm4, %v2909_v1, %v2891_v50 }
0x39e8   :  { %2902 = vrot.lane.b32.xlu2 %v4291_v16, %s3433_s5  ;;  %s3439_s5 = smov [#allocation11]  }
0x39e9   :  { %s2927_s28 = sshll.u32 %s3439_s5, 4  ;;  %s2928_s28 = int_to_ptr.vmem [resolvable:$true] %s2927_s28 }
0x3a32   :  { %v2883_v58 = vpop.permute.xlu2 %2882 }
0x3a33   :  { %v2885_v12 = vadd.f32 %v2883_v58, %v4291_v16 }
0x3a35   :  { %v2886_v25 = vadd.f32 %v4250_v14, %v2885_v12  ;;  %v2900_v14 = vpop.permute.xlu1 %2899 }
0x3a37   :  { %2906 = vrot.lane.b32.xlu0 %v2886_v25, %s3438_s6 }
0x3a3a   :  { %v2894_v27 = vpop.permute.xlu2 %2893 }
0x3a3b   :  { %v2912_v37 = vsel %vm2911_vm6, %v2910_v41, %v2894_v27 }
0x3a3c   :  { %v2914_v36 = vsel %vm2913_vm7, %v2912_v37, %v2897_v31 }
0x3a3d   :  { %v2916_v17 = vsel %vm2915_vm9, %v2914_v36, %v2900_v14 }
0x3a42   :  { %v2903_v16 = vpop.permute.xlu2 %2902 }
0x3a43   :  { %v2918_v47 = vsel %vm2917_vm10, %v2916_v17, %v2903_v16 }
0x3aa9   :  { %v2907_v23 = vpop.permute.xlu0 %2906 }
0x3aaa   :  { %v2920_v19 = vsel %vm2919_vm11, %v2918_v47, %v2907_v23 }
0x3aab   :  { %2921 = vst [vmem:[#allocation11] sm:$0xf] %v2920_v19 }
0x3aac   :  { %2932 = dma.vmem_to_hbm [thread:$0]  %s2928_s28, 64, %s2930_s17, [#allocation4]  }
0x3aad   :  { %3421 = dma.done.wait [#allocation4], 64  }
0x3aae   :  { %3422 = vsyncadd [#allocation4], 4294967232 }
0x3aaf   :  { %2937 = vsyncpa [#allocation3], 1 }
0x3ab0   :  { %2938 = vsyncpa [#allocation6], 1 }
0x3ab1   :  { %2939 = vsyncpa [#allocation9], 1 }
0x3ab2   :  { %2940 = vsyncpa [#allocation4], 1 }

</bundles_post_ra>
